<compile_context>
chip_gen: v7x
topology: tpu7x:2x2x1
jax: 0.10.0
libtpu: 0.0.40
codegen_flags: <defaults>
</compile_context>

<pallas_src>
import functools

import numpy as np
import jax
import jax.numpy as jnp
from jax.experimental import pallas as pl
from jax.experimental.pallas import tpu as pltpu


# ---------------- config (small shapes, consistent with the torch module) ----
CFG = dict(
    n_freq_features=37,
    d_model=128,
    n_heads=8,
    n_layers=2,                   # reduced from 6 for a small, fast example
    dim_output=1,
    mask_type="mask-out-one",
    rope_encoding_scale=10000.0,  # absent from the original config dict
)

_LN_EPS = 1e-5
_OUT_PAD = 128                    # lane-dense padding of the dim_output head


# =========================== host-side constant tables =======================

def build_mask_bias(S, E, T):
    """Additive 0/-inf bias, shape (S*E*T, E*T). 'mask-out-one' semantics:
    key masked if (t_k > t_q) or (e_k == e_q); keys come from sample 0 only."""
    causal = np.triu(np.ones((T, T), dtype=bool), k=1)            # (t_q, t_k)
    idx = np.arange(E)
    elec = idx[:, None] == idx[None, :]                           # (e_q, e_k)
    cm = causal[None, :, None, :] | elec[:, None, :, None]        # (E,T,E,T)
    cm = cm.reshape(E * T, E * T)
    cm = np.tile(cm, (S, 1))                                      # same for every query sample
    return np.where(cm, -np.inf, 0.0).astype(np.float32)


def _rope_cos_sin_np(cfg, T):
    """Per-token lane tables C,S (T,D) so RoPE(x) == x*C + (x @ P)*S."""
    D = cfg["d_model"]
    H = cfg["n_heads"]
    hd = D // H
    q4 = hd // 4
    scale = cfg["rope_encoding_scale"]
    # torch: theta = scale ** (-arange(0, hd//2, 2) / hd // 2)  (floor-div binds last)
    ar = np.arange(0, hd // 2, 2, dtype=np.float64)
    exponent = np.floor((-ar / hd) / 2.0)
    theta = scale ** exponent                                     # (q4,)
    pos = np.arange(T, dtype=np.float64)[:, None] * theta[None, :]
    sin_t = np.sin(pos).astype(np.float32)
    cos_t = np.cos(pos).astype(np.float32)
    C = np.ones((T, D), np.float32)
    Sg = np.zeros((T, D), np.float32)
    for h in range(H):
        b = h * hd
        C[:, b:b + q4] = cos_t
        C[:, b + q4:b + 2 * q4] = cos_t
        Sg[:, b:b + q4] = sin_t
        Sg[:, b + q4:b + 2 * q4] = -sin_t
    return C, Sg


def _rope_perm_np(cfg):
    """Partner-permutation P (D,D): (x@P) holds each lane's RoPE partner."""
    D = cfg["d_model"]
    H = cfg["n_heads"]
    hd = D // H
    q4 = hd // 4
    P = np.zeros((D, D), np.float32)
    for h in range(H):
        b = h * hd
        for i in range(q4):
            P[b + q4 + i, b + i] = 1.0        # out lane b+i      <- x[b+q4+i]
            P[b + i, b + q4 + i] = 1.0        # out lane b+q4+i   <- x[b+i]
    return P


def build_constants(cfg, S, E, T):
    D = cfg["d_model"]
    H = cfg["n_heads"]
    hd = D // H
    Nk = E * T
    C, Sg = _rope_cos_sin_np(cfg, T)
    reps = S * E                              # token order (s,e,t): t = n % T
    rope_c = np.tile(C, (reps, 1))            # (S*E*T, D)
    rope_s = np.tile(Sg, (reps, 1))
    bias = build_mask_bias(S, E, T)           # (N, Nk)
    bias_tiled = np.tile(bias, (1, H))        # (N, H*Nk) — lane-tiled over heads
    head_mask = np.zeros((H * Nk, D), np.float32)     # block-diag head selector
    block_ones = np.zeros((H * Nk, H * Nk), np.float32)
    for h in range(H):
        head_mask[h * Nk:(h + 1) * Nk, h * hd:(h + 1) * hd] = 1.0
        block_ones[h * Nk:(h + 1) * Nk, h * Nk:(h + 1) * Nk] = 1.0
    return dict(
        bias=jnp.asarray(bias_tiled),
        rope_c=jnp.asarray(rope_c),
        rope_s=jnp.asarray(rope_s),
        head_mask=jnp.asarray(head_mask, dtype=jnp.bfloat16),
        block_ones=jnp.asarray(block_ones, dtype=jnp.bfloat16),
    )


# ================================ fused kernel ================================

def _fused_forward_kernel(x_ref, emb_ref, fw_ref, fb_ref, bias_ref,
                          rc_ref, rs_ref, hmask_ref, bones_ref,
                          ln1g_ref, ln1b_ref, wq_ref, bq_ref, wkv_ref, bkv_ref,
                          wo_ref, bo_ref, ln2g_ref, ln2b_ref,
                          w1_ref, b1_ref, w2_ref, b2_ref,
                          outw_ref, outb_ref, o_ref,
                          *, n_layers, n_heads, n_kv, eps):
    f32 = jnp.float32
    bf16 = jnp.bfloat16
    D = emb_ref.shape[1]

    def layernorm(x, g, b):
        mean = jnp.mean(x, axis=-1, keepdims=True)
        xc = x - mean
        var = jnp.mean(xc * xc, axis=-1, keepdims=True)
        return xc * jax.lax.rsqrt(var + eps) * g + b

    def erf(z):
        # Abramowitz & Stegun 7.1.26 (|err| <= 1.5e-7).
        a1, a2, a3, a4, a5 = (0.254829592, -0.284496736, 1.421413741,
                              -1.453152027, 1.061405429)
        p = 0.3275911
        sgn = jnp.where(z >= 0.0, 1.0, -1.0)
        az = jnp.abs(z)
        t = 1.0 / (1.0 + p * az)
        poly = ((((a5 * t + a4) * t + a3) * t + a2) * t + a1) * t
        return sgn * (1.0 - poly * jnp.exp(-az * az))

    def gelu_exact(z):
        return 0.5 * z * (1.0 + erf(z * 0.7071067811865476))

    def mxdot(a_f32, w_bf16):
        # bf16 MXU operands, f32 accumulation.
        return jnp.dot(a_f32.astype(bf16), w_bf16, preferred_element_type=f32)

    rc = rc_ref[...]                  # (N, D)  RoPE cos lane table
    rs = rs_ref[...]                  # (N, D)  RoPE (signed) sin lane table
    rck = rc[:n_kv]
    rsk = rs[:n_kv]
    hmask = hmask_ref[...]            # (H*Nk, D)  block-diag head selector (bf16)
    bones = bones_ref[...]            # (H*Nk, H*Nk) block-diag ones (bf16)
    bias = bias_ref[...]              # (N, H*Nk)  0 / -inf, tiled over heads

    # prologue: frequency projection + electrode embedding
    x = mxdot(x_ref[...], fw_ref[...]) + fb_ref[...] + emb_ref[...]      # (N, D) f32

    for l in range(n_layers):                                            # static unroll
        # --- self attention (queries: all samples; keys/values: sample 0) ---
        x2 = layernorm(x, ln1g_ref[l], ln1b_ref[l])
        x2b = x2.astype(bf16)

        # Q path: [s*Wq, s*Wq@P] folded -> RoPE is a lane-aligned FMA; q is pre-scaled.
        qp = jnp.dot(x2b, wq_ref[l], preferred_element_type=f32) + bq_ref[l]     # (N, 2D)
        q = qp[:, :D] * rc + qp[:, D:] * rs                                       # (N, D)

        # K/V path: only the n_kv sample-0 rows; [Wk, Wk@P, Wv] fused.
        kvp = (jnp.dot(x2b[:n_kv], wkv_ref[l], preferred_element_type=f32)
               + bkv_ref[l])                                                       # (Nk, 3D)
        k = kvp[:, :D] * rck + kvp[:, D:2 * D] * rsk                               # (Nk, D)
        v = kvp[:, 2 * D:]                                                         # (Nk, D)

        # Block-diagonal packing: Kbd/Vbd (H*Nk, D) carry head h in rows
        # h*Nk:(h+1)*Nk and lanes h*hd:(h+1)*hd, zeros elsewhere.
        kbd = jnp.concatenate([k.astype(bf16)] * n_heads, axis=0) * hmask
        vbd = jnp.concatenate([v.astype(bf16)] * n_heads, axis=0) * hmask

        # scores (N, H*Nk): block h == q_h @ k_h^T  (one wide MXU matmul)
        s = jax.lax.dot_general(q.astype(bf16), kbd, (((1,), (1,)), ((), ())),
                                preferred_element_type=f32)
        s = s + bias
        m = jnp.max(s, axis=-1, keepdims=True)       # global row max (shift-invariant)
        m = jnp.where(m == -jnp.inf, 0.0, m)         # fully-masked guard
        p = jnp.exp(s - m)
        # per-head denominators, broadcast back across each head block (MXU)
        lsum = jnp.dot(p.astype(bf16), bones, preferred_element_type=f32)
        lsafe = jnp.where(lsum == 0.0, 1.0, lsum)
        attn = p * pl.reciprocal(lsafe, approx=True)
        ctx = jnp.dot(attn.astype(bf16), vbd, preferred_element_type=f32)  # (N, D), head-concat
        x = x + mxdot(ctx, wo_ref[l]) + bo_ref[l]                          # residual

        # --- feed-forward ---
        x2 = layernorm(x, ln2g_ref[l], ln2b_ref[l])
        h = mxdot(x2, w1_ref[l]) + b1_ref[l]
        h = gelu_exact(h)
        x = x + mxdot(h, w2_ref[l]) + b2_ref[l]

    # final head, lane-padded to 128 so the store is a dense (N,128) slab
    o_ref[...] = (mxdot(x, outw_ref[...]) + outb_ref[...]).astype(o_ref.dtype)


def _full_spec(shape):
    nd = len(shape)
    return pl.BlockSpec(shape, lambda b, _nd=nd: (0,) * _nd)


def seeg_transformer_forward(x, electrode_emb, params, consts, cfg):
    B, S, E, T, F = x.shape
    D = cfg["d_model"]
    H = cfg["n_heads"]
    L = cfg["n_layers"]
    N = S * E * T
    Nk = E * T
    HNk = H * Nk
    Dff = 4 * D
    dout = cfg["dim_output"]

    x2d = x.reshape(B, N, F)
    emb_exp = jnp.broadcast_to(electrode_emb[None, :, None, :],
                               (S, E, T, D)).reshape(N, D)

    kernel = functools.partial(_fused_forward_kernel, n_layers=L, n_heads=H,
                               n_kv=Nk, eps=_LN_EPS)

    # advisory cost estimate (static Python ints)
    flops_layer = (2 * N * D * (2 * D)          # Q projection (rope-folded)
                   + 2 * Nk * D * (3 * D)       # K/V projection
                   + 2 * N * D * HNk            # scores
                   + 2 * N * HNk * HNk          # per-head softmax denominators
                   + 2 * N * HNk * D            # context
                   + 2 * N * D * D              # attention output projection
                   + 2 * N * D * Dff + 2 * N * Dff * D)   # FFN
    flops = B * (2 * N * F * D + L * flops_layer + 2 * N * D * _OUT_PAD)
    transcendentals = B * L * N * (HNk + Dff)   # softmax exp + GELU exp
    in_arrays = [x2d, emb_exp] + list(consts.values()) + list(params.values())
    bytes_accessed = int(sum(int(a.size) * a.dtype.itemsize for a in in_arrays)
                         + B * N * _OUT_PAD * 4)

    out = pl.pallas_call(
        kernel,
        out_shape=jax.ShapeDtypeStruct((B, N, _OUT_PAD), jnp.float32),
        grid=(B,),
        in_specs=[
            pl.BlockSpec((None, N, F), lambda b: (b, 0, 0)),         # x (per batch)
            _full_spec((N, D)),                                      # electrode emb
            _full_spec((F, D)), _full_spec((1, D)),                  # freq projection
            _full_spec((N, HNk)),                                    # attention bias (head-tiled)
            _full_spec((N, D)), _full_spec((N, D)),                  # RoPE C, S
            _full_spec((HNk, D)), _full_spec((HNk, HNk)),            # head mask, block ones
            _full_spec((L, 1, D)), _full_spec((L, 1, D)),            # LN1
            _full_spec((L, D, 2 * D)), _full_spec((L, 1, 2 * D)),    # Q (rope+scale folded)
            _full_spec((L, D, 3 * D)), _full_spec((L, 1, 3 * D)),    # KV (rope folded)
            _full_spec((L, D, D)), _full_spec((L, 1, D)),            # attn out proj
            _full_spec((L, 1, D)), _full_spec((L, 1, D)),            # LN2
            _full_spec((L, D, 4 * D)), _full_spec((L, 1, 4 * D)),    # FFN w1
            _full_spec((L, 4 * D, D)), _full_spec((L, 1, D)),        # FFN w2
            _full_spec((D, _OUT_PAD)), _full_spec((1, _OUT_PAD)),    # final head (padded)
        ],
        out_specs=pl.BlockSpec((None, N, _OUT_PAD), lambda b: (b, 0, 0)),
        compiler_params=pltpu.CompilerParams(
            dimension_semantics=("parallel",),                       # B across TCs on v7x
            vmem_limit_bytes=32 * 1024 * 1024),
        cost_estimate=pl.CostEstimate(flops=flops,
                                      transcendentals=transcendentals,
                                      bytes_accessed=bytes_accessed),
    )(x2d, emb_exp, params["freq_w"], params["freq_b"], consts["bias"],
      consts["rope_c"], consts["rope_s"], consts["head_mask"], consts["block_ones"],
      params["ln1_g"], params["ln1_b"], params["wq"], params["bq"],
      params["wkv"], params["bkv"], params["wo"], params["bo"],
      params["ln2_g"], params["ln2_b"], params["w1"], params["b1"],
      params["w2"], params["b2"], params["out_w_pad"], params["out_b_pad"])

    return out[:, :, :dout].reshape(B, S, E, T, dout)


# ============================== parameter init ================================

def init_params(key, cfg):
    D = cfg["d_model"]
    F = cfg["n_freq_features"]
    Dff = 4 * D
    L = cfg["n_layers"]
    H = cfg["n_heads"]
    hd = D // H
    dout = cfg["dim_output"]
    scaling = float(hd) ** -0.5
    P = jnp.asarray(_rope_perm_np(cfg))           # (D, D)
    bf16 = jnp.bfloat16

    def dense(k, din, dout_, scale=0.02):
        kw, kb = jax.random.split(k)
        return (jax.random.normal(kw, (din, dout_), jnp.float32) * scale,
                jax.random.normal(kb, (dout_,), jnp.float32) * scale)

    keys = jax.random.split(key, L + 2)
    freq_w, freq_b = dense(keys[0], F, D)

    wq_l, bq_l, wkv_l, bkv_l, wo_l, bo_l = [], [], [], [], [], []
    w1_l, b1_l, w2_l, b2_l = [], [], [], []
    ln1g, ln1b, ln2g, ln2b = [], [], [], []
    for li in range(L):
        ks = jax.random.split(keys[1 + li], 6)
        wq, bq = dense(ks[0], D, D)
        wk, bk = dense(ks[1], D, D)
        wv, bv = dense(ks[2], D, D)
        wo, bo = dense(ks[3], D, D)
        w1, b1 = dense(ks[4], D, Dff)
        w2, b2 = dense(ks[5], Dff, D)
        # Fold RoPE partner permutation (and 1/sqrt(hd) on the Q path) into weights.
        wq_l.append(jnp.concatenate([wq * scaling, (wq @ P) * scaling],
                                    axis=1).astype(bf16))
        bq_l.append(jnp.concatenate([bq * scaling, (bq @ P) * scaling])[None, :])
        wkv_l.append(jnp.concatenate([wk, wk @ P, wv], axis=1).astype(bf16))
        bkv_l.append(jnp.concatenate([bk, bk @ P, bv])[None, :])
        wo_l.append(wo.astype(bf16)); bo_l.append(bo[None, :])
        w1_l.append(w1.astype(bf16)); b1_l.append(b1[None, :])
        w2_l.append(w2.astype(bf16)); b2_l.append(b2[None, :])
        ln1g.append(jnp.ones((1, D), jnp.float32))
        ln1b.append(jnp.zeros((1, D), jnp.float32))
        ln2g.append(jnp.ones((1, D), jnp.float32))
        ln2b.append(jnp.zeros((1, D), jnp.float32))

    out_w, out_b = dense(keys[-1], D, dout)
    out_w_pad = jnp.zeros((D, _OUT_PAD), jnp.float32).at[:, :dout].set(out_w).astype(bf16)
    out_b_pad = jnp.zeros((1, _OUT_PAD), jnp.float32).at[0, :dout].set(out_b)

    stack = lambda xs: jnp.stack(xs, axis=0)
    return dict(
        freq_w=freq_w.astype(bf16), freq_b=freq_b[None, :],
        wq=stack(wq_l), bq=stack(bq_l),
        wkv=stack(wkv_l), bkv=stack(bkv_l),
        wo=stack(wo_l), bo=stack(bo_l),
        w1=stack(w1_l), b1=stack(b1_l), w2=stack(w2_l), b2=stack(b2_l),
        ln1_g=stack(ln1g), ln1_b=stack(ln1b),
        ln2_g=stack(ln2g), ln2_b=stack(ln2b),
        out_w_pad=out_w_pad, out_b_pad=out_b_pad,
    )


# =================================== main =====================================

if __name__ == "__main__":
    key = jax.random.PRNGKey(0)
    B, S, E, T = 2, 2, 4, 4          # batch, n_samples, n_electrodes, n_time_bins
    F = CFG["n_freq_features"]

    kx, ke, kp = jax.random.split(key, 3)
    x = jax.random.normal(kx, (B, S, E, T, F), jnp.float32)
    electrode_emb = jax.random.normal(ke, (E, CFG["d_model"]), jnp.float32) * 0.02
    params = init_params(kp, CFG)
    consts = build_constants(CFG, S, E, T)

    fwd = jax.jit(functools.partial(seeg_transformer_forward, cfg=CFG))
    out = fwd(x, electrode_emb, params, consts)
    jax.block_until_ready(out)

    assert out.shape == (B, S, E, T, CFG["dim_output"]), out.shape
    assert bool(jnp.all(jnp.isfinite(out)))
    print("KERNEL_OK")
</pallas_src>

<mosaic_0001>
module attributes {stable_mosaic.version = 11 : i64} {
  func.func @_fused_forward_kernel(%arg0: i32, %arg1: memref<1x32x37xf32, #tpu.memory_space<vmem>>, %arg2: memref<32x128xf32, #tpu.memory_space<vmem>>, %arg3: memref<37x128xbf16, #tpu.memory_space<vmem>>, %arg4: memref<1x128xf32, #tpu.memory_space<vmem>>, %arg5: memref<32x128xf32, #tpu.memory_space<vmem>>, %arg6: memref<32x128xf32, #tpu.memory_space<vmem>>, %arg7: memref<32x128xf32, #tpu.memory_space<vmem>>, %arg8: memref<128x128xbf16, #tpu.memory_space<vmem>>, %arg9: memref<128x128xbf16, #tpu.memory_space<vmem>>, %arg10: memref<2x1x128xf32, #tpu.memory_space<vmem>>, %arg11: memref<2x1x128xf32, #tpu.memory_space<vmem>>, %arg12: memref<2x128x256xbf16, #tpu.memory_space<vmem>>, %arg13: memref<2x1x256xf32, #tpu.memory_space<vmem>>, %arg14: memref<2x128x384xbf16, #tpu.memory_space<vmem>>, %arg15: memref<2x1x384xf32, #tpu.memory_space<vmem>>, %arg16: memref<2x128x128xbf16, #tpu.memory_space<vmem>>, %arg17: memref<2x1x128xf32, #tpu.memory_space<vmem>>, %arg18: memref<2x1x128xf32, #tpu.memory_space<vmem>>, %arg19: memref<2x1x128xf32, #tpu.memory_space<vmem>>, %arg20: memref<2x128x512xbf16, #tpu.memory_space<vmem>>, %arg21: memref<2x1x512xf32, #tpu.memory_space<vmem>>, %arg22: memref<2x512x128xbf16, #tpu.memory_space<vmem>>, %arg23: memref<2x1x128xf32, #tpu.memory_space<vmem>>, %arg24: memref<128x128xbf16, #tpu.memory_space<vmem>>, %arg25: memref<1x128xf32, #tpu.memory_space<vmem>>, %arg26: memref<1x32x128xf32, #tpu.memory_space<vmem>>) attributes {dimension_semantics = [#tpu.dimension_semantics<parallel>], iteration_bounds = array<i64: 2>, scalar_prefetch = 0 : i64, scratch_operands = 0 : i64, tpu.core_type = #tpu.core_type<tc>, window_params = [{transform_indices = @transform_0, window_bounds = array<i64: 1, 32, 37>}, {pipeline_mode = #tpu.pipeline_mode<synchronous>, transform_indices = @transform_1, window_bounds = array<i64: 32, 128>}, {pipeline_mode = #tpu.pipeline_mode<synchronous>, transform_indices = @transform_2, window_bounds = array<i64: 37, 128>}, {pipeline_mode = #tpu.pipeline_mode<synchronous>, transform_indices = @transform_3, window_bounds = array<i64: 1, 128>}, {pipeline_mode = #tpu.pipeline_mode<synchronous>, transform_indices = @transform_4, window_bounds = array<i64: 32, 128>}, {pipeline_mode = #tpu.pipeline_mode<synchronous>, transform_indices = @transform_5, window_bounds = array<i64: 32, 128>}, {pipeline_mode = #tpu.pipeline_mode<synchronous>, transform_indices = @transform_6, window_bounds = array<i64: 32, 128>}, {pipeline_mode = #tpu.pipeline_mode<synchronous>, transform_indices = @transform_7, window_bounds = array<i64: 128, 128>}, {pipeline_mode = #tpu.pipeline_mode<synchronous>, transform_indices = @transform_8, window_bounds = array<i64: 128, 128>}, {pipeline_mode = #tpu.pipeline_mode<synchronous>, transform_indices = @transform_9, window_bounds = array<i64: 2, 1, 128>}, {pipeline_mode = #tpu.pipeline_mode<synchronous>, transform_indices = @transform_10, window_bounds = array<i64: 2, 1, 128>}, {pipeline_mode = #tpu.pipeline_mode<synchronous>, transform_indices = @transform_11, window_bounds = array<i64: 2, 128, 256>}, {pipeline_mode = #tpu.pipeline_mode<synchronous>, transform_indices = @transform_12, window_bounds = array<i64: 2, 1, 256>}, {pipeline_mode = #tpu.pipeline_mode<synchronous>, transform_indices = @transform_13, window_bounds = array<i64: 2, 128, 384>}, {pipeline_mode = #tpu.pipeline_mode<synchronous>, transform_indices = @transform_14, window_bounds = array<i64: 2, 1, 384>}, {pipeline_mode = #tpu.pipeline_mode<synchronous>, transform_indices = @transform_15, window_bounds = array<i64: 2, 128, 128>}, {pipeline_mode = #tpu.pipeline_mode<synchronous>, transform_indices = @transform_16, window_bounds = array<i64: 2, 1, 128>}, {pipeline_mode = #tpu.pipeline_mode<synchronous>, transform_indices = @transform_17, window_bounds = array<i64: 2, 1, 128>}, {pipeline_mode = #tpu.pipeline_mode<synchronous>, transform_indices = @transform_18, window_bounds = array<i64: 2, 1, 128>}, {pipeline_mode = #tpu.pipeline_mode<synchronous>, transform_indices = @transform_19, window_bounds = array<i64: 2, 128, 512>}, {pipeline_mode = #tpu.pipeline_mode<synchronous>, transform_indices = @transform_20, window_bounds = array<i64: 2, 1, 512>}, {pipeline_mode = #tpu.pipeline_mode<synchronous>, transform_indices = @transform_21, window_bounds = array<i64: 2, 512, 128>}, {pipeline_mode = #tpu.pipeline_mode<synchronous>, transform_indices = @transform_22, window_bounds = array<i64: 2, 1, 128>}, {pipeline_mode = #tpu.pipeline_mode<synchronous>, transform_indices = @transform_23, window_bounds = array<i64: 128, 128>}, {pipeline_mode = #tpu.pipeline_mode<synchronous>, transform_indices = @transform_24, window_bounds = array<i64: 1, 128>}, {transform_indices = @transform_25, window_bounds = array<i64: 1, 32, 128>}]} {
    %c0 = arith.constant 0 : index
    %c0_0 = arith.constant 0 : index
    %0 = vector.load %arg6[%c0, %c0_0] : memref<32x128xf32, #tpu.memory_space<vmem>>, vector<32x128xf32>
    %c0_1 = arith.constant 0 : index
    %c0_2 = arith.constant 0 : index
    %1 = vector.load %arg7[%c0_1, %c0_2] : memref<32x128xf32, #tpu.memory_space<vmem>>, vector<32x128xf32>
    %2 = vector.extract_strided_slice %0 {offsets = [0, 0], sizes = [16, 128], strides = [1, 1]} : vector<32x128xf32> to vector<16x128xf32>
    %3 = vector.extract_strided_slice %1 {offsets = [0, 0], sizes = [16, 128], strides = [1, 1]} : vector<32x128xf32> to vector<16x128xf32>
    %c0_3 = arith.constant 0 : index
    %c0_4 = arith.constant 0 : index
    %4 = vector.load %arg8[%c0_3, %c0_4] : memref<128x128xbf16, #tpu.memory_space<vmem>>, vector<128x128xbf16>
    %c0_5 = arith.constant 0 : index
    %c0_6 = arith.constant 0 : index
    %5 = vector.load %arg9[%c0_5, %c0_6] : memref<128x128xbf16, #tpu.memory_space<vmem>>, vector<128x128xbf16>
    %c0_7 = arith.constant 0 : index
    %c0_8 = arith.constant 0 : index
    %6 = vector.load %arg5[%c0_7, %c0_8] : memref<32x128xf32, #tpu.memory_space<vmem>>, vector<32x128xf32>
    %c0_9 = arith.constant 0 : index
    %c0_10 = arith.constant 0 : index
    %c0_11 = arith.constant 0 : index
    %7 = vector.load %arg1[%c0_9, %c0_10, %c0_11] : memref<1x32x37xf32, #tpu.memory_space<vmem>>, vector<1x32x37xf32>
    %8 = vector.shape_cast %7 : vector<1x32x37xf32> to vector<32x37xf32>
    %c0_12 = arith.constant 0 : index
    %c0_13 = arith.constant 0 : index
    %9 = vector.load %arg3[%c0_12, %c0_13] : memref<37x128xbf16, #tpu.memory_space<vmem>>, vector<37x128xbf16>
    %10 = arith.truncf %8 : vector<32x37xf32> to vector<32x37xbf16>
    %cst = arith.constant dense<0.000000e+00> : vector<32x128xf32>
    %11 = tpu.matmul %10, %9, %cst {dimension_numbers = #tpu.dot_dimension_numbers<[1], [0], [0], [1], [0, 0, 1, 1], [], []>} : vector<32x37xbf16>, vector<37x128xbf16>, vector<32x128xf32> -> vector<32x128xf32>
    %c0_14 = arith.constant 0 : index
    %c0_15 = arith.constant 0 : index
    %12 = vector.load %arg4[%c0_14, %c0_15] : memref<1x128xf32, #tpu.memory_space<vmem>>, vector<1x128xf32>
    %13 = vector.broadcast %12 : vector<1x128xf32> to vector<32x128xf32>
    %14 = arith.addf %11, %13 : vector<32x128xf32>
    %c0_16 = arith.constant 0 : index
    %c0_17 = arith.constant 0 : index
    %15 = vector.load %arg2[%c0_16, %c0_17] : memref<32x128xf32, #tpu.memory_space<vmem>>, vector<32x128xf32>
    %16 = arith.addf %14, %15 : vector<32x128xf32>
    %c0_18 = arith.constant 0 : index
    %c0_19 = arith.constant 0 : index
    %c0_20 = arith.constant 0 : index
    %17 = vector.load %arg10[%c0_18, %c0_19, %c0_20] : memref<2x1x128xf32, #tpu.memory_space<vmem>>, vector<1x1x128xf32>
    %18 = vector.shape_cast %17 : vector<1x1x128xf32> to vector<1x128xf32>
    %c0_21 = arith.constant 0 : index
    %c0_22 = arith.constant 0 : index
    %c0_23 = arith.constant 0 : index
    %19 = vector.load %arg11[%c0_21, %c0_22, %c0_23] : memref<2x1x128xf32, #tpu.memory_space<vmem>>, vector<1x1x128xf32>
    %20 = vector.shape_cast %19 : vector<1x1x128xf32> to vector<1x128xf32>
    %cst_24 = arith.constant dense<0.000000e+00> : vector<32xf32>
    %21 = vector.multi_reduction <add>, %16, %cst_24 [1] : vector<32x128xf32> to vector<32xf32>
    %22 = vector.shape_cast %21 : vector<32xf32> to vector<32x1xf32>
    %cst_25 = arith.constant 1.280000e+02 : f32
    %23 = vector.broadcast %cst_25 : f32 to vector<32x1xf32>
    %24 = arith.divf %22, %23 : vector<32x1xf32>
    %25 = vector.broadcast %24 : vector<32x1xf32> to vector<32x128xf32>
    %26 = arith.subf %16, %25 : vector<32x128xf32>
    %27 = arith.mulf %26, %26 : vector<32x128xf32>
    %cst_26 = arith.constant dense<0.000000e+00> : vector<32xf32>
    %28 = vector.multi_reduction <add>, %27, %cst_26 [1] : vector<32x128xf32> to vector<32xf32>
    %29 = vector.shape_cast %28 : vector<32xf32> to vector<32x1xf32>
    %cst_27 = arith.constant 1.280000e+02 : f32
    %30 = vector.broadcast %cst_27 : f32 to vector<32x1xf32>
    %31 = arith.divf %29, %30 : vector<32x1xf32>
    %cst_28 = arith.constant 9.99999974E-6 : f32
    %32 = vector.broadcast %cst_28 : f32 to vector<32x1xf32>
    %33 = arith.addf %31, %32 : vector<32x1xf32>
    %34 = math.rsqrt %33 : vector<32x1xf32>
    %35 = vector.broadcast %34 : vector<32x1xf32> to vector<32x128xf32>
    %36 = arith.mulf %26, %35 : vector<32x128xf32>
    %37 = vector.broadcast %18 : vector<1x128xf32> to vector<32x128xf32>
    %38 = arith.mulf %36, %37 : vector<32x128xf32>
    %39 = vector.broadcast %20 : vector<1x128xf32> to vector<32x128xf32>
    %40 = arith.addf %38, %39 : vector<32x128xf32>
    %41 = arith.truncf %40 : vector<32x128xf32> to vector<32x128xbf16>
    %c0_29 = arith.constant 0 : index
    %c0_30 = arith.constant 0 : index
    %c0_31 = arith.constant 0 : index
    %42 = vector.load %arg12[%c0_29, %c0_30, %c0_31] : memref<2x128x256xbf16, #tpu.memory_space<vmem>>, vector<1x128x256xbf16>
    %43 = vector.shape_cast %42 : vector<1x128x256xbf16> to vector<128x256xbf16>
    %cst_32 = arith.constant dense<0.000000e+00> : vector<32x256xf32>
    %44 = tpu.matmul %41, %43, %cst_32 {dimension_numbers = #tpu.dot_dimension_numbers<[1], [0], [0], [1], [0, 0, 1, 1], [], []>} : vector<32x128xbf16>, vector<128x256xbf16>, vector<32x256xf32> -> vector<32x256xf32>
    %c0_33 = arith.constant 0 : index
    %c0_34 = arith.constant 0 : index
    %c0_35 = arith.constant 0 : index
    %45 = vector.load %arg13[%c0_33, %c0_34, %c0_35] : memref<2x1x256xf32, #tpu.memory_space<vmem>>, vector<1x1x256xf32>
    %46 = vector.shape_cast %45 : vector<1x1x256xf32> to vector<1x256xf32>
    %47 = vector.broadcast %46 : vector<1x256xf32> to vector<32x256xf32>
    %48 = arith.addf %44, %47 : vector<32x256xf32>
    %49 = vector.extract_strided_slice %48 {offsets = [0, 0], sizes = [32, 128], strides = [1, 1]} : vector<32x256xf32> to vector<32x128xf32>
    %50 = arith.mulf %49, %0 : vector<32x128xf32>
    %51 = vector.extract_strided_slice %48 {offsets = [0, 128], sizes = [32, 128], strides = [1, 1]} : vector<32x256xf32> to vector<32x128xf32>
    %52 = arith.mulf %51, %1 : vector<32x128xf32>
    %53 = arith.addf %50, %52 : vector<32x128xf32>
    %54 = vector.extract_strided_slice %41 {offsets = [0, 0], sizes = [16, 128], strides = [1, 1]} : vector<32x128xbf16> to vector<16x128xbf16>
    %c0_36 = arith.constant 0 : index
    %c0_37 = arith.constant 0 : index
    %c0_38 = arith.constant 0 : index
    %55 = vector.load %arg14[%c0_36, %c0_37, %c0_38] : memref<2x128x384xbf16, #tpu.memory_space<vmem>>, vector<1x128x384xbf16>
    %56 = vector.shape_cast %55 : vector<1x128x384xbf16> to vector<128x384xbf16>
    %cst_39 = arith.constant dense<0.000000e+00> : vector<16x384xf32>
    %57 = tpu.matmul %54, %56, %cst_39 {dimension_numbers = #tpu.dot_dimension_numbers<[1], [0], [0], [1], [0, 0, 1, 1], [], []>} : vector<16x128xbf16>, vector<128x384xbf16>, vector<16x384xf32> -> vector<16x384xf32>
    %c0_40 = arith.constant 0 : index
    %c0_41 = arith.constant 0 : index
    %c0_42 = arith.constant 0 : index
    %58 = vector.load %arg15[%c0_40, %c0_41, %c0_42] : memref<2x1x384xf32, #tpu.memory_space<vmem>>, vector<1x1x384xf32>
    %59 = vector.shape_cast %58 : vector<1x1x384xf32> to vector<1x384xf32>
    %60 = vector.broadcast %59 : vector<1x384xf32> to vector<16x384xf32>
    %61 = arith.addf %57, %60 : vector<16x384xf32>
    %62 = vector.extract_strided_slice %61 {offsets = [0, 0], sizes = [16, 128], strides = [1, 1]} : vector<16x384xf32> to vector<16x128xf32>
    %63 = arith.mulf %62, %2 : vector<16x128xf32>
    %64 = vector.extract_strided_slice %61 {offsets = [0, 128], sizes = [16, 128], strides = [1, 1]} : vector<16x384xf32> to vector<16x128xf32>
    %65 = arith.mulf %64, %3 : vector<16x128xf32>
    %66 = arith.addf %63, %65 : vector<16x128xf32>
    %67 = vector.extract_strided_slice %61 {offsets = [0, 256], sizes = [16, 128], strides = [1, 1]} : vector<16x384xf32> to vector<16x128xf32>
    %68 = arith.truncf %66 : vector<16x128xf32> to vector<16x128xbf16>
    %69 = tpu.concatenate %68, %68, %68, %68, %68, %68, %68, %68 in 0 : vector<16x128xbf16>, vector<16x128xbf16>, vector<16x128xbf16>, vector<16x128xbf16>, vector<16x128xbf16>, vector<16x128xbf16>, vector<16x128xbf16>, vector<16x128xbf16> -> vector<128x128xbf16>
    %70 = arith.mulf %69, %4 : vector<128x128xbf16>
    %71 = arith.truncf %67 : vector<16x128xf32> to vector<16x128xbf16>
    %72 = tpu.concatenate %71, %71, %71, %71, %71, %71, %71, %71 in 0 : vector<16x128xbf16>, vector<16x128xbf16>, vector<16x128xbf16>, vector<16x128xbf16>, vector<16x128xbf16>, vector<16x128xbf16>, vector<16x128xbf16>, vector<16x128xbf16> -> vector<128x128xbf16>
    %73 = arith.mulf %72, %4 : vector<128x128xbf16>
    %74 = arith.truncf %53 : vector<32x128xf32> to vector<32x128xbf16>
    %cst_43 = arith.constant dense<0.000000e+00> : vector<32x128xf32>
    %75 = tpu.matmul %74, %70, %cst_43 {dimension_numbers = #tpu.dot_dimension_numbers<[1], [1], [0], [0], [0, 0, 1, 0], [], []>} : vector<32x128xbf16>, vector<128x128xbf16>, vector<32x128xf32> -> vector<32x128xf32>
    %76 = arith.addf %75, %6 : vector<32x128xf32>
    %cst_44 = arith.constant dense<0xFF800000> : vector<32xf32>
    %77 = vector.multi_reduction <maximumf>, %76, %cst_44 [1] : vector<32x128xf32> to vector<32xf32>
    %78 = vector.shape_cast %77 : vector<32xf32> to vector<32x1xf32>
    %cst_45 = arith.constant 0xFF800000 : f32
    %79 = vector.broadcast %cst_45 : f32 to vector<32x1xf32>
    %80 = arith.cmpf oeq, %78, %79 : vector<32x1xf32>
    %cst_46 = arith.constant 0.000000e+00 : f32
    %81 = vector.broadcast %cst_46 : f32 to vector<32x1xf32>
    %82 = arith.select %80, %81, %78 : vector<32x1xi1>, vector<32x1xf32>
    %83 = vector.broadcast %82 : vector<32x1xf32> to vector<32x128xf32>
    %84 = arith.subf %76, %83 : vector<32x128xf32>
    %85 = math.exp %84 : vector<32x128xf32>
    %86 = arith.truncf %85 : vector<32x128xf32> to vector<32x128xbf16>
    %cst_47 = arith.constant dense<0.000000e+00> : vector<32x128xf32>
    %87 = tpu.matmul %86, %5, %cst_47 {dimension_numbers = #tpu.dot_dimension_numbers<[1], [0], [0], [1], [0, 0, 1, 1], [], []>} : vector<32x128xbf16>, vector<128x128xbf16>, vector<32x128xf32> -> vector<32x128xf32>
    %cst_48 = arith.constant 0.000000e+00 : f32
    %88 = vector.broadcast %cst_48 : f32 to vector<32x128xf32>
    %89 = arith.cmpf oeq, %87, %88 : vector<32x128xf32>
    %cst_49 = arith.constant 1.000000e+00 : f32
    %90 = vector.broadcast %cst_49 : f32 to vector<32x128xf32>
    %91 = arith.select %89, %90, %87 : vector<32x128xi1>, vector<32x128xf32>
    %92 = tpu.reciprocal %91 {approx = true} : vector<32x128xf32> -> vector<32x128xf32>
    %93 = arith.mulf %85, %92 : vector<32x128xf32>
    %94 = arith.truncf %93 : vector<32x128xf32> to vector<32x128xbf16>
    %cst_50 = arith.constant dense<0.000000e+00> : vector<32x128xf32>
    %95 = tpu.matmul %94, %73, %cst_50 {dimension_numbers = #tpu.dot_dimension_numbers<[1], [0], [0], [1], [0, 0, 1, 1], [], []>} : vector<32x128xbf16>, vector<128x128xbf16>, vector<32x128xf32> -> vector<32x128xf32>
    %c0_51 = arith.constant 0 : index
    %c0_52 = arith.constant 0 : index
    %c0_53 = arith.constant 0 : index
    %96 = vector.load %arg16[%c0_51, %c0_52, %c0_53] : memref<2x128x128xbf16, #tpu.memory_space<vmem>>, vector<1x128x128xbf16>
    %97 = vector.shape_cast %96 : vector<1x128x128xbf16> to vector<128x128xbf16>
    %98 = arith.truncf %95 : vector<32x128xf32> to vector<32x128xbf16>
    %cst_54 = arith.constant dense<0.000000e+00> : vector<32x128xf32>
    %99 = tpu.matmul %98, %97, %cst_54 {dimension_numbers = #tpu.dot_dimension_numbers<[1], [0], [0], [1], [0, 0, 1, 1], [], []>} : vector<32x128xbf16>, vector<128x128xbf16>, vector<32x128xf32> -> vector<32x128xf32>
    %100 = arith.addf %16, %99 : vector<32x128xf32>
    %c0_55 = arith.constant 0 : index
    %c0_56 = arith.constant 0 : index
    %c0_57 = arith.constant 0 : index
    %101 = vector.load %arg17[%c0_55, %c0_56, %c0_57] : memref<2x1x128xf32, #tpu.memory_space<vmem>>, vector<1x1x128xf32>
    %102 = vector.shape_cast %101 : vector<1x1x128xf32> to vector<1x128xf32>
    %103 = vector.broadcast %102 : vector<1x128xf32> to vector<32x128xf32>
    %104 = arith.addf %100, %103 : vector<32x128xf32>
    %c0_58 = arith.constant 0 : index
    %c0_59 = arith.constant 0 : index
    %c0_60 = arith.constant 0 : index
    %105 = vector.load %arg18[%c0_58, %c0_59, %c0_60] : memref<2x1x128xf32, #tpu.memory_space<vmem>>, vector<1x1x128xf32>
    %106 = vector.shape_cast %105 : vector<1x1x128xf32> to vector<1x128xf32>
    %c0_61 = arith.constant 0 : index
    %c0_62 = arith.constant 0 : index
    %c0_63 = arith.constant 0 : index
    %107 = vector.load %arg19[%c0_61, %c0_62, %c0_63] : memref<2x1x128xf32, #tpu.memory_space<vmem>>, vector<1x1x128xf32>
    %108 = vector.shape_cast %107 : vector<1x1x128xf32> to vector<1x128xf32>
    %cst_64 = arith.constant dense<0.000000e+00> : vector<32xf32>
    %109 = vector.multi_reduction <add>, %104, %cst_64 [1] : vector<32x128xf32> to vector<32xf32>
    %110 = vector.shape_cast %109 : vector<32xf32> to vector<32x1xf32>
    %cst_65 = arith.constant 1.280000e+02 : f32
    %111 = vector.broadcast %cst_65 : f32 to vector<32x1xf32>
    %112 = arith.divf %110, %111 : vector<32x1xf32>
    %113 = vector.broadcast %112 : vector<32x1xf32> to vector<32x128xf32>
    %114 = arith.subf %104, %113 : vector<32x128xf32>
    %115 = arith.mulf %114, %114 : vector<32x128xf32>
    %cst_66 = arith.constant dense<0.000000e+00> : vector<32xf32>
    %116 = vector.multi_reduction <add>, %115, %cst_66 [1] : vector<32x128xf32> to vector<32xf32>
    %117 = vector.shape_cast %116 : vector<32xf32> to vector<32x1xf32>
    %cst_67 = arith.constant 1.280000e+02 : f32
    %118 = vector.broadcast %cst_67 : f32 to vector<32x1xf32>
    %119 = arith.divf %117, %118 : vector<32x1xf32>
    %cst_68 = arith.constant 9.99999974E-6 : f32
    %120 = vector.broadcast %cst_68 : f32 to vector<32x1xf32>
    %121 = arith.addf %119, %120 : vector<32x1xf32>
    %122 = math.rsqrt %121 : vector<32x1xf32>
    %123 = vector.broadcast %122 : vector<32x1xf32> to vector<32x128xf32>
    %124 = arith.mulf %114, %123 : vector<32x128xf32>
    %125 = vector.broadcast %106 : vector<1x128xf32> to vector<32x128xf32>
    %126 = arith.mulf %124, %125 : vector<32x128xf32>
    %127 = vector.broadcast %108 : vector<1x128xf32> to vector<32x128xf32>
    %128 = arith.addf %126, %127 : vector<32x128xf32>
    %c0_69 = arith.constant 0 : index
    %c0_70 = arith.constant 0 : index
    %c0_71 = arith.constant 0 : index
    %129 = vector.load %arg20[%c0_69, %c0_70, %c0_71] : memref<2x128x512xbf16, #tpu.memory_space<vmem>>, vector<1x128x512xbf16>
    %130 = vector.shape_cast %129 : vector<1x128x512xbf16> to vector<128x512xbf16>
    %131 = arith.truncf %128 : vector<32x128xf32> to vector<32x128xbf16>
    %cst_72 = arith.constant dense<0.000000e+00> : vector<32x512xf32>
    %132 = tpu.matmul %131, %130, %cst_72 {dimension_numbers = #tpu.dot_dimension_numbers<[1], [0], [0], [1], [0, 0, 1, 1], [], []>} : vector<32x128xbf16>, vector<128x512xbf16>, vector<32x512xf32> -> vector<32x512xf32>
    %c0_73 = arith.constant 0 : index
    %c0_74 = arith.constant 0 : index
    %c0_75 = arith.constant 0 : index
    %133 = vector.load %arg21[%c0_73, %c0_74, %c0_75] : memref<2x1x512xf32, #tpu.memory_space<vmem>>, vector<1x1x512xf32>
    %134 = vector.shape_cast %133 : vector<1x1x512xf32> to vector<1x512xf32>
    %135 = vector.broadcast %134 : vector<1x512xf32> to vector<32x512xf32>
    %136 = arith.addf %132, %135 : vector<32x512xf32>
    %cst_76 = arith.constant 5.000000e-01 : f32
    %137 = vector.broadcast %cst_76 : f32 to vector<32x512xf32>
    %138 = arith.mulf %137, %136 : vector<32x512xf32>
    %cst_77 = arith.constant 0.707106769 : f32
    %139 = vector.broadcast %cst_77 : f32 to vector<32x512xf32>
    %140 = arith.mulf %136, %139 : vector<32x512xf32>
    %cst_78 = arith.constant 0.000000e+00 : f32
    %141 = vector.broadcast %cst_78 : f32 to vector<32x512xf32>
    %142 = arith.cmpf oge, %140, %141 : vector<32x512xf32>
    %cst_79 = arith.constant 1.000000e+00 : f32
    %cst_80 = arith.constant -1.000000e+00 : f32
    %143 = vector.broadcast %cst_79 : f32 to vector<32x512xf32>
    %144 = vector.broadcast %cst_80 : f32 to vector<32x512xf32>
    %145 = arith.select %142, %143, %144 : vector<32x512xi1>, vector<32x512xf32>
    %146 = math.absf %140 : vector<32x512xf32>
    %cst_81 = arith.constant 0.327591091 : f32
    %147 = vector.broadcast %cst_81 : f32 to vector<32x512xf32>
    %148 = arith.mulf %147, %146 : vector<32x512xf32>
    %cst_82 = arith.constant 1.000000e+00 : f32
    %149 = vector.broadcast %cst_82 : f32 to vector<32x512xf32>
    %150 = arith.addf %149, %148 : vector<32x512xf32>
    %cst_83 = arith.constant 1.000000e+00 : f32
    %151 = vector.broadcast %cst_83 : f32 to vector<32x512xf32>
    %152 = arith.divf %151, %150 : vector<32x512xf32>
    %cst_84 = arith.constant 1.06140542 : f32
    %153 = vector.broadcast %cst_84 : f32 to vector<32x512xf32>
    %154 = arith.mulf %153, %152 : vector<32x512xf32>
    %cst_85 = arith.constant -1.45315206 : f32
    %155 = vector.broadcast %cst_85 : f32 to vector<32x512xf32>
    %156 = arith.addf %154, %155 : vector<32x512xf32>
    %157 = arith.mulf %156, %152 : vector<32x512xf32>
    %cst_86 = arith.constant 1.42141378 : f32
    %158 = vector.broadcast %cst_86 : f32 to vector<32x512xf32>
    %159 = arith.addf %157, %158 : vector<32x512xf32>
    %160 = arith.mulf %159, %152 : vector<32x512xf32>
    %cst_87 = arith.constant -0.284496725 : f32
    %161 = vector.broadcast %cst_87 : f32 to vector<32x512xf32>
    %162 = arith.addf %160, %161 : vector<32x512xf32>
    %163 = arith.mulf %162, %152 : vector<32x512xf32>
    %cst_88 = arith.constant 0.254829586 : f32
    %164 = vector.broadcast %cst_88 : f32 to vector<32x512xf32>
    %165 = arith.addf %163, %164 : vector<32x512xf32>
    %166 = arith.mulf %165, %152 : vector<32x512xf32>
    %cst_89 = arith.constant 0.000000e+00 : f32
    %167 = vector.broadcast %cst_89 : f32 to vector<32x512xf32>
    %168 = arith.subf %167, %146 : vector<32x512xf32>
    %169 = arith.mulf %168, %146 : vector<32x512xf32>
    %170 = math.exp %169 : vector<32x512xf32>
    %171 = arith.mulf %166, %170 : vector<32x512xf32>
    %cst_90 = arith.constant 1.000000e+00 : f32
    %172 = vector.broadcast %cst_90 : f32 to vector<32x512xf32>
    %173 = arith.subf %172, %171 : vector<32x512xf32>
    %174 = arith.mulf %145, %173 : vector<32x512xf32>
    %cst_91 = arith.constant 1.000000e+00 : f32
    %175 = vector.broadcast %cst_91 : f32 to vector<32x512xf32>
    %176 = arith.addf %175, %174 : vector<32x512xf32>
    %177 = arith.mulf %138, %176 : vector<32x512xf32>
    %c0_92 = arith.constant 0 : index
    %c0_93 = arith.constant 0 : index
    %c0_94 = arith.constant 0 : index
    %178 = vector.load %arg22[%c0_92, %c0_93, %c0_94] : memref<2x512x128xbf16, #tpu.memory_space<vmem>>, vector<1x512x128xbf16>
    %179 = vector.shape_cast %178 : vector<1x512x128xbf16> to vector<512x128xbf16>
    %180 = arith.truncf %177 : vector<32x512xf32> to vector<32x512xbf16>
    %cst_95 = arith.constant dense<0.000000e+00> : vector<32x128xf32>
    %181 = tpu.matmul %180, %179, %cst_95 {dimension_numbers = #tpu.dot_dimension_numbers<[1], [0], [0], [1], [0, 0, 1, 1], [], []>} : vector<32x512xbf16>, vector<512x128xbf16>, vector<32x128xf32> -> vector<32x128xf32>
    %182 = arith.addf %104, %181 : vector<32x128xf32>
    %c0_96 = arith.constant 0 : index
    %c0_97 = arith.constant 0 : index
    %c0_98 = arith.constant 0 : index
    %183 = vector.load %arg23[%c0_96, %c0_97, %c0_98] : memref<2x1x128xf32, #tpu.memory_space<vmem>>, vector<1x1x128xf32>
    %184 = vector.shape_cast %183 : vector<1x1x128xf32> to vector<1x128xf32>
    %185 = vector.broadcast %184 : vector<1x128xf32> to vector<32x128xf32>
    %186 = arith.addf %182, %185 : vector<32x128xf32>
    %c1 = arith.constant 1 : index
    %c0_99 = arith.constant 0 : index
    %c0_100 = arith.constant 0 : index
    %187 = vector.load %arg10[%c1, %c0_99, %c0_100] : memref<2x1x128xf32, #tpu.memory_space<vmem>>, vector<1x1x128xf32>
    %188 = vector.shape_cast %187 : vector<1x1x128xf32> to vector<1x128xf32>
    %c1_101 = arith.constant 1 : index
    %c0_102 = arith.constant 0 : index
    %c0_103 = arith.constant 0 : index
    %189 = vector.load %arg11[%c1_101, %c0_102, %c0_103] : memref<2x1x128xf32, #tpu.memory_space<vmem>>, vector<1x1x128xf32>
    %190 = vector.shape_cast %189 : vector<1x1x128xf32> to vector<1x128xf32>
    %cst_104 = arith.constant dense<0.000000e+00> : vector<32xf32>
    %191 = vector.multi_reduction <add>, %186, %cst_104 [1] : vector<32x128xf32> to vector<32xf32>
    %192 = vector.shape_cast %191 : vector<32xf32> to vector<32x1xf32>
    %cst_105 = arith.constant 1.280000e+02 : f32
    %193 = vector.broadcast %cst_105 : f32 to vector<32x1xf32>
    %194 = arith.divf %192, %193 : vector<32x1xf32>
    %195 = vector.broadcast %194 : vector<32x1xf32> to vector<32x128xf32>
    %196 = arith.subf %186, %195 : vector<32x128xf32>
    %197 = arith.mulf %196, %196 : vector<32x128xf32>
    %cst_106 = arith.constant dense<0.000000e+00> : vector<32xf32>
    %198 = vector.multi_reduction <add>, %197, %cst_106 [1] : vector<32x128xf32> to vector<32xf32>
    %199 = vector.shape_cast %198 : vector<32xf32> to vector<32x1xf32>
    %cst_107 = arith.constant 1.280000e+02 : f32
    %200 = vector.broadcast %cst_107 : f32 to vector<32x1xf32>
    %201 = arith.divf %199, %200 : vector<32x1xf32>
    %cst_108 = arith.constant 9.99999974E-6 : f32
    %202 = vector.broadcast %cst_108 : f32 to vector<32x1xf32>
    %203 = arith.addf %201, %202 : vector<32x1xf32>
    %204 = math.rsqrt %203 : vector<32x1xf32>
    %205 = vector.broadcast %204 : vector<32x1xf32> to vector<32x128xf32>
    %206 = arith.mulf %196, %205 : vector<32x128xf32>
    %207 = vector.broadcast %188 : vector<1x128xf32> to vector<32x128xf32>
    %208 = arith.mulf %206, %207 : vector<32x128xf32>
    %209 = vector.broadcast %190 : vector<1x128xf32> to vector<32x128xf32>
    %210 = arith.addf %208, %209 : vector<32x128xf32>
    %211 = arith.truncf %210 : vector<32x128xf32> to vector<32x128xbf16>
    %c1_109 = arith.constant 1 : index
    %c0_110 = arith.constant 0 : index
    %c0_111 = arith.constant 0 : index
    %212 = vector.load %arg12[%c1_109, %c0_110, %c0_111] : memref<2x128x256xbf16, #tpu.memory_space<vmem>>, vector<1x128x256xbf16>
    %213 = vector.shape_cast %212 : vector<1x128x256xbf16> to vector<128x256xbf16>
    %cst_112 = arith.constant dense<0.000000e+00> : vector<32x256xf32>
    %214 = tpu.matmul %211, %213, %cst_112 {dimension_numbers = #tpu.dot_dimension_numbers<[1], [0], [0], [1], [0, 0, 1, 1], [], []>} : vector<32x128xbf16>, vector<128x256xbf16>, vector<32x256xf32> -> vector<32x256xf32>
    %c1_113 = arith.constant 1 : index
    %c0_114 = arith.constant 0 : index
    %c0_115 = arith.constant 0 : index
    %215 = vector.load %arg13[%c1_113, %c0_114, %c0_115] : memref<2x1x256xf32, #tpu.memory_space<vmem>>, vector<1x1x256xf32>
    %216 = vector.shape_cast %215 : vector<1x1x256xf32> to vector<1x256xf32>
    %217 = vector.broadcast %216 : vector<1x256xf32> to vector<32x256xf32>
    %218 = arith.addf %214, %217 : vector<32x256xf32>
    %219 = vector.extract_strided_slice %218 {offsets = [0, 0], sizes = [32, 128], strides = [1, 1]} : vector<32x256xf32> to vector<32x128xf32>
    %220 = arith.mulf %219, %0 : vector<32x128xf32>
    %221 = vector.extract_strided_slice %218 {offsets = [0, 128], sizes = [32, 128], strides = [1, 1]} : vector<32x256xf32> to vector<32x128xf32>
    %222 = arith.mulf %221, %1 : vector<32x128xf32>
    %223 = arith.addf %220, %222 : vector<32x128xf32>
    %224 = vector.extract_strided_slice %211 {offsets = [0, 0], sizes = [16, 128], strides = [1, 1]} : vector<32x128xbf16> to vector<16x128xbf16>
    %c1_116 = arith.constant 1 : index
    %c0_117 = arith.constant 0 : index
    %c0_118 = arith.constant 0 : index
    %225 = vector.load %arg14[%c1_116, %c0_117, %c0_118] : memref<2x128x384xbf16, #tpu.memory_space<vmem>>, vector<1x128x384xbf16>
    %226 = vector.shape_cast %225 : vector<1x128x384xbf16> to vector<128x384xbf16>
    %cst_119 = arith.constant dense<0.000000e+00> : vector<16x384xf32>
    %227 = tpu.matmul %224, %226, %cst_119 {dimension_numbers = #tpu.dot_dimension_numbers<[1], [0], [0], [1], [0, 0, 1, 1], [], []>} : vector<16x128xbf16>, vector<128x384xbf16>, vector<16x384xf32> -> vector<16x384xf32>
    %c1_120 = arith.constant 1 : index
    %c0_121 = arith.constant 0 : index
    %c0_122 = arith.constant 0 : index
    %228 = vector.load %arg15[%c1_120, %c0_121, %c0_122] : memref<2x1x384xf32, #tpu.memory_space<vmem>>, vector<1x1x384xf32>
    %229 = vector.shape_cast %228 : vector<1x1x384xf32> to vector<1x384xf32>
    %230 = vector.broadcast %229 : vector<1x384xf32> to vector<16x384xf32>
    %231 = arith.addf %227, %230 : vector<16x384xf32>
    %232 = vector.extract_strided_slice %231 {offsets = [0, 0], sizes = [16, 128], strides = [1, 1]} : vector<16x384xf32> to vector<16x128xf32>
    %233 = arith.mulf %232, %2 : vector<16x128xf32>
    %234 = vector.extract_strided_slice %231 {offsets = [0, 128], sizes = [16, 128], strides = [1, 1]} : vector<16x384xf32> to vector<16x128xf32>
    %235 = arith.mulf %234, %3 : vector<16x128xf32>
    %236 = arith.addf %233, %235 : vector<16x128xf32>
    %237 = vector.extract_strided_slice %231 {offsets = [0, 256], sizes = [16, 128], strides = [1, 1]} : vector<16x384xf32> to vector<16x128xf32>
    %238 = arith.truncf %236 : vector<16x128xf32> to vector<16x128xbf16>
    %239 = tpu.concatenate %238, %238, %238, %238, %238, %238, %238, %238 in 0 : vector<16x128xbf16>, vector<16x128xbf16>, vector<16x128xbf16>, vector<16x128xbf16>, vector<16x128xbf16>, vector<16x128xbf16>, vector<16x128xbf16>, vector<16x128xbf16> -> vector<128x128xbf16>
    %240 = arith.mulf %239, %4 : vector<128x128xbf16>
    %241 = arith.truncf %237 : vector<16x128xf32> to vector<16x128xbf16>
    %242 = tpu.concatenate %241, %241, %241, %241, %241, %241, %241, %241 in 0 : vector<16x128xbf16>, vector<16x128xbf16>, vector<16x128xbf16>, vector<16x128xbf16>, vector<16x128xbf16>, vector<16x128xbf16>, vector<16x128xbf16>, vector<16x128xbf16> -> vector<128x128xbf16>
    %243 = arith.mulf %242, %4 : vector<128x128xbf16>
    %244 = arith.truncf %223 : vector<32x128xf32> to vector<32x128xbf16>
    %cst_123 = arith.constant dense<0.000000e+00> : vector<32x128xf32>
    %245 = tpu.matmul %244, %240, %cst_123 {dimension_numbers = #tpu.dot_dimension_numbers<[1], [1], [0], [0], [0, 0, 1, 0], [], []>} : vector<32x128xbf16>, vector<128x128xbf16>, vector<32x128xf32> -> vector<32x128xf32>
    %246 = arith.addf %245, %6 : vector<32x128xf32>
    %cst_124 = arith.constant dense<0xFF800000> : vector<32xf32>
    %247 = vector.multi_reduction <maximumf>, %246, %cst_124 [1] : vector<32x128xf32> to vector<32xf32>
    %248 = vector.shape_cast %247 : vector<32xf32> to vector<32x1xf32>
    %cst_125 = arith.constant 0xFF800000 : f32
    %249 = vector.broadcast %cst_125 : f32 to vector<32x1xf32>
    %250 = arith.cmpf oeq, %248, %249 : vector<32x1xf32>
    %cst_126 = arith.constant 0.000000e+00 : f32
    %251 = vector.broadcast %cst_126 : f32 to vector<32x1xf32>
    %252 = arith.select %250, %251, %248 : vector<32x1xi1>, vector<32x1xf32>
    %253 = vector.broadcast %252 : vector<32x1xf32> to vector<32x128xf32>
    %254 = arith.subf %246, %253 : vector<32x128xf32>
    %255 = math.exp %254 : vector<32x128xf32>
    %256 = arith.truncf %255 : vector<32x128xf32> to vector<32x128xbf16>
    %cst_127 = arith.constant dense<0.000000e+00> : vector<32x128xf32>
    %257 = tpu.matmul %256, %5, %cst_127 {dimension_numbers = #tpu.dot_dimension_numbers<[1], [0], [0], [1], [0, 0, 1, 1], [], []>} : vector<32x128xbf16>, vector<128x128xbf16>, vector<32x128xf32> -> vector<32x128xf32>
    %cst_128 = arith.constant 0.000000e+00 : f32
    %258 = vector.broadcast %cst_128 : f32 to vector<32x128xf32>
    %259 = arith.cmpf oeq, %257, %258 : vector<32x128xf32>
    %cst_129 = arith.constant 1.000000e+00 : f32
    %260 = vector.broadcast %cst_129 : f32 to vector<32x128xf32>
    %261 = arith.select %259, %260, %257 : vector<32x128xi1>, vector<32x128xf32>
    %262 = tpu.reciprocal %261 {approx = true} : vector<32x128xf32> -> vector<32x128xf32>
    %263 = arith.mulf %255, %262 : vector<32x128xf32>
    %264 = arith.truncf %263 : vector<32x128xf32> to vector<32x128xbf16>
    %cst_130 = arith.constant dense<0.000000e+00> : vector<32x128xf32>
    %265 = tpu.matmul %264, %243, %cst_130 {dimension_numbers = #tpu.dot_dimension_numbers<[1], [0], [0], [1], [0, 0, 1, 1], [], []>} : vector<32x128xbf16>, vector<128x128xbf16>, vector<32x128xf32> -> vector<32x128xf32>
    %c1_131 = arith.constant 1 : index
    %c0_132 = arith.constant 0 : index
    %c0_133 = arith.constant 0 : index
    %266 = vector.load %arg16[%c1_131, %c0_132, %c0_133] : memref<2x128x128xbf16, #tpu.memory_space<vmem>>, vector<1x128x128xbf16>
    %267 = vector.shape_cast %266 : vector<1x128x128xbf16> to vector<128x128xbf16>
    %268 = arith.truncf %265 : vector<32x128xf32> to vector<32x128xbf16>
    %cst_134 = arith.constant dense<0.000000e+00> : vector<32x128xf32>
    %269 = tpu.matmul %268, %267, %cst_134 {dimension_numbers = #tpu.dot_dimension_numbers<[1], [0], [0], [1], [0, 0, 1, 1], [], []>} : vector<32x128xbf16>, vector<128x128xbf16>, vector<32x128xf32> -> vector<32x128xf32>
    %270 = arith.addf %186, %269 : vector<32x128xf32>
    %c1_135 = arith.constant 1 : index
    %c0_136 = arith.constant 0 : index
    %c0_137 = arith.constant 0 : index
    %271 = vector.load %arg17[%c1_135, %c0_136, %c0_137] : memref<2x1x128xf32, #tpu.memory_space<vmem>>, vector<1x1x128xf32>
    %272 = vector.shape_cast %271 : vector<1x1x128xf32> to vector<1x128xf32>
    %273 = vector.broadcast %272 : vector<1x128xf32> to vector<32x128xf32>
    %274 = arith.addf %270, %273 : vector<32x128xf32>
    %c1_138 = arith.constant 1 : index
    %c0_139 = arith.constant 0 : index
    %c0_140 = arith.constant 0 : index
    %275 = vector.load %arg18[%c1_138, %c0_139, %c0_140] : memref<2x1x128xf32, #tpu.memory_space<vmem>>, vector<1x1x128xf32>
    %276 = vector.shape_cast %275 : vector<1x1x128xf32> to vector<1x128xf32>
    %c1_141 = arith.constant 1 : index
    %c0_142 = arith.constant 0 : index
    %c0_143 = arith.constant 0 : index
    %277 = vector.load %arg19[%c1_141, %c0_142, %c0_143] : memref<2x1x128xf32, #tpu.memory_space<vmem>>, vector<1x1x128xf32>
    %278 = vector.shape_cast %277 : vector<1x1x128xf32> to vector<1x128xf32>
    %cst_144 = arith.constant dense<0.000000e+00> : vector<32xf32>
    %279 = vector.multi_reduction <add>, %274, %cst_144 [1] : vector<32x128xf32> to vector<32xf32>
    %280 = vector.shape_cast %279 : vector<32xf32> to vector<32x1xf32>
    %cst_145 = arith.constant 1.280000e+02 : f32
    %281 = vector.broadcast %cst_145 : f32 to vector<32x1xf32>
    %282 = arith.divf %280, %281 : vector<32x1xf32>
    %283 = vector.broadcast %282 : vector<32x1xf32> to vector<32x128xf32>
    %284 = arith.subf %274, %283 : vector<32x128xf32>
    %285 = arith.mulf %284, %284 : vector<32x128xf32>
    %cst_146 = arith.constant dense<0.000000e+00> : vector<32xf32>
    %286 = vector.multi_reduction <add>, %285, %cst_146 [1] : vector<32x128xf32> to vector<32xf32>
    %287 = vector.shape_cast %286 : vector<32xf32> to vector<32x1xf32>
    %cst_147 = arith.constant 1.280000e+02 : f32
    %288 = vector.broadcast %cst_147 : f32 to vector<32x1xf32>
    %289 = arith.divf %287, %288 : vector<32x1xf32>
    %cst_148 = arith.constant 9.99999974E-6 : f32
    %290 = vector.broadcast %cst_148 : f32 to vector<32x1xf32>
    %291 = arith.addf %289, %290 : vector<32x1xf32>
    %292 = math.rsqrt %291 : vector<32x1xf32>
    %293 = vector.broadcast %292 : vector<32x1xf32> to vector<32x128xf32>
    %294 = arith.mulf %284, %293 : vector<32x128xf32>
    %295 = vector.broadcast %276 : vector<1x128xf32> to vector<32x128xf32>
    %296 = arith.mulf %294, %295 : vector<32x128xf32>
    %297 = vector.broadcast %278 : vector<1x128xf32> to vector<32x128xf32>
    %298 = arith.addf %296, %297 : vector<32x128xf32>
    %c1_149 = arith.constant 1 : index
    %c0_150 = arith.constant 0 : index
    %c0_151 = arith.constant 0 : index
    %299 = vector.load %arg20[%c1_149, %c0_150, %c0_151] : memref<2x128x512xbf16, #tpu.memory_space<vmem>>, vector<1x128x512xbf16>
    %300 = vector.shape_cast %299 : vector<1x128x512xbf16> to vector<128x512xbf16>
    %301 = arith.truncf %298 : vector<32x128xf32> to vector<32x128xbf16>
    %cst_152 = arith.constant dense<0.000000e+00> : vector<32x512xf32>
    %302 = tpu.matmul %301, %300, %cst_152 {dimension_numbers = #tpu.dot_dimension_numbers<[1], [0], [0], [1], [0, 0, 1, 1], [], []>} : vector<32x128xbf16>, vector<128x512xbf16>, vector<32x512xf32> -> vector<32x512xf32>
    %c1_153 = arith.constant 1 : index
    %c0_154 = arith.constant 0 : index
    %c0_155 = arith.constant 0 : index
    %303 = vector.load %arg21[%c1_153, %c0_154, %c0_155] : memref<2x1x512xf32, #tpu.memory_space<vmem>>, vector<1x1x512xf32>
    %304 = vector.shape_cast %303 : vector<1x1x512xf32> to vector<1x512xf32>
    %305 = vector.broadcast %304 : vector<1x512xf32> to vector<32x512xf32>
    %306 = arith.addf %302, %305 : vector<32x512xf32>
    %cst_156 = arith.constant 5.000000e-01 : f32
    %307 = vector.broadcast %cst_156 : f32 to vector<32x512xf32>
    %308 = arith.mulf %307, %306 : vector<32x512xf32>
    %cst_157 = arith.constant 0.707106769 : f32
    %309 = vector.broadcast %cst_157 : f32 to vector<32x512xf32>
    %310 = arith.mulf %306, %309 : vector<32x512xf32>
    %cst_158 = arith.constant 0.000000e+00 : f32
    %311 = vector.broadcast %cst_158 : f32 to vector<32x512xf32>
    %312 = arith.cmpf oge, %310, %311 : vector<32x512xf32>
    %cst_159 = arith.constant 1.000000e+00 : f32
    %cst_160 = arith.constant -1.000000e+00 : f32
    %313 = vector.broadcast %cst_159 : f32 to vector<32x512xf32>
    %314 = vector.broadcast %cst_160 : f32 to vector<32x512xf32>
    %315 = arith.select %312, %313, %314 : vector<32x512xi1>, vector<32x512xf32>
    %316 = math.absf %310 : vector<32x512xf32>
    %cst_161 = arith.constant 0.327591091 : f32
    %317 = vector.broadcast %cst_161 : f32 to vector<32x512xf32>
    %318 = arith.mulf %317, %316 : vector<32x512xf32>
    %cst_162 = arith.constant 1.000000e+00 : f32
    %319 = vector.broadcast %cst_162 : f32 to vector<32x512xf32>
    %320 = arith.addf %319, %318 : vector<32x512xf32>
    %cst_163 = arith.constant 1.000000e+00 : f32
    %321 = vector.broadcast %cst_163 : f32 to vector<32x512xf32>
    %322 = arith.divf %321, %320 : vector<32x512xf32>
    %cst_164 = arith.constant 1.06140542 : f32
    %323 = vector.broadcast %cst_164 : f32 to vector<32x512xf32>
    %324 = arith.mulf %323, %322 : vector<32x512xf32>
    %cst_165 = arith.constant -1.45315206 : f32
    %325 = vector.broadcast %cst_165 : f32 to vector<32x512xf32>
    %326 = arith.addf %324, %325 : vector<32x512xf32>
    %327 = arith.mulf %326, %322 : vector<32x512xf32>
    %cst_166 = arith.constant 1.42141378 : f32
    %328 = vector.broadcast %cst_166 : f32 to vector<32x512xf32>
    %329 = arith.addf %327, %328 : vector<32x512xf32>
    %330 = arith.mulf %329, %322 : vector<32x512xf32>
    %cst_167 = arith.constant -0.284496725 : f32
    %331 = vector.broadcast %cst_167 : f32 to vector<32x512xf32>
    %332 = arith.addf %330, %331 : vector<32x512xf32>
    %333 = arith.mulf %332, %322 : vector<32x512xf32>
    %cst_168 = arith.constant 0.254829586 : f32
    %334 = vector.broadcast %cst_168 : f32 to vector<32x512xf32>
    %335 = arith.addf %333, %334 : vector<32x512xf32>
    %336 = arith.mulf %335, %322 : vector<32x512xf32>
    %cst_169 = arith.constant 0.000000e+00 : f32
    %337 = vector.broadcast %cst_169 : f32 to vector<32x512xf32>
    %338 = arith.subf %337, %316 : vector<32x512xf32>
    %339 = arith.mulf %338, %316 : vector<32x512xf32>
    %340 = math.exp %339 : vector<32x512xf32>
    %341 = arith.mulf %336, %340 : vector<32x512xf32>
    %cst_170 = arith.constant 1.000000e+00 : f32
    %342 = vector.broadcast %cst_170 : f32 to vector<32x512xf32>
    %343 = arith.subf %342, %341 : vector<32x512xf32>
    %344 = arith.mulf %315, %343 : vector<32x512xf32>
    %cst_171 = arith.constant 1.000000e+00 : f32
    %345 = vector.broadcast %cst_171 : f32 to vector<32x512xf32>
    %346 = arith.addf %345, %344 : vector<32x512xf32>
    %347 = arith.mulf %308, %346 : vector<32x512xf32>
    %c1_172 = arith.constant 1 : index
    %c0_173 = arith.constant 0 : index
    %c0_174 = arith.constant 0 : index
    %348 = vector.load %arg22[%c1_172, %c0_173, %c0_174] : memref<2x512x128xbf16, #tpu.memory_space<vmem>>, vector<1x512x128xbf16>
    %349 = vector.shape_cast %348 : vector<1x512x128xbf16> to vector<512x128xbf16>
    %350 = arith.truncf %347 : vector<32x512xf32> to vector<32x512xbf16>
    %cst_175 = arith.constant dense<0.000000e+00> : vector<32x128xf32>
    %351 = tpu.matmul %350, %349, %cst_175 {dimension_numbers = #tpu.dot_dimension_numbers<[1], [0], [0], [1], [0, 0, 1, 1], [], []>} : vector<32x512xbf16>, vector<512x128xbf16>, vector<32x128xf32> -> vector<32x128xf32>
    %352 = arith.addf %274, %351 : vector<32x128xf32>
    %c1_176 = arith.constant 1 : index
    %c0_177 = arith.constant 0 : index
    %c0_178 = arith.constant 0 : index
    %353 = vector.load %arg23[%c1_176, %c0_177, %c0_178] : memref<2x1x128xf32, #tpu.memory_space<vmem>>, vector<1x1x128xf32>
    %354 = vector.shape_cast %353 : vector<1x1x128xf32> to vector<1x128xf32>
    %355 = vector.broadcast %354 : vector<1x128xf32> to vector<32x128xf32>
    %356 = arith.addf %352, %355 : vector<32x128xf32>
    %c0_179 = arith.constant 0 : index
    %c0_180 = arith.constant 0 : index
    %357 = vector.load %arg24[%c0_179, %c0_180] : memref<128x128xbf16, #tpu.memory_space<vmem>>, vector<128x128xbf16>
    %358 = arith.truncf %356 : vector<32x128xf32> to vector<32x128xbf16>
    %cst_181 = arith.constant dense<0.000000e+00> : vector<32x128xf32>
    %359 = tpu.matmul %358, %357, %cst_181 {dimension_numbers = #tpu.dot_dimension_numbers<[1], [0], [0], [1], [0, 0, 1, 1], [], []>} : vector<32x128xbf16>, vector<128x128xbf16>, vector<32x128xf32> -> vector<32x128xf32>
    %c0_182 = arith.constant 0 : index
    %c0_183 = arith.constant 0 : index
    %360 = vector.load %arg25[%c0_182, %c0_183] : memref<1x128xf32, #tpu.memory_space<vmem>>, vector<1x128xf32>
    %361 = vector.broadcast %360 : vector<1x128xf32> to vector<32x128xf32>
    %362 = arith.addf %359, %361 : vector<32x128xf32>
    %c0_184 = arith.constant 0 : index
    %c0_185 = arith.constant 0 : index
    %c0_186 = arith.constant 0 : index
    %363 = vector.load %arg26[%c0_184, %c0_185, %c0_186] : memref<1x32x128xf32, #tpu.memory_space<vmem>>, vector<1x32x128xf32>
    %364 = vector.shape_cast %363 : vector<1x32x128xf32> to vector<32x128xf32>
    %365 = vector.shape_cast %362 : vector<32x128xf32> to vector<1x32x128xf32>
    tpu.vector_store %arg26[%c0_184, %c0_185, %c0_186], %365 {strides = array<i32>} : memref<1x32x128xf32, #tpu.memory_space<vmem>>, vector<1x32x128xf32>,
    return
  }
  func.func @transform_0(%arg0: i32) -> (i32, i32, i32) {
    %c0_i32 = arith.constant 0 : i32
    %c0_i32_0 = arith.constant 0 : i32
    %c0_i32_1 = arith.constant 0 : i32
    return %arg0, %c0_i32, %c0_i32_0 : i32, i32, i32
  }
  func.func @transform_1(%arg0: i32) -> (i32, i32) {
    %c0_i32 = arith.constant 0 : i32
    %c0_i32_0 = arith.constant 0 : i32
    %c0_i32_1 = arith.constant 0 : i32
    return %c0_i32, %c0_i32_0 : i32, i32
  }
  func.func @transform_2(%arg0: i32) -> (i32, i32) {
    %c0_i32 = arith.constant 0 : i32
    %c0_i32_0 = arith.constant 0 : i32
    %c0_i32_1 = arith.constant 0 : i32
    return %c0_i32, %c0_i32_0 : i32, i32
  }
  func.func @transform_3(%arg0: i32) -> (i32, i32) {
    %c0_i32 = arith.constant 0 : i32
    %c0_i32_0 = arith.constant 0 : i32
    %c0_i32_1 = arith.constant 0 : i32
    return %c0_i32, %c0_i32_0 : i32, i32
  }
  func.func @transform_4(%arg0: i32) -> (i32, i32) {
    %c0_i32 = arith.constant 0 : i32
    %c0_i32_0 = arith.constant 0 : i32
    %c0_i32_1 = arith.constant 0 : i32
    return %c0_i32, %c0_i32_0 : i32, i32
  }
  func.func @transform_5(%arg0: i32) -> (i32, i32) {
    %c0_i32 = arith.constant 0 : i32
    %c0_i32_0 = arith.constant 0 : i32
    %c0_i32_1 = arith.constant 0 : i32
    return %c0_i32, %c0_i32_0 : i32, i32
  }
  func.func @transform_6(%arg0: i32) -> (i32, i32) {
    %c0_i32 = arith.constant 0 : i32
    %c0_i32_0 = arith.constant 0 : i32
    %c0_i32_1 = arith.constant 0 : i32
    return %c0_i32, %c0_i32_0 : i32, i32
  }
  func.func @transform_7(%arg0: i32) -> (i32, i32) {
    %c0_i32 = arith.constant 0 : i32
    %c0_i32_0 = arith.constant 0 : i32
    %c0_i32_1 = arith.constant 0 : i32
    return %c0_i32, %c0_i32_0 : i32, i32
  }
  func.func @transform_8(%arg0: i32) -> (i32, i32) {
    %c0_i32 = arith.constant 0 : i32
    %c0_i32_0 = arith.constant 0 : i32
    %c0_i32_1 = arith.constant 0 : i32
    return %c0_i32, %c0_i32_0 : i32, i32
  }
  func.func @transform_9(%arg0: i32) -> (i32, i32, i32) {
    %c0_i32 = arith.constant 0 : i32
    %c0_i32_0 = arith.constant 0 : i32
    %c0_i32_1 = arith.constant 0 : i32
    %c0_i32_2 = arith.constant 0 : i32
    return %c0_i32, %c0_i32_0, %c0_i32_1 : i32, i32, i32
  }
  func.func @transform_10(%arg0: i32) -> (i32, i32, i32) {
    %c0_i32 = arith.constant 0 : i32
    %c0_i32_0 = arith.constant 0 : i32
    %c0_i32_1 = arith.constant 0 : i32
    %c0_i32_2 = arith.constant 0 : i32
    return %c0_i32, %c0_i32_0, %c0_i32_1 : i32, i32, i32
  }
  func.func @transform_11(%arg0: i32) -> (i32, i32, i32) {
    %c0_i32 = arith.constant 0 : i32
    %c0_i32_0 = arith.constant 0 : i32
    %c0_i32_1 = arith.constant 0 : i32
    %c0_i32_2 = arith.constant 0 : i32
    return %c0_i32, %c0_i32_0, %c0_i32_1 : i32, i32, i32
  }
  func.func @transform_12(%arg0: i32) -> (i32, i32, i32) {
    %c0_i32 = arith.constant 0 : i32
    %c0_i32_0 = arith.constant 0 : i32
    %c0_i32_1 = arith.constant 0 : i32
    %c0_i32_2 = arith.constant 0 : i32
    return %c0_i32, %c0_i32_0, %c0_i32_1 : i32, i32, i32
  }
  func.func @transform_13(%arg0: i32) -> (i32, i32, i32) {
    %c0_i32 = arith.constant 0 : i32
    %c0_i32_0 = arith.constant 0 : i32
    %c0_i32_1 = arith.constant 0 : i32
    %c0_i32_2 = arith.constant 0 : i32
    return %c0_i32, %c0_i32_0, %c0_i32_1 : i32, i32, i32
  }
  func.func @transform_14(%arg0: i32) -> (i32, i32, i32) {
    %c0_i32 = arith.constant 0 : i32
    %c0_i32_0 = arith.constant 0 : i32
    %c0_i32_1 = arith.constant 0 : i32
    %c0_i32_2 = arith.constant 0 : i32
    return %c0_i32, %c0_i32_0, %c0_i32_1 : i32, i32, i32
  }
  func.func @transform_15(%arg0: i32) -> (i32, i32, i32) {
    %c0_i32 = arith.constant 0 : i32
    %c0_i32_0 = arith.constant 0 : i32
    %c0_i32_1 = arith.constant 0 : i32
    %c0_i32_2 = arith.constant 0 : i32
    return %c0_i32, %c0_i32_0, %c0_i32_1 : i32, i32, i32
  }
  func.func @transform_16(%arg0: i32) -> (i32, i32, i32) {
    %c0_i32 = arith.constant 0 : i32
    %c0_i32_0 = arith.constant 0 : i32
    %c0_i32_1 = arith.constant 0 : i32
    %c0_i32_2 = arith.constant 0 : i32
    return %c0_i32, %c0_i32_0, %c0_i32_1 : i32, i32, i32
  }
  func.func @transform_17(%arg0: i32) -> (i32, i32, i32) {
    %c0_i32 = arith.constant 0 : i32
    %c0_i32_0 = arith.constant 0 : i32
    %c0_i32_1 = arith.constant 0 : i32
    %c0_i32_2 = arith.constant 0 : i32
    return %c0_i32, %c0_i32_0, %c0_i32_1 : i32, i32, i32
  }
  func.func @transform_18(%arg0: i32) -> (i32, i32, i32) {
    %c0_i32 = arith.constant 0 : i32
    %c0_i32_0 = arith.constant 0 : i32
    %c0_i32_1 = arith.constant 0 : i32
    %c0_i32_2 = arith.constant 0 : i32
    return %c0_i32, %c0_i32_0, %c0_i32_1 : i32, i32, i32
  }
  func.func @transform_19(%arg0: i32) -> (i32, i32, i32) {
    %c0_i32 = arith.constant 0 : i32
    %c0_i32_0 = arith.constant 0 : i32
    %c0_i32_1 = arith.constant 0 : i32
    %c0_i32_2 = arith.constant 0 : i32
    return %c0_i32, %c0_i32_0, %c0_i32_1 : i32, i32, i32
  }
  func.func @transform_20(%arg0: i32) -> (i32, i32, i32) {
    %c0_i32 = arith.constant 0 : i32
    %c0_i32_0 = arith.constant 0 : i32
    %c0_i32_1 = arith.constant 0 : i32
    %c0_i32_2 = arith.constant 0 : i32
    return %c0_i32, %c0_i32_0, %c0_i32_1 : i32, i32, i32
  }
  func.func @transform_21(%arg0: i32) -> (i32, i32, i32) {
    %c0_i32 = arith.constant 0 : i32
    %c0_i32_0 = arith.constant 0 : i32
    %c0_i32_1 = arith.constant 0 : i32
    %c0_i32_2 = arith.constant 0 : i32
    return %c0_i32, %c0_i32_0, %c0_i32_1 : i32, i32, i32
  }
  func.func @transform_22(%arg0: i32) -> (i32, i32, i32) {
    %c0_i32 = arith.constant 0 : i32
    %c0_i32_0 = arith.constant 0 : i32
    %c0_i32_1 = arith.constant 0 : i32
    %c0_i32_2 = arith.constant 0 : i32
    return %c0_i32, %c0_i32_0, %c0_i32_1 : i32, i32, i32
  }
  func.func @transform_23(%arg0: i32) -> (i32, i32) {
    %c0_i32 = arith.constant 0 : i32
    %c0_i32_0 = arith.constant 0 : i32
    %c0_i32_1 = arith.constant 0 : i32
    return %c0_i32, %c0_i32_0 : i32, i32
  }
  func.func @transform_24(%arg0: i32) -> (i32, i32) {
    %c0_i32 = arith.constant 0 : i32
    %c0_i32_0 = arith.constant 0 : i32
    %c0_i32_1 = arith.constant 0 : i32
    return %c0_i32, %c0_i32_0 : i32, i32
  }
  func.func @transform_25(%arg0: i32) -> (i32, i32, i32) {
    %c0_i32 = arith.constant 0 : i32
    %c0_i32_0 = arith.constant 0 : i32
    %c0_i32_1 = arith.constant 0 : i32
    return %arg0, %c0_i32, %c0_i32_0 : i32, i32, i32
  }
}

</mosaic_0001>

<bundles_post_ra>
// kernel: seeg_transformer_forward.1
= control target key start
LH: loop header
LB: loop body
LE: loop exit
PB: predicated region body
PF: predicated region fallthrough
CT: control target
= control target key end

     0   :  { %s10036_s0 = inlined_call_operand.hbm [shape: f32[2,32,37], index: 0, kind: input, shape index: {}]   ;;  %s10037_s1 = inlined_call_operand.vmem [shape: f32[32,128], index: 1, kind: input, shape index: {}]   ;;  %s10038_s2 = inlined_call_operand.hbm [shape: bf16[37,128], index: 2, kind: input, shape index: {}]   ;;  %s10039_s3 = inlined_call_operand.hbm [shape: f32[1,128], index: 3, kind: input, shape index: {}]   ;;  %s10040_s4 = inlined_call_operand.vmem [shape: f32[32,128], index: 4, kind: input, shape index: {}]   ;;  %s10041_s5 = inlined_call_operand.vmem [shape: f32[32,128], index: 5, kind: input, shape index: {}]   ;;  %s10042_s6 = inlined_call_operand.hbm [shape: f32[32,128], index: 6, kind: input, shape index: {}]   ;;  %s10043_s7 = inlined_call_operand.vmem [shape: bf16[128,128], index: 7, kind: input, shape index: {}]   ;;  %s10044_s8 = inlined_call_operand.hbm [shape: bf16[128,128], index: 8, kind: input, shape index: {}]   ;;  %s10045_s9 = inlined_call_operand.vmem [shape: f32[2,1,128], index: 9, kind: input, shape index: {}]   ;;  %s10046_s10 = inlined_call_operand.hbm [shape: f32[2,1,128], index: 10, kind: input, shape index: {}]   ;;  %s10047_s11 = inlined_call_operand.hbm [shape: bf16[2,128,256], index: 11, kind: input, shape index: {}]   ;;  %s10048_s12 = inlined_call_operand.hbm [shape: f32[2,1,256], index: 12, kind: input, shape index: {}]   ;;  %s10049_s13 = inlined_call_operand.hbm [shape: bf16[2,128,384], index: 13, kind: input, shape index: {}]   ;;  %s10050_s14 = inlined_call_operand.hbm [shape: f32[2,1,384], index: 14, kind: input, shape index: {}]   ;;  %s10051_s15 = inlined_call_operand.hbm [shape: bf16[2,128,128], index: 15, kind: input, shape index: {}]   ;;  %s10052_s16 = inlined_call_operand.hbm [shape: f32[2,1,128], index: 16, kind: input, shape index: {}]   ;;  %s10053_s17 = inlined_call_operand.hbm [shape: f32[2,1,128], index: 17, kind: input, shape index: {}]   ;;  %s10054_s18 = inlined_call_operand.hbm [shape: f32[2,1,128], index: 18, kind: input, shape index: {}]   ;;  %s10055_s19 = inlined_call_operand.hbm [shape: bf16[2,128,512], index: 19, kind: input, shape index: {}]   ;;  %s10056_s20 = inlined_call_operand.hbm [shape: f32[2,1,512], index: 20, kind: input, shape index: {}]   ;;  %s10057_s21 = inlined_call_operand.hbm [shape: bf16[2,512,128], index: 21, kind: input, shape index: {}]   ;;  %s10058_s22 = inlined_call_operand.hbm [shape: f32[2,1,128], index: 22, kind: input, shape index: {}]   ;;  %s10059_s23 = inlined_call_operand.hbm [shape: bf16[128,128], index: 23, kind: input, shape index: {}]   ;;  %s10060_s24 = inlined_call_operand.hbm [shape: f32[1,128], index: 24, kind: input, shape index: {}]   ;;  %s10061_s25 = inlined_call_operand.vmem [shape: f32[2,32,128], index: 25, kind: output, shape index: {}]  }
   0x1   :  { %10127 = sst [smem:[#allocation60_spill]] %s10036_s0 }
   0x2   :  { %10128 = sst [smem:[#allocation61_spill]] %s10037_s1 }
   0x3   :  { %10129 = sst [smem:[#allocation62_spill]] %s10038_s2 }
   0x4   :  { %10130 = sst [smem:[#allocation63_spill]] %s10039_s3 }
   0x5   :  { %10131 = sst [smem:[#allocation64_spill]] %s10040_s4 }
   0x6   :  { %10132 = sst [smem:[#allocation65_spill]] %s10041_s5 }
   0x7   :  { %10133 = sst [smem:[#allocation66_spill]] %s10042_s6 }
   0x8   :  { %10134 = sst [smem:[#allocation67_spill]] %s10043_s7 }
   0x9   :  { %10135 = sst [smem:[#allocation68_spill]] %s10044_s8 }
   0xa   :  { %10136 = sst [smem:[#allocation69_spill]] %s10045_s9 }
   0xb   :  { %10137 = sst [smem:[#allocation70_spill]] %s10046_s10 }
   0xc   :  { %10138 = sst [smem:[#allocation71_spill]] %s10047_s11 }
   0xd   :  { %10139 = sst [smem:[#allocation72_spill]] %s10048_s12 }
   0xe   :  { %10140 = sst [smem:[#allocation73_spill]] %s10050_s14 }
   0xf   :  { %10141 = sst [smem:[#allocation74_spill]] %s10052_s16 }
  0x10   :  { %10142 = sst [smem:[#allocation75_spill]] %s10054_s18 }
  0x11   :  { %10143 = sst [smem:[#allocation76_spill]] %s10056_s20 }
  0x12   :  { %10144 = sst [smem:[#allocation77_spill]] %s10057_s21 }
  0x13   :  { %10145 = sst [smem:[#allocation78_spill]] %s10059_s23 }
  0x14   :  { %10146 = sst [smem:[#allocation79_spill]] %s10060_s24 }
  0x15   :  { %10147 = sst [smem:[#allocation80_spill]] %s10061_s25 }
  0x16   :  { %30 = vsyncpa [#allocation3], 0 }
  0x17   :  { %32 = vsyncpa [#allocation3 + $0x1], 0 }
  0x18   :  { %33 = vsyncpa [#allocation5], 0 }
  0x19   :  { %34 = vsyncpa [#allocation8], 0 }
  0x1a   :  { %35 = vsyncpa [#allocation11], 0 }
  0x1b   :  { %36 = vsyncpa [#allocation14], 0 }
  0x1c   :  { %37 = vsyncpa [#allocation17], 0 }
  0x1d   :  { %38 = vsyncpa [#allocation20], 0 }
  0x1e   :  { %39 = vsyncpa [#allocation23], 0 }
  0x1f   :  { %40 = vsyncpa [#allocation26], 0 }
  0x20   :  { %41 = vsyncpa [#allocation29], 0 }
  0x21   :  { %42 = vsyncpa [#allocation32], 0  ;;  %s8155_s29 = smov 0   ;;  %s8157_s2 = smov 0  }
  0x22   :  { %s8159_s6 = smov 0   ;;  %s8161_s30 = smov 0  }
  0x23 LB: > { %10148 = sst [smem:[#allocation44_spill]] %s7973_s29  ;;  %s7987_s7 = smov [#allocation4]   ;;  %s7985_s30 = sphi %s8161_s30, %s8599_s30   ;;  %s7981_s6 = sphi %s8159_s6, %s10262_s6   ;;  %s7977_s2 = sphi %s8157_s2, %s10261_s2   ;;  %s7973_s29 = sphi %s8155_s29, %s10258_s29  }
  0x24   : > { %10149 = sst [smem:[#allocation45_spill]] %s7977_s2  ;;  %s624_s3 = sshll.u32 %s7987_s7, 4  ;;  %s8181_s3 = int_to_ptr.vmem [resolvable:$true] %s624_s3 }
  0x25   : > { %10150 = sst [smem:[#allocation46_spill]] %s7981_s6  ;;  %s8176_s26 = sadd.s32 4294967295, %s7985_s30  }
  0x26   : > { %10151 = sst [smem:[#allocation47_spill]] %s7985_s30  ;;  %p5792_p0 = scmp.ge.s32.totalorder %s7985_s30, 1 }
  0x27   : > { %10152 = sst [smem:[#allocation48_spill]] %s8176_s26  ;;  %p10082_p1 = scmp.eq.s32.totalorder %s8176_s26, 0 }
  0x28   : > { %p609_p2 = scmp.lt.s32.totalorder %s7985_s30, 3  ;;  %s7988_s8 = smov [#allocation7]  }
  0x29   : > { %s654_s27 = sshll.u32 %s7988_s8, 4  ;;  %s7989_s28 = smov [#allocation10]   ;;  %s8195_s27 = int_to_ptr.vmem [resolvable:$true] %s654_s27 }
  0x2a   : > { %p8183_p3 = pnand %p5792_p0, %p609_p2  ;;  %s8197_s9 = sshll.u32 %s7989_s28, 4  ;;  %s687_s9 = int_to_ptr.vmem [resolvable:$true] %s8197_s9 }
  0x2b   : > { %s10156_s7 = sld [smem:[#allocation62_spill]] }
  0x2c   : > { %s10153_s1 = scalar_select %p8183_p3, 1, 0 }
  0x2d   : > { %p6644_p4 = pneg %p8183_p3 }
  0x2e   : > { %10154 = sst [smem:[#allocation49_spill]] %s10153_s1 }
  0x2f   : > { %p8191_p5 = pnand %p6644_p4, %p10082_p1 }
  0x31   : > { %s7349_s25 = scalar_lea.hbm %s10156_s7, 320  ;;  %p8207_p7 = pneg %p8191_p5 }
  0x32   : > { %p7350_p6 = scmp.ne.s32.totalorder %s10156_s7, %s7349_s25  ;;  %p7356_p10 = scmp.lt.u32.totalorder %s7349_s25, %s10156_s7 }
  0x34   : > { %p7352_p8 = pnand %p8207_p7, %p7350_p6 }
  0x36   : > { %p7353_p9 = pneg %p7352_p8 }
  0x38   : > { %p7358_p11 = pnand %p7356_p10, %p7353_p9 }
  0x3a   : > { %7361 = shalt.err (!%p7358_p11)
}
  0x3b   : > { %s7362_s29 = scalar_lea.vmem %s8181_s3, 320  ;;  %p7370_p2 = scmp.lt.s32.totalorder %s8181_s3, %s8181_s3 }
  0x3c   : > { %p7363_p12 = scmp.ne.s32.totalorder %s8181_s3, %s7362_s29  ;;  %p7371_p4 = scmp.lt.s32.totalorder %s7362_s29, %s7362_s29 }
  0x3e   : > { %p7365_p13 = pnand %p7363_p12, %p8207_p7  ;;  %p7372_p6 = por %p7371_p4, %p7370_p2 }
  0x40   : > { %p7366_p0 = pneg %p7365_p13 }
  0x42   : > { %p7373_p8 = pnand %p7372_p6, %p7366_p0 }
  0x44   : > { %7376 = shalt.err (!%p7373_p8)
}
  0x45   : > { %s10088_s1 = smov 64   ;;  %s10090_s25 = smov 4  }
  0x46   : > { %6647 = dma.hbm_to_vmem [thread:$0]  (!%p8191_p5), %s10156_s7, 320, %s8181_s3, [#allocation5], %s10088_s1, %s10088_s1, %s10090_s25  }
  0x47   : > { %s10158_s2 = sld [smem:[#allocation66_spill]] }
  0x4d   : > { %s10159_s24 = smov %s10158_s2  ;;  %s7377_s29 = scalar_lea.hbm %s10158_s2, 512 }
  0x4e   : > { %p7378_p9 = scmp.ne.s32.totalorder %s10159_s24, %s7377_s29  ;;  %p7384_p12 = scmp.lt.u32.totalorder %s7377_s29, %s10159_s24 }
  0x50   : > { %p7380_p10 = pnand %p7378_p9, %p8207_p7 }
  0x52   : > { %p7381_p11 = pneg %p7380_p10 }
  0x54   : > { %p7386_p13 = pnand %p7384_p12, %p7381_p11 }
  0x56   : > { %7389 = shalt.err (!%p7386_p13)
}
  0x57   : > { %s7390_s3 = scalar_lea.vmem %s8195_s27, 512  ;;  %p7398_p6 = scmp.lt.s32.totalorder %s8195_s27, %s8195_s27 }
  0x58   : > { %p7391_p0 = scmp.ne.s32.totalorder %s8195_s27, %s7390_s3  ;;  %p7399_p8 = scmp.lt.s32.totalorder %s7390_s3, %s7390_s3 }
  0x5a   : > { %p7393_p2 = pnand %p7391_p0, %p8207_p7  ;;  %p7400_p9 = por %p7399_p8, %p7398_p6 }
  0x5c   : > { %p7394_p4 = pneg %p7393_p2 }
  0x5e   : > { %p7401_p10 = pnand %p7400_p9, %p7394_p4 }
  0x60   : > { %7404 = shalt.err (!%p7401_p10)
}
  0x61   : > { %s10084_s2 = smov 128   ;;  %s10086_s21 = smov 8  }
  0x62   : > { %6653 = dma.hbm_to_vmem [thread:$0]  (!%p8191_p5), %s10159_s24, 512, %s8195_s27, [#allocation8], %s10084_s2, %s10084_s2, %s10086_s21  }
  0x63   : > { %s10160_s10 = sld [smem:[#allocation70_spill]] }
  0x69   : > { %s7405_s5 = scalar_lea.hbm %s10160_s10, 32 }
  0x6a   : > { %p7406_p11 = scmp.ne.s32.totalorder %s10160_s10, %s7405_s5  ;;  %p7412_p0 = scmp.lt.u32.totalorder %s7405_s5, %s10160_s10 }
  0x6c   : > { %p7408_p12 = pnand %p7406_p11, %p8207_p7 }
  0x6e   : > { %p7409_p13 = pneg %p7408_p12 }
  0x70   : > { %p7414_p2 = pnand %p7412_p0, %p7409_p13 }
  0x72   : > { %7417 = shalt.err (!%p7414_p2)
}
  0x73   : > { %s7418_s23 = scalar_lea.vmem %s687_s9, 32  ;;  %p7426_p9 = scmp.lt.s32.totalorder %s687_s9, %s687_s9 }
  0x74   : > { %p7419_p4 = scmp.ne.s32.totalorder %s687_s9, %s7418_s23  ;;  %p7427_p10 = scmp.lt.s32.totalorder %s7418_s23, %s7418_s23 }
  0x76   : > { %p7421_p6 = pnand %p7419_p4, %p8207_p7  ;;  %p7428_p1 = por %p7427_p10, %p7426_p9 }
  0x78   : > { %p7422_p8 = pneg %p7421_p6 }
  0x7a   : > { %p7429_p3 = pnand %p7428_p1, %p7422_p8 }
  0x7c   : > { %7432 = shalt.err (!%p7429_p3)
}
  0x7d   : > { %s10092_s27 = smov 16   ;;  %s10094_s6 = smov 1  }
  0x7e   : > { %6659 = dma.hbm_to_vmem [thread:$0]  (!%p8191_p5), %s10160_s10, 32, %s687_s9, [#allocation11], %s10092_s27, %s10092_s27, %s10094_s6  }
  0x7f   : > { %s7996_s5 = smov [#allocation13]   ;;  %s10161_s12 = sld [smem:[#allocation72_spill]] }
  0x80   : > { %s712_s0 = sshll.u32 %s7996_s5, 4  ;;  %s713_s0 = int_to_ptr.vmem [resolvable:$true] %s712_s0 }
  0x85   : > { %s7433_s3 = scalar_lea.hbm %s10161_s12, 64 }
  0x86   : > { %p7434_p1 = scmp.ne.s32.totalorder %s10161_s12, %s7433_s3  ;;  %p7440_p12 = scmp.lt.u32.totalorder %s7433_s3, %s10161_s12 }
  0x88   : > { %p7436_p3 = pnand %p7434_p1, %p8207_p7 }
  0x8a   : > { %p7437_p11 = pneg %p7436_p3 }
  0x8c   : > { %p7442_p13 = pnand %p7440_p12, %p7437_p11 }
  0x8e   : > { %7445 = shalt.err (!%p7442_p13)
}
  0x8f   : > { %s7446_s9 = scalar_lea.vmem %s713_s0, 64  ;;  %p7454_p6 = scmp.lt.s32.totalorder %s713_s0, %s713_s0 }
  0x90   : > { %p7447_p0 = scmp.ne.s32.totalorder %s713_s0, %s7446_s9  ;;  %p7455_p8 = scmp.lt.s32.totalorder %s7446_s9, %s7446_s9 }
  0x92   : > { %p7449_p2 = pnand %p7447_p0, %p8207_p7  ;;  %p7456_p9 = por %p7455_p8, %p7454_p6 }
  0x94   : > { %p7450_p4 = pneg %p7449_p2 }
  0x96   : > { %p7457_p10 = pnand %p7456_p9, %p7450_p4 }
  0x98   : > { %7460 = shalt.err (!%p7457_p10)
}
  0x99   : > { %s7997_s2 = smov 32   ;;  %s7998_s30 = smov 2  }
  0x9a   : > { %6665 = dma.hbm_to_vmem [thread:$0]  (!%p8191_p5), %s10161_s12, 64, %s713_s0, [#allocation14], %s7997_s2, %s7997_s2, %s7998_s30  }
  0x9b   : > { %s7999_s26 = smov [#allocation16]   ;;  %s10162_s14 = sld [smem:[#allocation73_spill]] }
  0x9c   : > { %s738_s5 = sshll.u32 %s7999_s26, 4  ;;  %s739_s5 = int_to_ptr.vmem [resolvable:$true] %s738_s5 }
  0xa1   : > { %s7461_s3 = scalar_lea.hbm %s10162_s14, 96 }
  0xa2   : > { %p7462_p1 = scmp.ne.s32.totalorder %s10162_s14, %s7461_s3  ;;  %p7468_p12 = scmp.lt.u32.totalorder %s7461_s3, %s10162_s14 }
  0xa4   : > { %p7464_p3 = pnand %p7462_p1, %p8207_p7 }
  0xa6   : > { %p7465_p11 = pneg %p7464_p3 }
  0xa8   : > { %p7470_p13 = pnand %p7468_p12, %p7465_p11 }
  0xaa   : > { %7473 = shalt.err (!%p7470_p13)
}
  0xab   : > { %s7474_s0 = scalar_lea.vmem %s739_s5, 96  ;;  %p7482_p6 = scmp.lt.s32.totalorder %s739_s5, %s739_s5 }
  0xac   : > { %p7475_p0 = scmp.ne.s32.totalorder %s739_s5, %s7474_s0  ;;  %p7483_p8 = scmp.lt.s32.totalorder %s7474_s0, %s7474_s0 }
  0xae   : > { %p7477_p2 = pnand %p7475_p0, %p8207_p7  ;;  %p7484_p9 = por %p7483_p8, %p7482_p6 }
  0xb0   : > { %p7478_p4 = pneg %p7477_p2 }
  0xb2   : > { %p7485_p10 = pnand %p7484_p9, %p7478_p4 }
  0xb4   : > { %7488 = shalt.err (!%p7485_p10)
}
  0xb5   : > { %s8000_s2 = smov 48   ;;  %s8001_s30 = smov 3  }
  0xb6   : > { %6671 = dma.hbm_to_vmem [thread:$0]  (!%p8191_p5), %s10162_s14, 96, %s739_s5, [#allocation17], %s8000_s2, %s8000_s2, %s8001_s30  }
  0xb7   : > { %s8002_s1 = smov [#allocation19]   ;;  %s8003_s26 = smov [#allocation22]  }
  0xb8   : > { %s764_s21 = sshll.u32 %s8002_s1, 4  ;;  %s790_s28 = sshll.u32 %s8003_s26, 4  ;;  %s765_s21 = int_to_ptr.vmem [resolvable:$true] %s764_s21  ;;  %s791_s28 = int_to_ptr.vmem [resolvable:$true] %s790_s28 }
  0xb9   : > { %s10163_s16 = sld [smem:[#allocation74_spill]] }
  0xbf   : > { %s7489_s23 = scalar_lea.hbm %s10163_s16, 32 }
  0xc0   : > { %p7490_p1 = scmp.ne.s32.totalorder %s10163_s16, %s7489_s23  ;;  %p7496_p12 = scmp.lt.u32.totalorder %s7489_s23, %s10163_s16 }
  0xc2   : > { %p7492_p3 = pnand %p7490_p1, %p8207_p7 }
  0xc4   : > { %p7493_p11 = pneg %p7492_p3 }
  0xc6   : > { %p7498_p13 = pnand %p7496_p12, %p7493_p11 }
  0xc8   : > { %7501 = shalt.err (!%p7498_p13)
}
  0xc9   : > { %s7502_s5 = scalar_lea.vmem %s765_s21, 32  ;;  %p7510_p6 = scmp.lt.s32.totalorder %s765_s21, %s765_s21 }
  0xca   : > { %p7503_p0 = scmp.ne.s32.totalorder %s765_s21, %s7502_s5  ;;  %p7511_p8 = scmp.lt.s32.totalorder %s7502_s5, %s7502_s5 }
  0xcc   : > { %p7505_p2 = pnand %p7503_p0, %p8207_p7  ;;  %p7512_p9 = por %p7511_p8, %p7510_p6 }
  0xce   : > { %p7506_p4 = pneg %p7505_p2 }
  0xd0   : > { %p7513_p10 = pnand %p7512_p9, %p7506_p4 }
  0xd2   : > { %7516 = shalt.err (!%p7513_p10)
}
  0xd3   : > { %s10164_s2 = smov 1   ;;  %s10165_s30 = smov 16  }
  0xd4   : > { %6677 = dma.hbm_to_vmem [thread:$0]  (!%p8191_p5), %s10163_s16, 32, %s765_s21, [#allocation20], %s10165_s30, %s10165_s30, %s10164_s2  }
  0xd5   : > { %s10166_s18 = sld [smem:[#allocation75_spill]] }
  0xdb   : > { %s7517_s1 = scalar_lea.hbm %s10166_s18, 32 }
  0xdc   : > { %p7518_p1 = scmp.ne.s32.totalorder %s10166_s18, %s7517_s1  ;;  %p7524_p12 = scmp.lt.u32.totalorder %s7517_s1, %s10166_s18 }
  0xde   : > { %p7520_p3 = pnand %p7518_p1, %p8207_p7 }
  0xe0   : > { %p7521_p11 = pneg %p7520_p3 }
  0xe2   : > { %p7526_p13 = pnand %p7524_p12, %p7521_p11 }
  0xe4   : > { %7529 = shalt.err (!%p7526_p13)
}
  0xe5   : > { %s7530_s9 = scalar_lea.vmem %s791_s28, 32  ;;  %p7538_p6 = scmp.lt.s32.totalorder %s791_s28, %s791_s28 }
  0xe6   : > { %p7531_p0 = scmp.ne.s32.totalorder %s791_s28, %s7530_s9  ;;  %p7539_p8 = scmp.lt.s32.totalorder %s7530_s9, %s7530_s9 }
  0xe8   : > { %p7533_p2 = pnand %p7531_p0, %p8207_p7  ;;  %p7540_p9 = por %p7539_p8, %p7538_p6 }
  0xea   : > { %p7534_p4 = pneg %p7533_p2 }
  0xec   : > { %p7541_p10 = pnand %p7540_p9, %p7534_p4 }
  0xee   : > { %7544 = shalt.err (!%p7541_p10)
}
  0xef   : > { %6683 = dma.hbm_to_vmem [thread:$0]  (!%p8191_p5), %s10166_s18, 32, %s791_s28, [#allocation23], %s10165_s30, %s10165_s30, %s10164_s2  }
  0xf0   : > { %s8004_s5 = smov [#allocation25]   ;;  %s8005_s6 = smov [#allocation28]  }
  0xf1   : > { %s816_s7 = sshll.u32 %s8004_s5, 4  ;;  %s842_s25 = sshll.u32 %s8005_s6, 4  ;;  %s817_s7 = int_to_ptr.vmem [resolvable:$true] %s816_s7  ;;  %s843_s25 = int_to_ptr.vmem [resolvable:$true] %s842_s25 }
  0xf2   : > { %s10167_s20 = sld [smem:[#allocation76_spill]] }
  0xf8   : > { %s7545_s26 = scalar_lea.hbm %s10167_s20, 128 }
  0xf9   : > { %p7546_p1 = scmp.ne.s32.totalorder %s10167_s20, %s7545_s26  ;;  %p7552_p12 = scmp.lt.u32.totalorder %s7545_s26, %s10167_s20 }
  0xfb   : > { %p7548_p3 = pnand %p7546_p1, %p8207_p7 }
  0xfd   : > { %p7549_p11 = pneg %p7548_p3 }
  0xff   : > { %p7554_p13 = pnand %p7552_p12, %p7549_p11 }
 0x101   : > { %7557 = shalt.err (!%p7554_p13)
}
 0x102   : > { %s7558_s28 = scalar_lea.vmem %s817_s7, 128  ;;  %p7566_p6 = scmp.lt.s32.totalorder %s817_s7, %s817_s7 }
 0x103   : > { %p7559_p0 = scmp.ne.s32.totalorder %s817_s7, %s7558_s28  ;;  %p7567_p8 = scmp.lt.s32.totalorder %s7558_s28, %s7558_s28 }
 0x105   : > { %p7561_p2 = pnand %p7559_p0, %p8207_p7  ;;  %p7568_p9 = por %p7567_p8, %p7566_p6 }
 0x107   : > { %p7562_p4 = pneg %p7561_p2 }
 0x109   : > { %p7569_p10 = pnand %p7568_p9, %p7562_p4 }
 0x10b   : > { %7572 = shalt.err (!%p7569_p10)
}
 0x10c   : > { %s10168_s21 = smov 4   ;;  %s10169_s0 = smov 64  }
 0x10d   : > { %6689 = dma.hbm_to_vmem [thread:$0]  (!%p8191_p5), %s10167_s20, 128, %s817_s7, [#allocation26], %s10169_s0, %s10169_s0, %s10168_s21  }
 0x10e   : > { %s7573_s26 = scalar_lea.hbm %s10058_s22, 32 }
 0x10f   : > { %p7574_p1 = scmp.ne.s32.totalorder %s10058_s22, %s7573_s26  ;;  %p7580_p12 = scmp.lt.u32.totalorder %s7573_s26, %s10058_s22 }
 0x111   : > { %p7576_p3 = pnand %p7574_p1, %p8207_p7 }
 0x113   : > { %p7577_p11 = pneg %p7576_p3 }
 0x115   : > { %p7582_p13 = pnand %p7580_p12, %p7577_p11 }
 0x117   : > { %7585 = shalt.err (!%p7582_p13)
}
 0x118   : > { %s7586_s28 = scalar_lea.vmem %s843_s25, 32  ;;  %p7594_p6 = scmp.lt.s32.totalorder %s843_s25, %s843_s25 }
 0x119   : > { %p7587_p0 = scmp.ne.s32.totalorder %s843_s25, %s7586_s28  ;;  %p7595_p8 = scmp.lt.s32.totalorder %s7586_s28, %s7586_s28 }
 0x11b   : > { %p7589_p2 = pnand %p7587_p0, %p8207_p7  ;;  %p7596_p9 = por %p7595_p8, %p7594_p6 }
 0x11d   : > { %p7590_p4 = pneg %p7589_p2 }
 0x11f   : > { %p7597_p10 = pnand %p7596_p9, %p7590_p4 }
 0x121   : > { %7600 = shalt.err (!%p7597_p10)
}
 0x122   : > { %6695 = dma.hbm_to_vmem [thread:$0]  (!%p8191_p5), %s10058_s22, 32, %s843_s25, [#allocation29], %s10165_s30, %s10165_s30, %s10164_s2  }
 0x123   : > { %s8006_s6 = smov [#allocation6]   ;;  %s8007_s1 = smov [#allocation9]  }
 0x124   : > { %s638_s27 = sshll.u32 %s8006_s6, 4  ;;  %s670_s26 = sshll.u32 %s8007_s1, 4  ;;  %s639_s27 = int_to_ptr.vmem [resolvable:$true] %s638_s27  ;;  %s671_s26 = int_to_ptr.vmem [resolvable:$true] %s670_s26 }
 0x125   : > { %s10170_s23 = sld [smem:[#allocation63_spill]] }
 0x12b   : > { %s7601_s9 = scalar_lea.hbm %s10170_s23, 16 }
 0x12c   : > { %p7602_p1 = scmp.ne.s32.totalorder %s10170_s23, %s7601_s9  ;;  %p7608_p12 = scmp.lt.u32.totalorder %s7601_s9, %s10170_s23 }
 0x12e   : > { %p7604_p3 = pnand %p7602_p1, %p8207_p7 }
 0x130   : > { %p7605_p11 = pneg %p7604_p3 }
 0x132   : > { %p7610_p13 = pnand %p7608_p12, %p7605_p11 }
 0x134   : > { %7613 = shalt.err (!%p7610_p13)
}
 0x135   : > { %s7614_s25 = scalar_lea.vmem %s639_s27, 16  ;;  %s7621_s5 = scalar_lea.vmem %s639_s27, 32 }
 0x136   : > { %p7615_p0 = scmp.ne.s32.totalorder %s639_s27, %s7614_s25  ;;  %p7622_p6 = scmp.lt.s32.totalorder %s639_s27, %s639_s27 }
 0x137   : > { %p7623_p8 = scmp.lt.s32.totalorder %s7621_s5, %s7614_s25 }
 0x138   : > { %p7617_p2 = pnand %p7615_p0, %p8207_p7 }
 0x139   : > { %p7624_p9 = por %p7623_p8, %p7622_p6 }
 0x13a   : > { %p7618_p4 = pneg %p7617_p2 }
 0x13c   : > { %p7625_p10 = pnand %p7624_p9, %p7618_p4 }
 0x13e   : > { %7628 = shalt.err (!%p7625_p10)
}
 0x13f   : > { %6650 = dma.hbm_to_vmem [thread:$0]  (!%p8191_p5), %s10170_s23, 16, %s639_s27, [#allocation5]  }
 0x140   : > { %s10171_s29 = sld [smem:[#allocation68_spill]] }
 0x146   : > { %s10172_s3 = smov %s10171_s29  ;;  %s7629_s9 = scalar_lea.hbm %s10171_s29, 1024 }
 0x147   : > { %p7630_p1 = scmp.ne.s32.totalorder %s10172_s3, %s7629_s9  ;;  %p7636_p12 = scmp.lt.u32.totalorder %s7629_s9, %s10172_s3 }
 0x149   : > { %p7632_p3 = pnand %p7630_p1, %p8207_p7 }
 0x14b   : > { %p7633_p11 = pneg %p7632_p3 }
 0x14d   : > { %p7638_p13 = pnand %p7636_p12, %p7633_p11 }
 0x14f   : > { %7641 = shalt.err (!%p7638_p13)
}
 0x150   : > { %s7642_s10 = scalar_lea.vmem %s671_s26, 1024  ;;  %p7650_p6 = scmp.lt.s32.totalorder %s671_s26, %s671_s26 }
 0x151   : > { %p7643_p0 = scmp.ne.s32.totalorder %s671_s26, %s7642_s10  ;;  %p7651_p8 = scmp.lt.s32.totalorder %s7642_s10, %s7642_s10 }
 0x153   : > { %p7645_p2 = pnand %p7643_p0, %p8207_p7  ;;  %p7652_p9 = por %p7651_p8, %p7650_p6 }
 0x155   : > { %p7646_p4 = pneg %p7645_p2 }
 0x157   : > { %p7653_p10 = pnand %p7652_p9, %p7646_p4 }
 0x159   : > { %7656 = shalt.err (!%p7653_p10)
}
 0x15a   : > { %6656 = dma.hbm_to_vmem [thread:$0]  (!%p8191_p5), %s10172_s3, 1024, %s671_s26, [#allocation8], %s10169_s0, %s10169_s0, %s10168_s21  }
 0x15b   : > { %s8008_s12 = smov [#allocation12]   ;;  %s8009_s29 = smov [#allocation15]  }
 0x15c   : > { %s699_s1 = sshll.u32 %s8008_s12, 4  ;;  %s725_s9 = sshll.u32 %s8009_s29, 4  ;;  %s700_s1 = int_to_ptr.vmem [resolvable:$true] %s699_s1  ;;  %s726_s9 = int_to_ptr.vmem [resolvable:$true] %s725_s9 }
 0x15d   : > { %s10173_s11 = sld [smem:[#allocation71_spill]] }
 0x163   : > { %s7657_s25 = scalar_lea.hbm %s10173_s11, 4096 }
 0x164   : > { %p7658_p1 = scmp.ne.s32.totalorder %s10173_s11, %s7657_s25  ;;  %p7664_p12 = scmp.lt.u32.totalorder %s7657_s25, %s10173_s11 }
 0x166   : > { %p7660_p3 = pnand %p7658_p1, %p8207_p7 }
 0x168   : > { %p7661_p11 = pneg %p7660_p3 }
 0x16a   : > { %p7666_p13 = pnand %p7664_p12, %p7661_p11 }
 0x16c   : > { %7669 = shalt.err (!%p7666_p13)
}
 0x16d   : > { %s7670_s26 = scalar_lea.vmem %s700_s1, 4096  ;;  %p7678_p6 = scmp.lt.s32.totalorder %s700_s1, %s700_s1 }
 0x16e   : > { %p7671_p0 = scmp.ne.s32.totalorder %s700_s1, %s7670_s26  ;;  %p7679_p8 = scmp.lt.s32.totalorder %s7670_s26, %s7670_s26 }
 0x170   : > { %p7673_p2 = pnand %p7671_p0, %p8207_p7  ;;  %p7680_p9 = por %p7679_p8, %p7678_p6 }
 0x172   : > { %p7674_p4 = pneg %p7673_p2 }
 0x174   : > { %p7681_p10 = pnand %p7680_p9, %p7674_p4 }
 0x176   : > { %7684 = shalt.err (!%p7681_p10)
}
 0x177   : > { %s10174_s6 = smov 8   ;;  %s10175_s12 = smov 128  }
 0x178   : > { %6662 = dma.hbm_to_vmem [thread:$0]  (!%p8191_p5), %s10173_s11, 4096, %s700_s1, [#allocation11], %s10175_s12, %s10175_s12, %s10174_s6  }
 0x179   : > { %s7685_s25 = scalar_lea.hbm %s10049_s13, 6144 }
 0x17a   : > { %p7686_p1 = scmp.ne.s32.totalorder %s10049_s13, %s7685_s25  ;;  %p7692_p12 = scmp.lt.u32.totalorder %s7685_s25, %s10049_s13 }
 0x17c   : > { %p7688_p3 = pnand %p7686_p1, %p8207_p7 }
 0x17e   : > { %p7689_p11 = pneg %p7688_p3 }
 0x180   : > { %p7694_p13 = pnand %p7692_p12, %p7689_p11 }
 0x182   : > { %7697 = shalt.err (!%p7694_p13)
}
 0x183   : > { %s7698_s14 = scalar_lea.vmem %s726_s9, 6144  ;;  %p7706_p6 = scmp.lt.s32.totalorder %s726_s9, %s726_s9 }
 0x184   : > { %p7699_p0 = scmp.ne.s32.totalorder %s726_s9, %s7698_s14  ;;  %p7707_p8 = scmp.lt.s32.totalorder %s7698_s14, %s7698_s14 }
 0x186   : > { %p7701_p2 = pnand %p7699_p0, %p8207_p7  ;;  %p7708_p9 = por %p7707_p8, %p7706_p6 }
 0x188   : > { %p7702_p4 = pneg %p7701_p2 }
 0x18a   : > { %p7709_p10 = pnand %p7708_p9, %p7702_p4 }
 0x18c   : > { %7712 = shalt.err (!%p7709_p10)
}
 0x18d   : > { %s8010_s1 = smov 192   ;;  %s8011_s29 = smov 12  }
 0x18e   : > { %6668 = dma.hbm_to_vmem [thread:$0]  (!%p8191_p5), %s10049_s13, 6144, %s726_s9, [#allocation14], %s8010_s1, %s8010_s1, %s8011_s29  }
 0x18f   : > { %s8012_s25 = smov [#allocation18]   ;;  %s8013_s10 = smov [#allocation21]  }
 0x190   : > { %s751_s5 = sshll.u32 %s8012_s25, 4  ;;  %s777_s27 = sshll.u32 %s8013_s10, 4  ;;  %s752_s5 = int_to_ptr.vmem [resolvable:$true] %s751_s5  ;;  %s778_s27 = int_to_ptr.vmem [resolvable:$true] %s777_s27 }
 0x191   : > { %s7713_s14 = scalar_lea.hbm %s10051_s15, 2048 }
 0x192   : > { %p7714_p1 = scmp.ne.s32.totalorder %s10051_s15, %s7713_s14  ;;  %p7720_p12 = scmp.lt.u32.totalorder %s7713_s14, %s10051_s15 }
 0x194   : > { %p7716_p3 = pnand %p7714_p1, %p8207_p7 }
 0x196   : > { %p7717_p11 = pneg %p7716_p3 }
 0x198   : > { %p7722_p13 = pnand %p7720_p12, %p7717_p11 }
 0x19a   : > { %7725 = shalt.err (!%p7722_p13)
}
 0x19b   : > { %s7726_s9 = scalar_lea.vmem %s752_s5, 2048  ;;  %p7734_p6 = scmp.lt.s32.totalorder %s752_s5, %s752_s5 }
 0x19c   : > { %p7727_p0 = scmp.ne.s32.totalorder %s752_s5, %s7726_s9  ;;  %p7735_p8 = scmp.lt.s32.totalorder %s7726_s9, %s7726_s9 }
 0x19e   : > { %p7729_p2 = pnand %p7727_p0, %p8207_p7  ;;  %p7736_p9 = por %p7735_p8, %p7734_p6 }
 0x1a0   : > { %p7730_p4 = pneg %p7729_p2 }
 0x1a2   : > { %p7737_p10 = pnand %p7736_p9, %p7730_p4 }
 0x1a4   : > { %7740 = shalt.err (!%p7737_p10)
}
 0x1a5   : > { %6674 = dma.hbm_to_vmem [thread:$0]  (!%p8191_p5), %s10051_s15, 2048, %s752_s5, [#allocation17], %s10169_s0, %s10169_s0, %s10168_s21  }
 0x1a6   : > { %s7741_s3 = scalar_lea.hbm %s10053_s17, 32 }
 0x1a7   : > { %p7742_p1 = scmp.ne.s32.totalorder %s10053_s17, %s7741_s3  ;;  %p7748_p12 = scmp.lt.u32.totalorder %s7741_s3, %s10053_s17 }
 0x1a9   : > { %p7744_p3 = pnand %p7742_p1, %p8207_p7 }
 0x1ab   : > { %p7745_p11 = pneg %p7744_p3 }
 0x1ad   : > { %p7750_p13 = pnand %p7748_p12, %p7745_p11 }
 0x1af   : > { %7753 = shalt.err (!%p7750_p13)
}
 0x1b0   : > { %s7754_s25 = scalar_lea.vmem %s778_s27, 32  ;;  %p7762_p6 = scmp.lt.s32.totalorder %s778_s27, %s778_s27 }
 0x1b1   : > { %p7755_p0 = scmp.ne.s32.totalorder %s778_s27, %s7754_s25  ;;  %p7763_p8 = scmp.lt.s32.totalorder %s7754_s25, %s7754_s25 }
 0x1b3   : > { %p7757_p2 = pnand %p7755_p0, %p8207_p7  ;;  %p7764_p9 = por %p7763_p8, %p7762_p6 }
 0x1b5   : > { %p7758_p4 = pneg %p7757_p2 }
 0x1b7   : > { %p7765_p10 = pnand %p7764_p9, %p7758_p4 }
 0x1b9   : > { %7768 = shalt.err (!%p7765_p10)
}
 0x1ba   : > { %6680 = dma.hbm_to_vmem [thread:$0]  (!%p8191_p5), %s10053_s17, 32, %s778_s27, [#allocation20], %s10165_s30, %s10165_s30, %s10164_s2  }
 0x1bb   : > { %s8014_s26 = smov [#allocation24]   ;;  %s7769_s16 = scalar_lea.hbm %s10055_s19, 8192 }
 0x1bc   : > { %s803_s14 = sshll.u32 %s8014_s26, 4  ;;  %p7770_p1 = scmp.ne.s32.totalorder %s10055_s19, %s7769_s16  ;;  %s804_s14 = int_to_ptr.vmem [resolvable:$true] %s803_s14 }
 0x1bd   : > { %p7776_p12 = scmp.lt.u32.totalorder %s7769_s16, %s10055_s19 }
 0x1be   : > { %p7772_p3 = pnand %p7770_p1, %p8207_p7 }
 0x1c0   : > { %p7773_p11 = pneg %p7772_p3 }
 0x1c2   : > { %p7778_p13 = pnand %p7776_p12, %p7773_p11 }
 0x1c4   : > { %7781 = shalt.err (!%p7778_p13)
}
 0x1c5   : > { %s7782_s2 = scalar_lea.vmem %s804_s14, 8192  ;;  %p7790_p6 = scmp.lt.s32.totalorder %s804_s14, %s804_s14 }
 0x1c6   : > { %p7783_p0 = scmp.ne.s32.totalorder %s804_s14, %s7782_s2  ;;  %p7791_p8 = scmp.lt.s32.totalorder %s7782_s2, %s7782_s2 }
 0x1c8   : > { %p7785_p2 = pnand %p7783_p0, %p8207_p7  ;;  %p7792_p9 = por %p7791_p8, %p7790_p6 }
 0x1ca   : > { %p7786_p4 = pneg %p7785_p2 }
 0x1cc   : > { %p7793_p10 = pnand %p7792_p9, %p7786_p4 }
 0x1ce   : > { %7796 = shalt.err (!%p7793_p10)
}
 0x1cf   : > { %s8015_s27 = smov 256   ;;  %s8016_s7 = smov [#allocation27]  }
 0x1d0   : > { %6686 = dma.hbm_to_vmem [thread:$0]  (!%p8191_p5), %s10055_s19, 8192, %s804_s14, [#allocation23], %s8015_s27, %s8015_s27, %s10165_s30  }
 0x1d1   : > { %s829_s25 = sshll.u32 %s8016_s7, 4  ;;  %s8017_s5 = smov [#allocation30]   ;;  %s830_s25 = int_to_ptr.vmem [resolvable:$true] %s829_s25 }
 0x1d2   : > { %s855_s10 = sshll.u32 %s8017_s5, 4  ;;  %s10176_s11 = sld [smem:[#allocation77_spill]]  ;;  %s856_s10 = int_to_ptr.vmem [resolvable:$true] %s855_s10 }
 0x1d8   : > { %s7797_s16 = scalar_lea.hbm %s10176_s11, 8192 }
 0x1d9   : > { %p7798_p1 = scmp.ne.s32.totalorder %s10176_s11, %s7797_s16  ;;  %p7804_p12 = scmp.lt.u32.totalorder %s7797_s16, %s10176_s11 }
 0x1db   : > { %p7800_p3 = pnand %p7798_p1, %p8207_p7 }
 0x1dd   : > { %p7801_p11 = pneg %p7800_p3 }
 0x1df   : > { %p7806_p13 = pnand %p7804_p12, %p7801_p11 }
 0x1e1   : > { %7809 = shalt.err (!%p7806_p13)
}
 0x1e2   : > { %s7810_s30 = scalar_lea.vmem %s830_s25, 8192  ;;  %p7818_p6 = scmp.lt.s32.totalorder %s830_s25, %s830_s25 }
 0x1e3   : > { %p7811_p0 = scmp.ne.s32.totalorder %s830_s25, %s7810_s30  ;;  %p7819_p8 = scmp.lt.s32.totalorder %s7810_s30, %s7810_s30 }
 0x1e5   : > { %p7813_p2 = pnand %p7811_p0, %p8207_p7  ;;  %p7820_p9 = por %p7819_p8, %p7818_p6 }
 0x1e7   : > { %p7814_p4 = pneg %p7813_p2 }
 0x1e9   : > { %p7821_p10 = pnand %p7820_p9, %p7814_p4 }
 0x1eb   : > { %7824 = shalt.err (!%p7821_p10)
}
 0x1ec   : > { %6692 = dma.hbm_to_vmem [thread:$0]  (!%p8191_p5), %s10176_s11, 8192, %s830_s25, [#allocation26], %s10169_s0, %s10169_s0, %s10168_s21  }
 0x1ed   : > { %s10177_s28 = sld [smem:[#allocation78_spill]] }
 0x1f3   : > { %s7825_s7 = scalar_lea.hbm %s10177_s28, 1024 }
 0x1f4   : > { %p7826_p1 = scmp.ne.s32.totalorder %s10177_s28, %s7825_s7  ;;  %p7832_p12 = scmp.lt.u32.totalorder %s7825_s7, %s10177_s28 }
 0x1f6   : > { %p7828_p3 = pnand %p7826_p1, %p8207_p7 }
 0x1f8   : > { %p7829_p11 = pneg %p7828_p3 }
 0x1fa   : > { %p7834_p13 = pnand %p7832_p12, %p7829_p11 }
 0x1fc   : > { %7837 = shalt.err (!%p7834_p13)
}
 0x1fd   : > { %s7838_s18 = scalar_lea.vmem %s856_s10, 1024  ;;  %p7846_p6 = scmp.lt.s32.totalorder %s856_s10, %s856_s10 }
 0x1fe   : > { %p7839_p0 = scmp.ne.s32.totalorder %s856_s10, %s7838_s18  ;;  %p7847_p8 = scmp.lt.s32.totalorder %s7838_s18, %s7838_s18 }
 0x200   : > { %p7841_p2 = pnand %p7839_p0, %p8207_p7  ;;  %p7848_p9 = por %p7847_p8, %p7846_p6 }
 0x202   : > { %p7842_p4 = pneg %p7841_p2 }
 0x204   : > { %p7849_p10 = pnand %p7848_p9, %p7842_p4 }
 0x206   : > { %7852 = shalt.err (!%p7849_p10)
}
 0x207   : > { %6698 = dma.hbm_to_vmem [thread:$0]  (!%p8191_p5), %s10177_s28, 1024, %s856_s10, [#allocation29], %s10169_s0, %s10169_s0, %s10168_s21  }
 0x208   : > { %s8018_s3 = smov [#allocation31]   ;;  %s10178_s2 = sld [smem:[#allocation79_spill]] }
 0x209   : > { %s869_s1 = sshll.u32 %s8018_s3, 4  ;;  %s870_s1 = int_to_ptr.vmem [resolvable:$true] %s869_s1 }
 0x20e   : > { %s10179_s27 = smov %s10178_s2  ;;  %s7853_s29 = scalar_lea.hbm %s10178_s2, 16 }
 0x20f   : > { %p7854_p1 = scmp.ne.s32.totalorder %s10179_s27, %s7853_s29  ;;  %p7860_p12 = scmp.lt.u32.totalorder %s7853_s29, %s10179_s27 }
 0x211   : > { %p7856_p3 = pnand %p7854_p1, %p8207_p7 }
 0x213   : > { %p7857_p11 = pneg %p7856_p3 }
 0x215   : > { %p7862_p13 = pnand %p7860_p12, %p7857_p11 }
 0x217   : > { %7865 = shalt.err (!%p7862_p13)
}
 0x218   : > { %s7866_s21 = scalar_lea.vmem %s870_s1, 16  ;;  %s7873_s0 = scalar_lea.vmem %s870_s1, 32 }
 0x219   : > { %p7867_p0 = scmp.ne.s32.totalorder %s870_s1, %s7866_s21  ;;  %p7874_p6 = scmp.lt.s32.totalorder %s870_s1, %s870_s1 }
 0x21a   : > { %p7875_p8 = scmp.lt.s32.totalorder %s7873_s0, %s7866_s21 }
 0x21b   : > { %p7869_p2 = pnand %p7867_p0, %p8207_p7 }
 0x21c   : > { %p7876_p9 = por %p7875_p8, %p7874_p6 }
 0x21d   : > { %p7870_p4 = pneg %p7869_p2 }
 0x21f   : > { %p7877_p10 = pnand %p7876_p9, %p7870_p4 }
 0x221   : > { %7880 = shalt.err (!%p7877_p10)
}
 0x222   : > { %s10180_s18 = sld [smem:[#allocation47_spill]]  ;;  %s10181_s25 = sld [smem:[#allocation46_spill]] }
 0x223   : > { %s10182_s20 = sld [smem:[#allocation45_spill]]  ;;  %s10183_s8 = sld [smem:[#allocation44_spill]] }
 0x224   : > { %s10184_s3 = sld [smem:[#allocation48_spill]]  ;;  %s10187_s21 = sld [smem:[#allocation60_spill]] }
 0x225   : > { %6701 = dma.hbm_to_vmem [thread:$0]  (!%p8191_p5), %s10179_s27, 16, %s870_s1, [#allocation32]  }
 0x228   : > { %s8599_s30 = sadd.s32 1, %s10180_s18   ;;  %s55_s4 = sadd.s32 1, %s10181_s25 }
 0x229   : > { %s52_s14 = ssub.s32 %s10180_s18, %s8599_s30  ;;  %p62_p7 = scmp.ne.s32.totalorder %s10181_s25, %s10182_s20 }
 0x22a   : > { %p53_p1 = scmp.eq.s32.totalorder %s52_s14, 0  ;;  %p63_p3 = scmp.eq.s32.totalorder %s10180_s18, 0 }
 0x22b   : > { %p68_p11 = scmp.ne.s32.totalorder %s10182_s20, %s10183_s8  ;;  %p6725_p12 = scmp.lt.s32.totalorder %s10180_s18, 2 }
 0x22c   : > { %s8611_s2 = scalar_select %p53_p1, %s10181_s25, %s55_s4  }
 0x22d   : > { %p64_p13 = por %p63_p3, %p62_p7  ;;  %p10185_p0 = scmp.eq.s32.totalorder %s10184_s3, 0 }
 0x22e   : > { %s880_s7 = sand.u32 1, %s10181_s25   ;;  %s6109_s1 = sshll.u32 %s10180_s18, 9 }
 0x22f   : > { %p8615_p2 = por %p10185_p0, %p68_p11  ;;  %s5813_s5 = sshll.u32 %s880_s7, 5 }
 0x230   : > { %s8624_s0 = scalar_lea.hbm %s10187_s21, %s6109_s1  ;;  %s884_s10 = scalar_lea.vmem [#allocation2], %s5813_s5 }
 0x231   : > { %s891_s16 = sshll.u32 %s884_s10, 4  ;;  %p8626_p5 = pnand %p6725_p12, %p64_p13  ;;  %s8630_s16 = int_to_ptr.vmem [resolvable:$true] %s891_s16 }
 0x232   : > { %s8632_s18 = scalar_lea.sflag [#allocation3], %s880_s7  ;;  %s7881_s25 = scalar_lea.hbm %s8624_s0, 512 }
 0x233   : > { %p7882_p4 = scmp.ne.s32.totalorder %s8624_s0, %s7881_s25  ;;  %p7883_p6 = pneg %p8626_p5 }
 0x234   : > { %s7886_s4 = scalar_lea.hbm %s10187_s21, 1024  ;;  %p7887_p10 = scmp.lt.u32.totalorder %s8624_s0, %s10187_s21 }
 0x235   : > { %p7884_p8 = pnand %p7883_p6, %p7882_p4  ;;  %p7888_p7 = scmp.lt.u32.totalorder %s7886_s4, %s7881_s25 }
 0x236   : > { %p7890_p3 = scmp.lt.u32.totalorder %s7881_s25, %s8624_s0 }
 0x237   : > { %p7885_p9 = pneg %p7884_p8  ;;  %p7889_p1 = por %p7888_p7, %p7887_p10 }
 0x239   : > { %p7891_p11 = por %p7890_p3, %p7889_p1 }
 0x23b   : > { %p7892_p12 = pnand %p7891_p11, %p7885_p9 }
 0x23d   : > { %7895 = shalt.err (!%p7892_p12)
}
 0x23e   : > { %s7896_s7 = scalar_lea.vmem %s8630_s16, 512  ;;  %s8019_s5 = smov [#allocation2]  }
 0x23f   : > { %p7897_p13 = scmp.ne.s32.totalorder %s8630_s16, %s7896_s7  ;;  %s7901_s26 = sshll.u32 %s8019_s5, 4  ;;  %s7902_s26 = int_to_ptr.vmem [resolvable:$false] %s7901_s26 }
 0x240   : > { %s7903_s9 = scalar_lea.vmem %s7902_s26, 1024  ;;  %p7904_p8 = scmp.lt.s32.totalorder %s8630_s16, %s7902_s26 }
 0x241   : > { %p7899_p0 = pnand %p7897_p13, %p7883_p6  ;;  %p7905_p10 = scmp.lt.s32.totalorder %s7903_s9, %s7896_s7 }
 0x243   : > { %p7900_p4 = pneg %p7899_p0  ;;  %p7906_p7 = por %p7905_p10, %p7904_p8 }
 0x245   : > { %p7907_p1 = pnand %p7906_p7, %p7900_p4 }
 0x247   : > { %7910 = shalt.err (!%p7907_p1)
}
 0x248   : > { %6705 = dma.hbm_to_vmem [thread:$0]  (!%p8626_p5), %s8624_s0, 512, %s8630_s16, %s8632_s18, %s10175_s12, %s10175_s12, %s10174_s6  }
 0x249   : > { %s10189_s10 = sld [smem:[#allocation49_spill]] }
 0x24f   : > { %p10190_p6 = scmp.ne.s32.totalorder %s10189_s10, 0 }
 0x251   : > { %903 = sbr.rel (%p10190_p6) target bundleno = 6117 (0x17e5), region = 120 }
 0x258   : > { %s10191_s25 = sld [smem:[#allocation45_spill]] }
 0x25e   : > { %s905_s8 = sand.u32 1, %s10191_s25  }
 0x25f   : > { %s5817_s3 = sshll.u32 %s905_s8, 5  ;;  %s906_s4 = scalar_lea.sflag [#allocation3], %s905_s8 }
 0x260   : > { %s8666_s14 = scalar_lea.vmem [#allocation2], %s5817_s3 }
 0x261   : > { %7928 = dma.done.wait (%p8615_p2), %s906_s4, 512  }
 0x262   : > { %7930 = vsyncadd (%p8615_p2), %s906_s4, 4294966784  ;;  %s10192_s20 = sld [smem:[#allocation48_spill]] }
 0x268   : > { %p10193_p9 = scmp.eq.s32.totalorder %s10192_s20, 0 }
 0x26a   : > { %7932 = dma.done.wait (%p10193_p9), [#allocation5], 336   ;;  %p10194_p5 = pmov %p10193_p9 }
 0x26c   : > { %7934 = vsyncadd (%p10194_p5), [#allocation5], 4294966960  ;;  %p10195_p3 = pmov %p10194_p5 }
 0x26e   : > { %7936 = dma.done.wait (%p10195_p3), [#allocation8], 1536   ;;  %p10196_p11 = pmov %p10195_p3 }
 0x26f   : > { %p10197_p12 = pmov %p10195_p3 }
 0x270   : > { %7938 = vsyncadd (%p10196_p11), [#allocation8], 4294965760 }
 0x271   : > { %7940 = dma.done.wait (%p10197_p12), [#allocation11], 4128   ;;  %p10198_p13 = pmov %p10195_p3 }
 0x272   : > { %p10199_p2 = pmov %p10195_p3 }
 0x273   : > { %7942 = vsyncadd (%p10198_p13), [#allocation11], 4294963168 }
 0x274   : > { %7944 = dma.done.wait (%p10199_p2), [#allocation14], 6208   ;;  %p10200_p0 = pmov %p10199_p2 }
 0x276   : > { %7946 = vsyncadd (%p10200_p0), [#allocation14], 4294961088  ;;  %p10201_p4 = pmov %p10200_p0 }
 0x277   : > { %p10202_p8 = pmov %p10200_p0 }
 0x278   : > { %7948 = dma.done.wait (%p10201_p4), [#allocation17], 2144  }
 0x279   : > { %7950 = vsyncadd (%p10202_p8), [#allocation17], 4294965152  ;;  %p10203_p10 = pmov %p10200_p0 }
 0x27a   : > { %p10204_p7 = pmov %p10200_p0 }
 0x27b   : > { %7952 = dma.done.wait (%p10203_p10), [#allocation20], 64  }
 0x27c   : > { %7954 = vsyncadd (%p10204_p7), [#allocation20], 4294967232  ;;  %p10205_p1 = pmov %p10200_p0 }
 0x27d   : > { %p10206_p6 = pmov %p10200_p0 }
 0x27e   : > { %7956 = dma.done.wait (%p10205_p1), [#allocation23], 8224  }
 0x27f   : > { %7958 = vsyncadd (%p10206_p6), [#allocation23], 4294959072  ;;  %p10207_p9 = pmov %p10200_p0 }
 0x280   : > { %p10208_p5 = pmov %p10200_p0 }
 0x281   : > { %7960 = dma.done.wait (%p10207_p9), [#allocation26], 8320  }
 0x282   : > { %7962 = vsyncadd (%p10208_p5), [#allocation26], 4294958976  ;;  %p10209_p3 = pmov %p10200_p0 }
 0x283   : > { %p10210_p11 = pmov %p10200_p0 }
 0x284   : > { %7964 = dma.done.wait (%p10209_p3), [#allocation29], 1056  }
 0x285   : > { %7966 = vsyncadd (%p10210_p11), [#allocation29], 4294966240  ;;  %p10211_p12 = pmov %p10200_p0 }
 0x286   : > { %p10212_p13 = pmov %p10200_p0 }
 0x287   : > { %7968 = dma.done.wait (%p10211_p12), [#allocation32], 16  }
 0x288   : > { %7970 = vsyncadd (%p10212_p13), [#allocation32], 4294967280  ;;  %vm1142_vm0 = vcmask 1041408   ;;  %vm1143_vm1 = vcmask 1042432   ;;  %v8020_v0 = vmov 65535   ;;  %v6814_v2 = vld [vmem:[#allocation4] sm:$0xff]  }
 0x289   : > { %v1144_v1 = vsel %vm1142_vm0, 4294967295, %v8020_v0  ;;  %v6815_v3 = vld [vmem:[#allocation4 + $0x8] sm:$0xff]   ;;  %6336 = vmatprep.subr.bf16.mxu0 %v6814_v2  ;;  %v6816_v5 = vld [vmem:[#allocation4 + $0x10] ss:$0 sps:$4 sm:$0x77]   ;;  %v1102_v6 = vld [vmem:[%s8666_s14] sm:$0xff] }
 0x28a   : > { %v1145_v4 = vsel %vm1143_vm1, %v1144_v1, 0  ;;  %6337 = vmatpush3.bf16.msra.mxu0 %v6814_v2  ;;  %v1103_v7 = vld [vmem:[%s8666_s14 + $0x8] sm:$0xff]  ;;  %vm1135_vm2 = vcmask 302080   ;;  %v1104_v10 = vld [vmem:[%s8666_s14 + $0x10] sm:$0xff]  ;;  %v1105_v11 = vld [vmem:[%s8666_s14 + $0x18] sm:$0xff]  ;;  %s10213_s29 = sld [smem:[#allocation61_spill]] }
 0x28b   : > { %6338 = vmatprep.subr.bf16.mxu0 %v6815_v3  ;;  %v1147_v8 = vand.u32 %v6816_v5, %v1145_v4  ;;  %v1111_v9 = vpack.c.bf16 %v1103_v7, %v1102_v6  ;;  %v1112_v12 = vpack.c.bf16 %v1105_v11, %v1104_v10  ;;  %v5839_v13 = vld [vmem:[#allocation6] ss:$0 sm:$0xff]  ;;  %v6817_v30 = vld [vmem:[#allocation12 + $0x4] ss:$8 sps:$4 sm:$0xff]   ;;  %v6819_v31 = vld [vmem:[#allocation12] ss:$8 sps:$4 sm:$0xff]  }
 0x28c   : > { %v6820_v32 = vld [vmem:[#allocation15] ss:$12 sps:$4 sm:$0xff]   ;;  %v6822_v33 = vld [vmem:[#allocation15 + $0x4] ss:$12 sps:$4 sm:$0xff]   ;;  %1383 = vmatprep.subr.bf16.mxu1 %v6817_v30  ;;  %v6828_v35 = vld [vmem:[#allocation15 + $0x1c] ss:$12 sps:$4 sm:$0xff]  }
 0x28d   : > { %6342 = vmatprep.mubr.msk.bf16.mxu0 %vm1135_vm2, %v1111_v9  ;;  %v6823_v34 = vld [vmem:[#allocation12 + $0x14] ss:$8 sps:$4 sm:$0xff]   ;;  %1384 = vmatpush1.bf16.msra.mxu1 %v6819_v31  ;;  %v6825_v36 = vld [vmem:[#allocation12 + $0x10] ss:$8 sps:$4 sm:$0xff]   ;;  %v6829_v54 = vld [vmem:[#allocation12 + $0x24] ss:$8 sps:$4 sm:$0xff]  }
 0x28e   : > { %6339 = vmatpush3.bf16.msra.mxu0 %v6815_v3  ;;  %1385 = vmatprep.subr.bf16.mxu1 %v6823_v34  ;;  %v6826_v37 = vld [vmem:[#allocation15 + $0x18] ss:$12 sps:$4 sm:$0xff]   ;;  %v6834_v56 = vld [vmem:[#allocation15 + $0x34] ss:$12 sps:$4 sm:$0xff]   ;;  %v6832_v57 = vld [vmem:[#allocation15 + $0x30] ss:$12 sps:$4 sm:$0xff]  }
 0x28f   : > { %6340 = vmatprep.subr.bf16.mxu0 %v1147_v8  ;;  %v6831_v55 = vld [vmem:[#allocation12 + $0x20] ss:$8 sps:$4 sm:$0xff]   ;;  %v6835_v58 = vld [vmem:[#allocation12 + $0x34] ss:$8 sps:$4 sm:$0xff]   ;;  %v6837_v59 = vld [vmem:[#allocation12 + $0x30] ss:$8 sps:$4 sm:$0xff]  }
 0x290   : > { %s10214_s0 = smov %s10213_s29  ;;  %v1200_v15 = vld [vmem:[%s10213_s29 + $0x10] sm:$0xff]  ;;  %v6841_v62 = vld [vmem:[#allocation12 + $0x44] ss:$8 sps:$4 sm:$0xff]   ;;  %v6843_v63 = vld [vmem:[#allocation12 + $0x40] ss:$8 sps:$4 sm:$0xff]   ;;  %s10215_s25 = sld [smem:[#allocation69_spill]] }
 0x291   : > { %v1198_v18 = vld [vmem:[%s10214_s0] sm:$0xff]  ;;  %v1201_v25 = vld [vmem:[%s10214_s0 + $0x18] sm:$0xff]  ;;  %v1199_v27 = vld [vmem:[%s10214_s0 + $0x8] sm:$0xff]  ;;  %1386 = vmatpush1.bf16.msra.mxu1 %v6825_v36  ;;  %vm8023_vm3 = vmmov 0   ;;  %s10219_s4 = sld [smem:[#allocation65_spill]]  ;;  %s10220_s1 = sld [smem:[#allocation67_spill]] }
 0x292   : > { %6341 = vmatpush3.bf16.msra.mxu0 %v1147_v8  ;;  %1387 = vmatprep.subr.bf16.mxu1 %v6829_v54  ;;  %v6840_v60 = vld [vmem:[#allocation15 + $0x4c] ss:$12 sps:$4 sm:$0xff]   ;;  %v6838_v61 = vld [vmem:[#allocation15 + $0x48] ss:$12 sps:$4 sm:$0xff]   ;;  %v6846_v0 = vld [vmem:[#allocation15 + $0x64] ss:$12 sps:$4 sm:$0xff]  }
 0x293   : > { %1625 = vmatprep.subr.bf16.mxu0 %v6822_v33  ;;  %v6844_v1 = vld [vmem:[#allocation15 + $0x60] ss:$12 sps:$4 sm:$0xff]   ;;  %v6847_v2 = vld [vmem:[#allocation12 + $0x54] ss:$8 sps:$4 sm:$0xff]   ;;  %v6852_v5 = vld [vmem:[#allocation15 + $0x7c] ss:$12 sps:$4 sm:$0xff]  }
 0x294   : > { %v6849_v3 = vld [vmem:[#allocation12 + $0x50] ss:$8 sps:$4 sm:$0xff]   ;;  %v6850_v4 = vld [vmem:[#allocation15 + $0x78] ss:$12 sps:$4 sm:$0xff]   ;;  %v6853_v6 = vld [vmem:[#allocation12 + $0x64] ss:$8 sps:$4 sm:$0xff]  }
 0x295   : > { %6343 = vmatmul.mubr.msk.bf16.vlgmr.msra.gmra.mrb[0].mxu0 %vm1135_vm2, %v1112_v12  ;;  %1388 = vmatpush1.bf16.msra.mxu1 %v6831_v55  ;;  %v6858_v7 = vld [vmem:[#allocation15 + $0x94] ss:$12 sps:$4 sm:$0xff]   ;;  %v6855_v8 = vld [vmem:[#allocation12 + $0x60] ss:$8 sps:$4 sm:$0xff]   ;;  %v6859_v10 = vld [vmem:[#allocation12 + $0x74] ss:$8 sps:$4 sm:$0xff]  }
 0x296   : > { %1626 = vmatpush1.bf16.msra.mxu0 %v6820_v32  ;;  %1389 = vmatprep.subr.bf16.mxu1 %v6835_v58  ;;  %v6856_v9 = vld [vmem:[#allocation15 + $0x90] ss:$12 sps:$4 sm:$0xff]   ;;  %v6864_v11 = vld [vmem:[#allocation15 + $0xac] ss:$12 sps:$4 sm:$0xff]   ;;  %v10101_v12 = vmov 0   ;;  %s10222_s8 = sld [smem:[#allocation64_spill]] }
 0x297   : > { %1627 = vmatprep.subr.bf16.mxu0 %v6828_v35  ;;  %1415 = vmatprep.mubr.bf16.mxu1 %v10101_v12  ;;  %v5845_v34 = vld [vmem:[%s10215_s25] ss:$0 sm:$0xff]  ;;  %p1052_p2 = scmp.lt.s32.totalorder %s10192_s20, 1  ;;  %s10257_s7 = sld [smem:[#allocation80_spill]] }
 0x298   : > { %1657 = vmatprep.mubr.bf16.mxu0 %v10101_v12  ;;  %v6867_v55 = vld [vmem:[#allocation15 + $0x38] ss:$12 sps:$4 sm:$0xff]  }
 0x299   : > { %1390 = vmatpush1.bf16.msra.mxu1 %v6837_v59  ;;  %v6871_v58 = vld [vmem:[#allocation15 + $0x98] ss:$12 sps:$4 sm:$0xff]   ;;  %v6872_v59 = vld [vmem:[#allocation15 + $0xb0] ss:$12 sps:$4 sm:$0xff]   ;;  %s10264_s20 = smov (!%p1052_p2, %s10192_s20), 1 }
 0x29a   : > { %1628 = vmatpush1.bf16.msra.mxu0 %v6826_v37  ;;  %1391 = vmatprep.subr.bf16.mxu1 %v6841_v62  ;;  %v6877_v62 = vld [vmem:[#allocation9 + $0x10] sm:$0xff]   ;;  %s6110_s29 = sshll.u32 %s10264_s20, 5 }
 0x29b   : > { %1629 = vmatprep.subr.bf16.mxu0 %v6834_v56  ;;  %v6869_v56 = vld [vmem:[#allocation15 + $0x68] ss:$12 sps:$4 sm:$0xff]  }
 0x29d   : > { %1392 = vmatpush1.bf16.msra.mxu1 %v6843_v63  ;;  %v6878_v63 = vld [vmem:[#allocation9 + $0x18] sm:$0xff]   ;;  %s1056_s5 = scalar_lea.vmem %s10257_s7, %s6110_s29 }
 0x29e   : > { %1630 = vmatpush1.bf16.msra.mxu0 %v6832_v57  ;;  %1393 = vmatprep.subr.bf16.mxu1 %v6847_v2  ;;  %v6870_v57 = vld [vmem:[#allocation15 + $0x80] ss:$12 sps:$4 sm:$0xff]  }
 0x29f   : > { %1631 = vmatprep.subr.bf16.mxu0 %v6840_v60  ;;  %v6873_v60 = vld [vmem:[#allocation9] sm:$0xff]   ;;  %v6883_v2 = vld [vmem:[#allocation9 + $0x30] sm:$0xff]  }
 0x2a1   : > { %1394 = vmatpush1.bf16.msra.mxu1 %v6849_v3  ;;  %v6884_v3 = vld [vmem:[#allocation9 + $0x38] sm:$0xff]  }
 0x2a2   : > { %1632 = vmatpush1.bf16.msra.mxu0 %v6838_v61  ;;  %1395 = vmatprep.subr.bf16.mxu1 %v6853_v6  ;;  %v6875_v61 = vld [vmem:[#allocation9 + $0x8] sm:$0xff]  }
 0x2a3   : > { %1633 = vmatprep.subr.bf16.mxu0 %v6846_v0  ;;  %v6880_v0 = vld [vmem:[#allocation9 + $0x20] sm:$0xff]  }
 0x2a5   : > { %1396 = vmatpush1.bf16.msra.mxu1 %v6855_v8  ;;  %v8785_v8 = vld [vmem:[#allocation16] sm:$0x7] }
 0x2a6   : > { %1634 = vmatpush1.bf16.msra.mxu0 %v6844_v1  ;;  %1397 = vmatprep.subr.bf16.mxu1 %v6859_v10  ;;  %v6881_v1 = vld [vmem:[#allocation9 + $0x28] sm:$0xff]  }
 0x2a7   : > { %1635 = vmatprep.subr.bf16.mxu0 %v6852_v5 }
 0x2aa   : > { %1636 = vmatpush1.bf16.msra.mxu0 %v6850_v4  ;;  %v1293_v4 = vlaneseq }
 0x2ab   : > { %1637 = vmatprep.subr.bf16.mxu0 %v6858_v7  ;;  %v1291_v7 = vld [vmem:[#allocation13] sm:$0x3] }
 0x2ac   : > { %v8780_v5 = vshrl.u32 %v1293_v4, 7 }
 0x2ae   : > { %1638 = vmatpush1.bf16.msra.mxu0 %v6856_v9  ;;  %10216 = vst [vmem:[#allocation50_spill] sm:$0xff] %v8780_v5  ;;  %v8783_v6 = vsub.s32 0, %v8780_v5  ;;  %v8788_v9 = vsub.s32 1, %v8780_v5 }
 0x2af   : > { %1639 = vmatprep.subr.bf16.mxu0 %v6864_v11 }
 0x2b0   : > { %10217 = vst [vmem:[#allocation51_spill] sm:$0xff] %v8783_v6  ;;  %10218 = vst [vmem:[#allocation52_spill] sm:$0xff] %v8788_v9  ;;  %v1296_v10 = vrot.slane %v1291_v7, %v8783_v6  ;;  %v1485_v11 = vrot.slane %v8785_v8, %v8783_v6 }
 0x368   : > { %v6344_v14 = vpop.f32.mrb[0].mxu0 }
 0x369   : > { %v1192_v16 = vadd.f32 %v6344_v14, %v5839_v13  ;;  %v1183_v17 = vpop.f32.mrb[1].mxu0  ;;  %v6862_v14 = vld [vmem:[#allocation15 + $0xa8] ss:$12 sps:$4 sm:$0xff]  }
 0x36a   : > { %v1184_v19 = vadd.f32 %v5839_v13, %v1183_v17  ;;  %v6345_v20 = vpop.f32.mrb[2].mxu0  ;;  %1640 = vmatpush1.bf16.msra.mxu0 %v6862_v14  ;;  %v1489_v14 = vrot.slane %v8785_v8, %v8788_v9 }
 0x36b   : > { %v8722_v21 = vadd.f32 %v1200_v15, %v1192_v16  ;;  %v1195_v22 = vadd.f32 %v6345_v20, %v5839_v13  ;;  %v1186_v23 = vpop.f32.mrb[3].mxu0  ;;  %v10099_v15 = vmov 0.0  }
 0x36c   : > { %v8724_v24 = vadd.f32 %v1198_v18, %v1184_v19  ;;  %v1187_v26 = vadd.f32 %v5839_v13, %v1186_v23  ;;  %v6861_v13 = vld [vmem:[#allocation12 + $0x70] ss:$8 sps:$4 sm:$0xff]  }
 0x36d   : > { %1212 = vadd.xlane.f32.xlu1 %v8722_v21  ;;  %v8734_v28 = vadd.f32 %v1201_v25, %v1195_v22  ;;  %1398 = vmatpush1.bf16.msra.mxu1 %v6861_v13  ;;  %v1300_v13 = vrot.slane %v1291_v7, %v8788_v9 }
 0x36e   : > { %1208 = vadd.xlane.f32.xlu0 %v8724_v24  ;;  %v8736_v29 = vadd.f32 %v1199_v27, %v1187_v26  ;;  %6346 = vmatprep.subr.bf16.mxu1 %v10099_v15 }
 0x371   : > { %1214 = vadd.xlane.f32.xlu1 %v8734_v28 }
 0x372   : > { %1210 = vadd.xlane.f32.xlu0 %v8736_v29 }
 0x3fa   : > { %v1213_v38 = vpop.xlane.xlu1 %1212 }
 0x3fb   : > { %v1209_v39 = vpop.xlane.xlu0 %1208  ;;  %v1219_v40 = vmul.f32 0.0078125, %v1213_v38 }
 0x3fc   : > { %v1217_v41 = vmul.f32 0.0078125, %v1209_v39  ;;  %v5846_v39 = vld [vmem:[#allocation10] ss:$0 sm:$0xff] }
 0x3fd   : > { %v8744_v45 = vsub.f32 %v8722_v21, %v1219_v40 }
 0x3fe   : > { %v8741_v42 = vsub.f32 %v8724_v24, %v1217_v41  ;;  %v1215_v43 = vpop.xlane.xlu1 %1214 }
 0x3ff   : > { %v1211_v44 = vpop.xlane.xlu0 %1210  ;;  %v1220_v46 = vmul.f32 0.0078125, %v1215_v43  ;;  %v1227_v51 = vmul.f32 %v8744_v45, %v8744_v45 }
 0x400   : > { %v1218_v47 = vmul.f32 0.0078125, %v1211_v44  ;;  %v1225_v48 = vmul.f32 %v8741_v42, %v8741_v42 }
 0x401   : > { %v8752_v50 = vsub.f32 %v8734_v28, %v1220_v46 }
 0x402   : > { %v8749_v49 = vsub.f32 %v8736_v29, %v1218_v47  ;;  %1229 = vadd.xlane.f32.xlu0 %v1225_v48  ;;  %v6865_v48 = vld [vmem:[#allocation15 + $0x8] ss:$12 sps:$4 sm:$0xff]  }
 0x403   : > { %v1228_v53 = vmul.f32 %v8752_v50, %v8752_v50 }
 0x404   : > { %v1226_v52 = vmul.f32 %v8749_v49, %v8749_v49 }
 0x406   : > { %1233 = vadd.xlane.f32.xlu0 %v1227_v51  ;;  %1231 = vadd.xlane.f32.xlu1 %v1226_v52 }
 0x40a   : > { %1235 = vadd.xlane.f32.xlu1 %v1228_v53  ;;  %v6866_v53 = vld [vmem:[#allocation15 + $0x20] ss:$12 sps:$4 sm:$0xff]  }
 0x48f   : > { %v1230_v16 = vpop.xlane.xlu0 %1229 }
 0x490   : > { %v1237_v17 = vmul.f32 0.0078125, %v1230_v16  ;;  %v1058_v16 = vld [vmem:[%s10219_s4] sm:$0xff] }
 0x492   : > { %v1241_v18 = vadd.f32 1e-05, %v1237_v17 }
 0x493   : > { %v1232_v19 = vpop.xlane.xlu1 %1231  ;;  %v1234_v20 = vpop.xlane.xlu0 %1233 }
 0x494   : > { %7129 = vrsqrt.f32 %v1241_v18  ;;  %v1238_v22 = vmul.f32 0.0078125, %v1232_v19  ;;  %v1239_v23 = vmul.f32 0.0078125, %v1234_v20 }
 0x496   : > { %v1242_v25 = vadd.f32 1e-05, %v1238_v22  ;;  %v1243_v26 = vadd.f32 1e-05, %v1239_v23  ;;  %v1062_v22 = vld [vmem:[#allocation7] sm:$0xff] }
 0x497   : > { %v1236_v27 = vpop.xlane.xlu1 %1235 }
 0x498   : > { %7131 = vrsqrt.f32 %v1242_v25  ;;  %v1240_v30 = vmul.f32 0.0078125, %v1236_v27 }
 0x499   : > { %7133 = vrsqrt.f32 %v1243_v26 }
 0x49a   : > { %v1244_v31 = vadd.f32 1e-05, %v1240_v30  ;;  %v1059_v30 = vld [vmem:[%s10219_s4 + $0x8] sm:$0xff] }
 0x49c   : > { %7135 = vrsqrt.f32 %v1244_v31 }
 0x49e   : > { %v7130_v32 = vpop.eup %7129 }
 0x49f   : > { %v1249_v33 = vmul.f32 %v7130_v32, %v8741_v42 }
 0x4a1   : > { %v1259_v37 = vmul.f32 %v5845_v34, %v1249_v33 }
 0x4a2   : > { %v7132_v35 = vpop.eup %7131 }
 0x4a3   : > { %v1250_v36 = vmul.f32 %v7132_v35, %v8749_v49  ;;  %v7134_v38 = vpop.eup %7133  ;;  %v1269_v43 = vadd.f32 %v5846_v39, %v1259_v37  ;;  %v1063_v37 = vld [vmem:[#allocation7 + $0x8] sm:$0xff] }
 0x4a4   : > { %v1251_v46 = vmul.f32 %v7134_v38, %v8744_v45 }
 0x4a5   : > { %v1260_v40 = vmul.f32 %v5845_v34, %v1250_v36 }
 0x4a6   : > { %v7136_v41 = vpop.eup %7135  ;;  %v1261_v52 = vmul.f32 %v5845_v34, %v1251_v46 }
 0x4a7   : > { %v1270_v44 = vadd.f32 %v5846_v39, %v1260_v40  ;;  %v1252_v47 = vmul.f32 %v7136_v41, %v8752_v50  ;;  %v6868_v50 = vld [vmem:[#allocation15 + $0x50] ss:$12 sps:$4 sm:$0xff]  }
 0x4a8   : > { %v1271_v54 = vadd.f32 %v5846_v39, %v1261_v52 }
 0x4a9   : > { %v1273_v42 = vpack.c.bf16 %v1270_v44, %v1269_v43  ;;  %v1262_v51 = vmul.f32 %v5845_v34, %v1252_v47 }
 0x4ab   : > { %1416 = vmatmul.mubr.bf16.vlgmr.msra.gmra.mrb[0].mxu1 %v1273_v42  ;;  %1658 = vmatmul.mubr.bf16.vlgmr.msra.gmra.mrb[4].mxu0 %v1273_v42  ;;  %v1272_v49 = vadd.f32 %v5846_v39, %v1262_v51 }
 0x4ac   : > { %6347 = vmatpush3.bf16.msra.mxu1 %v6865_v48  ;;  %1425 = vmatprep.mubr.bf16.mxu1 %v10101_v12 }
 0x4ad   : > { %6348 = vmatprep.subr.bf16.mxu1 %v10099_v15  ;;  %v1274_v45 = vpack.c.bf16 %v1272_v49, %v1271_v54  ;;  %v1060_v54 = vld [vmem:[%s10219_s4 + $0x10] sm:$0xff] }
 0x4b0   : > { %6349 = vmatpush3.bf16.msra.mxu1 %v6866_v53 }
 0x4b1   : > { %6350 = vmatprep.subr.bf16.mxu1 %v10099_v15 }
 0x4b3   : > { %1426 = vmatmul.mubr.bf16.gmra.mrb[4].mxu1 %v1274_v45  ;;  %v6874_v45 = vld [vmem:[%s10220_s1] sm:$0xff]  }
 0x4b4   : > { %6351 = vmatpush3.bf16.msra.mxu1 %v6867_v55  ;;  %6362 = vmatprep.mubr.msk.bf16.mxu1 %vm8023_vm3, %v10099_v15 }
 0x4b5   : > { %6352 = vmatprep.subr.bf16.mxu1 %v10099_v15 }
 0x4b8   : > { %6353 = vmatpush3.bf16.msra.mxu1 %v6868_v50 }
 0x4b9   : > { %6354 = vmatprep.subr.bf16.mxu1 %v10099_v15 }
 0x4bc   : > { %6355 = vmatpush3.bf16.msra.mxu1 %v6869_v56  ;;  %v1064_v56 = vld [vmem:[#allocation7 + $0x10] sm:$0xff] }
 0x4bd   : > { %6356 = vmatprep.subr.bf16.mxu1 %v10099_v15 }
 0x4c0   : > { %6357 = vmatpush3.bf16.msra.mxu1 %v6870_v57 }
 0x4c1   : > { %6358 = vmatprep.subr.bf16.mxu1 %v10099_v15 }
 0x4c4   : > { %6359 = vmatpush3.bf16.msra.mxu1 %v6871_v58 }
 0x4c5   : > { %6360 = vmatprep.subr.bf16.mxu1 %v10099_v15 }
 0x4c8   : > { %6361 = vmatpush3.bf16.msra.mxu1 %v6872_v59 }
 0x4c9   : > { %6386 = vmatprep.subr.bf16.mxu1 %v6873_v60 }
 0x4cb   : > { %6363 = vmatmul.mubr.bf16.vlgmr.msra.gmra.mrb[8].mxu1 %v1273_v42 }
 0x4cc   : > { %6387 = vmatpush3.bf16.msra.mxu1 %v6873_v60  ;;  %v1061_v60 = vld [vmem:[%s10219_s4 + $0x18] sm:$0xff] }
 0x4cd   : > { %6388 = vmatprep.subr.bf16.mxu1 %v6875_v61 }
 0x4d0   : > { %6389 = vmatpush3.bf16.msra.mxu1 %v6875_v61 }
 0x4d1   : > { %6390 = vmatprep.subr.bf16.mxu1 %v6877_v62 }
 0x4d4   : > { %6391 = vmatpush3.bf16.msra.mxu1 %v6877_v62 }
 0x4d5   : > { %6392 = vmatprep.subr.bf16.mxu1 %v6878_v63 }
 0x4d8   : > { %6393 = vmatpush3.bf16.msra.mxu1 %v6878_v63  ;;  %v8814_v63 = vld [vmem:[%s10220_s1 + $0x8] sm:$0xff]  }
 0x4d9   : > { %6394 = vmatprep.subr.bf16.mxu1 %v6880_v0 }
 0x4dc   : > { %6395 = vmatpush3.bf16.msra.mxu1 %v6880_v0 }
 0x4dd   : > { %6396 = vmatprep.subr.bf16.mxu1 %v6881_v1 }
 0x4e0   : > { %6397 = vmatpush3.bf16.msra.mxu1 %v6881_v1 }
 0x4e1   : > { %6398 = vmatprep.subr.bf16.mxu1 %v6883_v2 }
 0x4e4   : > { %6399 = vmatpush3.bf16.msra.mxu1 %v6883_v2  ;;  %v1065_v2 = vld [vmem:[#allocation7 + $0x18] sm:$0xff] }
 0x4e5   : > { %6400 = vmatprep.subr.bf16.mxu1 %v6884_v3 }
 0x4e8   : > { %6401 = vmatpush3.bf16.msra.mxu1 %v6884_v3 }
 0x57e   : > { %v1417_v17 = vpop.f32.mrb[0].mxu1  ;;  %v1659_v18 = vpop.f32.mrb[4].mxu0 }
 0x57f   : > { %v1418_v19 = vadd.f32 %v1417_v17, %v1296_v10  ;;  %v1660_v20 = vadd.f32 %v1659_v18, %v1485_v11  ;;  %v1419_v23 = vpop.f32.mrb[1].mxu1  ;;  %v1661_v25 = vpop.f32.mrb[5].mxu0 }
 0x580   : > { %v1420_v26 = vadd.f32 %v1419_v23, %v1300_v13  ;;  %v1662_v27 = vadd.f32 %v1661_v25, %v1489_v14  ;;  %v1421_v31 = vpop.f32.mrb[2].mxu1  ;;  %v1663_v32 = vpop.f32.mrb[6].mxu0  ;;  %v8829_v23 = vsub.s32 2, %v8780_v5 }
 0x581   : > { %v1436_v33 = vmul.f32 %v1418_v19, %v1058_v16  ;;  %v1709_v34 = vmul.f32 %v1660_v20, %v1058_v16  ;;  %v1422_v35 = vadd.f32 %v1421_v31, %v1296_v10  ;;  %v1664_v36 = vadd.f32 %v1663_v32, %v1485_v11  ;;  %v1423_v38 = vpop.f32.mrb[3].mxu1  ;;  %v1665_v39 = vpop.f32.mrb[7].mxu0  ;;  %v8837_v32 = vld [vmem:[%s10220_s1 + $0x20] sm:$0xff]  }
 0x582   : > { %v1440_v40 = vmul.f32 %v1420_v26, %v1062_v22  ;;  %v1711_v41 = vmul.f32 %v1662_v27, %v1062_v22  ;;  %v1424_v43 = vadd.f32 %v1423_v38, %v1300_v13  ;;  %v1666_v44 = vadd.f32 %v1665_v39, %v1489_v14  ;;  %10221 = vst [vmem:[#allocation53_spill] sm:$0xff] %v8829_v23  ;;  %v8849_v38 = vld [vmem:[%s10220_s1 + $0x28] sm:$0xff]  }
 0x583   : > { %v1437_v46 = vmul.f32 %v1422_v35, %v1059_v30  ;;  %v1710_v47 = vmul.f32 %v1664_v36, %v1059_v30  ;;  %v1493_v26 = vrot.slane %v8785_v8, %v8829_v23 }
 0x584   : > { %v1444_v48 = vadd.f32 %v1440_v40, %v1436_v33  ;;  %v1713_v42 = vadd.f32 %v1711_v41, %v1709_v34  ;;  %v1441_v51 = vmul.f32 %v1424_v43, %v1063_v37  ;;  %v1712_v52 = vmul.f32 %v1666_v44, %v1063_v37  ;;  %v8855_v40 = vld [vmem:[%s10220_s1 + $0x30] sm:$0xff]   ;;  %v8861_v43 = vld [vmem:[%s10220_s1 + $0x38] sm:$0xff]  }
 0x586   : > { %v1445_v53 = vadd.f32 %v1441_v51, %v1437_v46  ;;  %v1714_v49 = vadd.f32 %v1712_v52, %v1710_v47  ;;  %v1427_v55 = vpop.f32.mrb[4].mxu1  ;;  %v1098_v46 = vld [vmem:[%s10222_s8] sm:$0xff] }
 0x587   : > { %v1428_v50 = vadd.f32 %v1427_v55, %v1296_v10  ;;  %v1429_v57 = vpop.f32.mrb[5].mxu1  ;;  %v1101_v55 = vld [vmem:[%s10222_s8 + $0x18] sm:$0xff] }
 0x588   : > { %v1715_v58 = vpack.c.bf16 %v1714_v49, %v1713_v42  ;;  %v1430_v59 = vadd.f32 %v1429_v57, %v1300_v13  ;;  %v1431_v61 = vpop.f32.mrb[6].mxu1  ;;  %v1781_v62 = vpack.c.bf16 %v1445_v53, %v1444_v48  ;;  %v1099_v42 = vld [vmem:[%s10222_s8 + $0x8] sm:$0xff]  ;;  %v1100_v53 = vld [vmem:[%s10222_s8 + $0x10] sm:$0xff] }
 0x589   : > { %v1438_v0 = vmul.f32 %v1428_v50, %v1060_v54  ;;  %v1432_v1 = vadd.f32 %v1431_v61, %v1296_v10  ;;  %v1433_v3 = vpop.f32.mrb[7].mxu1  ;;  %v8820_v10 = vld [vmem:[%s10220_s1 + $0x10] sm:$0xff]  }
 0x58a   : > { %v1442_v4 = vmul.f32 %v1430_v59, %v1064_v56  ;;  %v1434_v7 = vadd.f32 %v1433_v3, %v1300_v13  ;;  %6382 = vmatprep.mubr.bf16.mxu0 %v1781_v62  ;;  %v1764_v11 = vmul.bf16 %v6874_v45, %v1715_v58  ;;  %v1765_v18 = vmul.bf16 %v8814_v63, %v1715_v58  ;;  %v8826_v13 = vld [vmem:[%s10220_s1 + $0x18] sm:$0xff]  }
 0x58b   : > { %v1439_v14 = vmul.f32 %v1432_v1, %v1061_v60  ;;  %v1766_v22 = vmul.bf16 %v8820_v10, %v1715_v58  ;;  %v1767_v25 = vmul.bf16 %v8826_v13, %v1715_v58  ;;  %v1768_v37 = vmul.bf16 %v8837_v32, %v1715_v58 }
 0x58c   : > { %v1446_v16 = vadd.f32 %v1442_v4, %v1438_v0  ;;  %v1443_v17 = vmul.f32 %v1434_v7, %v1065_v2  ;;  %6366 = vmatprep.subr.bf16.mxu0 %v1764_v11  ;;  %v1769_v39 = vmul.bf16 %v8849_v38, %v1715_v58  ;;  %v1770_v41 = vmul.bf16 %v8855_v40, %v1715_v58 }
 0x58d   : > { %6367 = vmatpush3.bf16.xpose.msra.mxu0 %v1764_v11  ;;  %v1771_v44 = vmul.bf16 %v8861_v43, %v1715_v58 }
 0x58e   : > { %v1447_v19 = vadd.f32 %v1443_v17, %v1439_v14  ;;  %6368 = vmatprep.subr.bf16.mxu0 %v1765_v18 }
 0x590   : > { %v1782_v20 = vpack.c.bf16 %v1447_v19, %v1446_v16 }
 0x595   : > { %6369 = vmatpush3.bf16.xpose.msra.mxu0 %v1765_v18 }
 0x596   : > { %6370 = vmatprep.subr.bf16.mxu0 %v1766_v22 }
 0x59d   : > { %6371 = vmatpush3.bf16.xpose.msra.mxu0 %v1766_v22 }
 0x59e   : > { %v1702_v27 = vpop.f32.mrb[8].mxu1  ;;  %6372 = vmatprep.subr.bf16.mxu0 %v1767_v25 }
 0x59f   : > { %v6364_v30 = vpop.f32.mrb[9].mxu1  ;;  %v1703_v33 = vadd.f32 %v1702_v27, %v1493_v26 }
 0x5a0   : > { %v1705_v31 = vpop.f32.mrb[10].mxu1 }
 0x5a1   : > { %v1706_v34 = vadd.f32 %v1705_v31, %v1493_v26  ;;  %v6365_v35 = vpop.f32.mrb[11].mxu1 }
 0x5a2   : > { %v6892_v35 = vld [vmem:[#allocation18 + $0x18] sm:$0xff]  }
 0x5a3   : > { %v8839_v36 = vpack.c.bf16 %v1706_v34, %v1703_v33  ;;  %v6889_v33 = vld [vmem:[#allocation18] sm:$0xff]   ;;  %v6891_v34 = vld [vmem:[#allocation18 + $0x10] sm:$0xff]  }
 0x5a5   : > { %6373 = vmatpush3.bf16.xpose.msra.mxu0 %v1767_v25  ;;  %v8843_v8 = vmul.bf16 %v6874_v45, %v8839_v36  ;;  %v1774_v26 = vmul.bf16 %v8814_v63, %v8839_v36  ;;  %v1775_v27 = vmul.bf16 %v8820_v10, %v8839_v36  ;;  %v1776_v30 = vmul.bf16 %v8826_v13, %v8839_v36 }
 0x5a6   : > { %6374 = vmatprep.subr.bf16.mxu0 %v1768_v37  ;;  %v1777_v31 = vmul.bf16 %v8837_v32, %v8839_v36  ;;  %v1778_v63 = vmul.bf16 %v8849_v38, %v8839_v36  ;;  %v1779_v10 = vmul.bf16 %v8855_v40, %v8839_v36  ;;  %v1780_v13 = vmul.bf16 %v8861_v43, %v8839_v36  ;;  %v6890_v32 = vld [vmem:[#allocation18 + $0x8] sm:$0xff]   ;;  %v6895_v36 = vld [vmem:[#allocation18 + $0x30] sm:$0xff]  }
 0x5a7   : > { %6406 = vmatprep.subr.bf16.mxu1 %v8843_v8 }
 0x5ad   : > { %6375 = vmatpush3.bf16.xpose.msra.mxu0 %v1768_v37  ;;  %v6893_v37 = vld [vmem:[#allocation18 + $0x20] sm:$0xff]  }
 0x5ae   : > { %6376 = vmatprep.subr.bf16.mxu0 %v1769_v39 }
 0x5b5   : > { %6377 = vmatpush3.bf16.xpose.msra.mxu0 %v1769_v39 }
 0x5b6   : > { %6378 = vmatprep.subr.bf16.mxu0 %v1770_v41 }
 0x5bd   : > { %6379 = vmatpush3.bf16.xpose.msra.mxu0 %v1770_v41 }
 0x5be   : > { %6380 = vmatprep.subr.bf16.mxu0 %v1771_v44 }
 0x5c5   : > { %6381 = vmatpush3.bf16.xpose.msra.mxu0 %v1771_v44 }
 0x5c6   : > { %6426 = vmatprep.subr.bf16.mxu0 %v6889_v33 }
 0x5cc   : > { %6383 = vmatmul.mubr.bf16.vlgmr.msra.gmra.mrb[8].mxu0 %v1782_v20 }
 0x5cd   : > { %6427 = vmatpush3.bf16.msra.mxu0 %v6889_v33 }
 0x5ce   : > { %6428 = vmatprep.subr.bf16.mxu0 %v6890_v32 }
 0x5d1   : > { %6429 = vmatpush3.bf16.msra.mxu0 %v6890_v32 }
 0x5d2   : > { %6430 = vmatprep.subr.bf16.mxu0 %v6891_v34 }
 0x5d5   : > { %6431 = vmatpush3.bf16.msra.mxu0 %v6891_v34 }
 0x5d6   : > { %6432 = vmatprep.subr.bf16.mxu0 %v6892_v35 }
 0x5d9   : > { %6433 = vmatpush3.bf16.msra.mxu0 %v6892_v35 }
 0x5da   : > { %6434 = vmatprep.subr.bf16.mxu0 %v6893_v37 }
 0x5dd   : > { %6435 = vmatpush3.bf16.msra.mxu0 %v6893_v37 }
 0x69f   : > { %v6384_v47 = vpop.f32.mrb[8].mxu0 }
 0x6a0   : > { %v1817_v48 = vpop.f32.mrb[9].mxu0  ;;  %v1826_v45 = vadd.f32 %v6384_v47, %v1100_v53 }
 0x6a1   : > { %v1818_v51 = vadd.f32 %v1817_v48, %v1098_v46  ;;  %v6385_v52 = vpop.f32.mrb[10].mxu0 }
 0x6a2   : > { %v1820_v49 = vpop.f32.mrb[11].mxu0  ;;  %v1829_v50 = vadd.f32 %v6385_v52, %v1101_v55 }
 0x6a3   : > { %v1821_v54 = vadd.f32 %v1820_v49, %v1099_v42  ;;  %1832 = vmax.xlane.f32.xlu0 %v1818_v51 }
 0x6a5   : > { %1834 = vmax.xlane.f32.xlu1 %v1821_v54 }
 0x6a7   : > { %1836 = vmax.xlane.f32.xlu0 %v1826_v45 }
 0x6a9   : > { %1838 = vmax.xlane.f32.xlu1 %v1829_v50 }
 0x730   : > { %v1833_v56 = vpop.xlane.xlu0 %1832 }
 0x731   : > { %vm1840_vm4 = vcmp.eq.f32.partialorder %v1833_v56, -inf }
 0x732   : > { %v1844_v57 = vsel %vm1840_vm4, 0.0, %v1833_v56  ;;  %v1835_v58 = vpop.xlane.xlu1 %1834  ;;  %v6896_v56 = vld [vmem:[#allocation18 + $0x38] sm:$0xff]  }
 0x733   : > { %v1848_v59 = vsub.f32 %v1818_v51, %v1844_v57  ;;  %vm1841_vm5 = vcmp.eq.f32.partialorder %v1835_v58, -inf }
 0x734   : > { %v1845_v60 = vsel %vm1841_vm5, 0.0, %v1835_v58  ;;  %v1837_v61 = vpop.xlane.xlu0 %1836 }
 0x735   : > { %v1852_v62 = vmul.f32 1.442695, %v1848_v59  ;;  %v1849_v0 = vsub.f32 %v1821_v54, %v1845_v60  ;;  %vm1842_vm6 = vcmp.eq.f32.partialorder %v1837_v61, -inf }
 0x736   : > { %v1846_v1 = vsel %vm1842_vm6, 0.0, %v1837_v61  ;;  %v1839_v2 = vpop.xlane.xlu1 %1838 }
 0x737   : > { %v1854_v3 = vmul.f32 1.442695, %v1849_v0  ;;  %v1850_v4 = vsub.f32 %v1826_v45, %v1846_v1  ;;  %vm1843_vm7 = vcmp.eq.f32.partialorder %v1839_v2, -inf  ;;  %7137 = vpow2.f32 %v1852_v62  ;;  %v5911_v1 = vld [vmem:[#allocation19] ss:$0 sm:$0xff] }
 0x738   : > { %v1847_v7 = vsel %vm1843_vm7, 0.0, %v1839_v2 }
 0x739   : > { %7139 = vpow2.f32 %v1854_v3  ;;  %v1856_v11 = vmul.f32 1.442695, %v1850_v4  ;;  %v1851_v14 = vsub.f32 %v1829_v50, %v1847_v7 }
 0x73b   : > { %v1858_v16 = vmul.f32 1.442695, %v1851_v14  ;;  %7141 = vpow2.f32 %v1856_v11 }
 0x73d   : > { %7143 = vpow2.f32 %v1858_v16 }
 0x741   : > { %v8876_v17 = vpop.eup %7137 }
 0x743   : > { %v8878_v18 = vpop.eup %7139 }
 0x744   : > { %v1860_v19 = vpack.c.bf16 %v8878_v18, %v8876_v17 }
 0x745   : > { %v8882_v20 = vpop.eup %7141 }
 0x746   : > { %6402 = vmatprep.mubr.bf16.mxu1 %v1860_v19 }
 0x747   : > { %v8884_v22 = vpop.eup %7143 }
 0x748   : > { %v1861_v25 = vpack.c.bf16 %v8884_v22, %v8882_v20 }
 0x74a   : > { %6403 = vmatmul.mubr.bf16.vlgmr.msra.gmra.mrb[12].mxu1 %v1861_v25  ;;  %v6905_v25 = vld [vmem:[#allocation24 + $0x24] ss:$16 sps:$4 sm:$0xff]  }
 0x74b   : > { %6407 = vmatpush3.bf16.msra.mxu1 %v8843_v8  ;;  %v6894_v8 = vld [vmem:[#allocation18 + $0x28] sm:$0xff]  }
 0x74c   : > { %6408 = vmatprep.subr.bf16.mxu1 %v1774_v26  ;;  %6436 = vmatprep.subr.bf16.mxu0 %v6894_v8 }
 0x74d   : > { %6437 = vmatpush3.bf16.msra.mxu0 %v6894_v8 }
 0x74e   : > { %6438 = vmatprep.subr.bf16.mxu0 %v6895_v36 }
 0x74f   : > { %6409 = vmatpush3.bf16.msra.mxu1 %v1774_v26  ;;  %v6903_v26 = vld [vmem:[#allocation24 + $0x20] ss:$16 sps:$4 sm:$0xff]  }
 0x750   : > { %6410 = vmatprep.subr.bf16.mxu1 %v1775_v27 }
 0x751   : > { %6439 = vmatpush3.bf16.msra.mxu0 %v6895_v36 }
 0x752   : > { %6440 = vmatprep.subr.bf16.mxu0 %v6896_v56 }
 0x753   : > { %6411 = vmatpush3.bf16.msra.mxu1 %v1775_v27  ;;  %v6906_v27 = vld [vmem:[#allocation24 + $0x28] ss:$16 sps:$4 sm:$0xff]  }
 0x754   : > { %6412 = vmatprep.subr.bf16.mxu1 %v1776_v30 }
 0x755   : > { %6441 = vmatpush3.bf16.msra.mxu0 %v6896_v56  ;;  %v6927_v56 = vld [vmem:[#allocation24 + $0xa0] ss:$16 sps:$4 sm:$0xff]  }
 0x757   : > { %6413 = vmatpush3.bf16.msra.mxu1 %v1776_v30 }
 0x758   : > { %6414 = vmatprep.subr.bf16.mxu1 %v1777_v31 }
 0x75b   : > { %6415 = vmatpush3.bf16.msra.mxu1 %v1777_v31 }
 0x75c   : > { %6416 = vmatprep.subr.bf16.mxu1 %v1778_v63 }
 0x75f   : > { %6417 = vmatpush3.bf16.msra.mxu1 %v1778_v63 }
 0x760   : > { %6418 = vmatprep.subr.bf16.mxu1 %v1779_v10 }
 0x763   : > { %6419 = vmatpush3.bf16.msra.mxu1 %v1779_v10 }
 0x764   : > { %6420 = vmatprep.subr.bf16.mxu1 %v1780_v13 }
 0x767   : > { %6421 = vmatpush3.bf16.msra.mxu1 %v1780_v13 }
 0x81d   : > { %v6404_v38 = vpop.f32.mrb[12].mxu1 }
 0x81e   : > { %vm1961_vm8 = vcmp.eq.f32.partialorder %v6404_v38, 0.0  ;;  %v1944_v39 = vpop.f32.mrb[13].mxu1 }
 0x81f   : > { %v1965_v40 = vsel %vm1961_vm8, 1.0, %v6404_v38  ;;  %vm1959_vm9 = vcmp.eq.f32.partialorder %v1944_v39, 0.0  ;;  %v6405_v41 = vpop.f32.mrb[14].mxu1 }
 0x820   : > { %7145 = vrcp.f32 %v1965_v40  ;;  %v1963_v43 = vsel %vm1959_vm9, 1.0, %v1944_v39  ;;  %vm1962_vm10 = vcmp.eq.f32.partialorder %v6405_v41, 0.0  ;;  %v1947_v44 = vpop.f32.mrb[15].mxu1 }
 0x821   : > { %7147 = vrcp.f32 %v1963_v43  ;;  %v1966_v46 = vsel %vm1962_vm10, 1.0, %v6405_v41  ;;  %vm1960_vm11 = vcmp.eq.f32.partialorder %v1947_v44, 0.0  ;;  %v6911_v43 = vld [vmem:[#allocation24 + $0x44] ss:$16 sps:$4 sm:$0xff]  }
 0x822   : > { %7149 = vrcp.f32 %v1966_v46  ;;  %v1964_v47 = vsel %vm1960_vm11, 1.0, %v1947_v44  ;;  %v6914_v44 = vld [vmem:[#allocation24 + $0x4c] ss:$16 sps:$4 sm:$0xff]   ;;  %v6909_v46 = vld [vmem:[#allocation24 + $0x40] ss:$16 sps:$4 sm:$0xff]  }
 0x823   : > { %7151 = vrcp.f32 %v1964_v47  ;;  %v6912_v47 = vld [vmem:[#allocation24 + $0x48] ss:$16 sps:$4 sm:$0xff]  }
 0x82a   : > { %v7146_v48 = vpop.eup %7145 }
 0x82b   : > { %v7148_v42 = vpop.eup %7147  ;;  %v1973_v53 = vmul.f32 %v7146_v48, %v8882_v20  ;;  %v6917_v48 = vld [vmem:[#allocation24 + $0x64] ss:$16 sps:$4 sm:$0xff]  }
 0x82c   : > { %v7150_v51 = vpop.eup %7149  ;;  %v1971_v54 = vmul.f32 %v7148_v42, %v8876_v17  ;;  %v6920_v42 = vld [vmem:[#allocation24 + $0x6c] ss:$16 sps:$4 sm:$0xff]  }
 0x82d   : > { %v7152_v52 = vpop.eup %7151  ;;  %v1974_v49 = vmul.f32 %v7150_v51, %v8884_v22  ;;  %v6900_v22 = vld [vmem:[#allocation24 + $0x8] ss:$16 sps:$4 sm:$0xff]   ;;  %v6915_v51 = vld [vmem:[#allocation24 + $0x60] ss:$16 sps:$4 sm:$0xff]  }
 0x82e   : > { %v1972_v55 = vmul.f32 %v7152_v52, %v8878_v18  ;;  %v6918_v52 = vld [vmem:[#allocation24 + $0x68] ss:$16 sps:$4 sm:$0xff]  }
 0x82f   : > { %v1976_v45 = vpack.c.bf16 %v1974_v49, %v1973_v53  ;;  %v6923_v53 = vld [vmem:[#allocation24 + $0x84] ss:$16 sps:$4 sm:$0xff]   ;;  %v6926_v49 = vld [vmem:[#allocation24 + $0x8c] ss:$16 sps:$4 sm:$0xff]  }
 0x830   : > { %v1975_v50 = vpack.c.bf16 %v1972_v55, %v1971_v54  ;;  %v6921_v54 = vld [vmem:[#allocation24 + $0x80] ss:$16 sps:$4 sm:$0xff]   ;;  %v6924_v55 = vld [vmem:[#allocation24 + $0x88] ss:$16 sps:$4 sm:$0xff]  }
 0x832   : > { %6422 = vmatprep.mubr.bf16.mxu1 %v1975_v50  ;;  %v6932_v50 = vld [vmem:[#allocation24 + $0xac] ss:$16 sps:$4 sm:$0xff]  }
 0x833   : > { %6423 = vmatmul.mubr.bf16.vlgmr.msra.gmra.mrb[16].mxu1 %v1976_v45  ;;  %v6929_v45 = vld [vmem:[#allocation24 + $0xa4] ss:$16 sps:$4 sm:$0xff]  }
 0x834   : > { %2470 = vmatprep.mubr.bf16.mxu1 %v10101_v12 }
 0x906   : > { %v6424_v57 = vpop.f32.mrb[16].mxu1 }
 0x907   : > { %v2011_v58 = vpop.f32.mrb[17].mxu1 }
 0x908   : > { %v6425_v59 = vpop.f32.mrb[18].mxu1 }
 0x909   : > { %v2043_v60 = vpack.c.bf16 %v6425_v59, %v6424_v57  ;;  %v2014_v61 = vpop.f32.mrb[19].mxu1  ;;  %v6930_v57 = vld [vmem:[#allocation24 + $0xa8] ss:$16 sps:$4 sm:$0xff]   ;;  %v6935_v59 = vld [vmem:[#allocation24 + $0xc4] ss:$16 sps:$4 sm:$0xff]  }
 0x90a   : > { %v2042_v62 = vpack.c.bf16 %v2014_v61, %v2011_v58  ;;  %v6933_v58 = vld [vmem:[#allocation24 + $0xc0] ss:$16 sps:$4 sm:$0xff]   ;;  %v6938_v61 = vld [vmem:[#allocation24 + $0xcc] ss:$16 sps:$4 sm:$0xff]  }
 0x90c   : > { %6442 = vmatprep.mubr.bf16.mxu0 %v2042_v62  ;;  %v6941_v62 = vld [vmem:[#allocation24 + $0xe4] ss:$16 sps:$4 sm:$0xff]  }
 0x90d   : > { %6443 = vmatmul.mubr.bf16.vlgmr.msra.gmra.mrb[12].mxu0 %v2043_v60  ;;  %v6936_v60 = vld [vmem:[#allocation24 + $0xc8] ss:$16 sps:$4 sm:$0xff]  }
 0x90e   : > { %2523 = vmatprep.mubr.bf16.mxu0 %v10101_v12 }
 0x9e0   : > { %v6444_v0 = vpop.f32.mrb[12].mxu0 }
 0x9e1   : > { %v2126_v2 = vpop.f32.mrb[13].mxu0  ;;  %v2143_v11 = vadd.f32 %v6444_v0, %v8722_v21  ;;  %v6897_v21 = vld [vmem:[#allocation24] ss:$16 sps:$4 sm:$0xff]   ;;  %v6944_v0 = vld [vmem:[#allocation24 + $0xec] ss:$16 sps:$4 sm:$0xff]  }
 0x9e2   : > { %v2141_v3 = vadd.f32 %v2126_v2, %v8724_v24  ;;  %v6445_v4 = vpop.f32.mrb[14].mxu0  ;;  %v6899_v24 = vld [vmem:[#allocation24 + $0x4] ss:$16 sps:$4 sm:$0xff]   ;;  %v6942_v2 = vld [vmem:[#allocation24 + $0xe8] ss:$16 sps:$4 sm:$0xff]  }
 0x9e3   : > { %v2129_v7 = vpop.f32.mrb[15].mxu0  ;;  %v2144_v17 = vadd.f32 %v6445_v4, %v8734_v28  ;;  %v8918_v19 = vadd.f32 %v5911_v1, %v2143_v11  ;;  %2438 = vmatprep.subr.bf16.mxu1 %v6899_v24  ;;  %v6908_v28 = vld [vmem:[#allocation24 + $0x2c] ss:$16 sps:$4 sm:$0xff]  }
 0x9e4   : > { %v8911_v14 = vadd.f32 %v5911_v1, %v2141_v3  ;;  %v2142_v16 = vadd.f32 %v2129_v7, %v8736_v29  ;;  %v6902_v29 = vld [vmem:[#allocation24 + $0xc] ss:$16 sps:$4 sm:$0xff]   ;;  %2439 = vmatpush1.bf16.msra.mxu1 %v6897_v21 }
 0x9e5   : > { %10225 = vst [vmem:[#allocation56_spill] sm:$0xff] %v8918_v19  ;;  %v8921_v20 = vadd.f32 %v5911_v1, %v2144_v17  ;;  %2491 = vmatprep.subr.bf16.mxu0 %v6902_v29  ;;  %2440 = vmatprep.subr.bf16.mxu1 %v6905_v25 }
 0x9e6   : > { %10223 = vst [vmem:[#allocation54_spill] sm:$0xff] %v8911_v14  ;;  %v8915_v18 = vadd.f32 %v5911_v1, %v2142_v16  ;;  %2158 = vadd.xlane.f32.xlu0 %v8911_v14  ;;  %2492 = vmatpush1.bf16.msra.mxu0 %v6900_v22  ;;  %v6939_v1 = vld [vmem:[#allocation24 + $0xe0] ss:$16 sps:$4 sm:$0xff]  }
 0x9e7   : > { %10226 = vst [vmem:[#allocation57_spill] sm:$0xff] %v8921_v20  ;;  %2493 = vmatprep.subr.bf16.mxu0 %v6908_v28 }
 0x9e8   : > { %10224 = vst [vmem:[#allocation55_spill] sm:$0xff] %v8915_v18  ;;  %2160 = vadd.xlane.f32.xlu1 %v8915_v18  ;;  %2441 = vmatpush1.bf16.msra.mxu1 %v6903_v26 }
 0x9e9   : > { %2442 = vmatprep.subr.bf16.mxu1 %v6911_v43 }
 0x9ea   : > { %2162 = vadd.xlane.f32.xlu0 %v8918_v19  ;;  %2494 = vmatpush1.bf16.msra.mxu0 %v6906_v27  ;;  %v5912_v27 = vld [vmem:[#allocation21] ss:$0 sm:$0xff] }
 0x9eb   : > { %2495 = vmatprep.subr.bf16.mxu0 %v6914_v44 }
 0x9ec   : > { %2164 = vadd.xlane.f32.xlu1 %v8921_v20  ;;  %2443 = vmatpush1.bf16.msra.mxu1 %v6909_v46 }
 0x9ed   : > { %2444 = vmatprep.subr.bf16.mxu1 %v6917_v48  ;;  %v6945_v48 = vld [vmem:[#allocation27 + $0x40] sm:$0xff]  }
 0x9ee   : > { %2496 = vmatpush1.bf16.msra.mxu0 %v6912_v47 }
 0x9ef   : > { %2497 = vmatprep.subr.bf16.mxu0 %v6920_v42  ;;  %v6946_v42 = vld [vmem:[#allocation27 + $0xc0] sm:$0xff]  }
 0x9f0   : > { %2445 = vmatpush1.bf16.msra.mxu1 %v6915_v51  ;;  %v6947_v51 = vld [vmem:[#allocation27] sm:$0xff]  }
 0x9f1   : > { %2446 = vmatprep.subr.bf16.mxu1 %v6923_v53  ;;  %v6951_v53 = vld [vmem:[#allocation27 + $0x8] sm:$0xff]  }
 0x9f2   : > { %2498 = vmatpush1.bf16.msra.mxu0 %v6918_v52  ;;  %v6950_v52 = vld [vmem:[#allocation27 + $0xc8] sm:$0xff]  }
 0x9f3   : > { %2499 = vmatprep.subr.bf16.mxu0 %v6926_v49  ;;  %v6952_v49 = vld [vmem:[#allocation27 + $0x88] sm:$0xff]  }
 0x9f4   : > { %2447 = vmatpush1.bf16.msra.mxu1 %v6921_v54  ;;  %v6953_v54 = vld [vmem:[#allocation27 + $0x50] sm:$0xff]  }
 0x9f5   : > { %2448 = vmatprep.subr.bf16.mxu1 %v6929_v45  ;;  %v6955_v45 = vld [vmem:[#allocation27 + $0x10] sm:$0xff]  }
 0x9f6   : > { %2500 = vmatpush1.bf16.msra.mxu0 %v6924_v55  ;;  %v6954_v55 = vld [vmem:[#allocation27 + $0xd0] sm:$0xff]  }
 0x9f7   : > { %2501 = vmatprep.subr.bf16.mxu0 %v6932_v50  ;;  %v6956_v50 = vld [vmem:[#allocation27 + $0x90] sm:$0xff]  }
 0x9f8   : > { %2449 = vmatpush1.bf16.msra.mxu1 %v6927_v56  ;;  %v6957_v56 = vld [vmem:[#allocation27 + $0x58] sm:$0xff]  }
 0x9f9   : > { %2450 = vmatprep.subr.bf16.mxu1 %v6935_v59  ;;  %v6960_v59 = vld [vmem:[#allocation27 + $0x98] sm:$0xff]  }
 0x9fa   : > { %2502 = vmatpush1.bf16.msra.mxu0 %v6930_v57  ;;  %v6958_v57 = vld [vmem:[#allocation27 + $0xd8] sm:$0xff]  }
 0x9fb   : > { %2503 = vmatprep.subr.bf16.mxu0 %v6938_v61  ;;  %v6962_v61 = vld [vmem:[#allocation27 + $0xe0] sm:$0xff]  }
 0x9fc   : > { %2451 = vmatpush1.bf16.msra.mxu1 %v6933_v58  ;;  %v6959_v58 = vld [vmem:[#allocation27 + $0x18] sm:$0xff]  }
 0x9fd   : > { %2452 = vmatprep.subr.bf16.mxu1 %v6941_v62  ;;  %v6963_v62 = vld [vmem:[#allocation27 + $0x20] sm:$0xff]  }
 0x9fe   : > { %2504 = vmatpush1.bf16.msra.mxu0 %v6936_v60  ;;  %v6961_v60 = vld [vmem:[#allocation27 + $0x60] sm:$0xff]  }
 0x9ff   : > { %2505 = vmatprep.subr.bf16.mxu0 %v6944_v0  ;;  %v6964_v0 = vld [vmem:[#allocation27 + $0xa0] sm:$0xff]  }
 0xa00   : > { %2453 = vmatpush1.bf16.msra.mxu1 %v6939_v1  ;;  %v6965_v1 = vld [vmem:[#allocation27 + $0x68] sm:$0xff]  }
 0xa01   : > { %6165 = vmatprep.subr.bf16.mxu1 %v6945_v48 }
 0xa02   : > { %2506 = vmatpush1.bf16.msra.mxu0 %v6942_v2  ;;  %v6966_v2 = vld [vmem:[#allocation27 + $0xe8] sm:$0xff]  }
 0xa03   : > { %6193 = vmatprep.subr.bf16.mxu0 %v6946_v42 }
 0xa73   : > { %v2159_v30 = vpop.xlane.xlu0 %2158 }
 0xa74   : > { %v2166_v31 = vmul.f32 0.0078125, %v2159_v30 }
 0xa75   : > { %v2161_v63 = vpop.xlane.xlu1 %2160 }
 0xa76   : > { %v8926_v10 = vsub.f32 %v8911_v14, %v2166_v31  ;;  %v2167_v13 = vmul.f32 0.0078125, %v2161_v63 }
 0xa77   : > { %v2163_v33 = vpop.xlane.xlu0 %2162 }
 0xa78   : > { %v8929_v32 = vsub.f32 %v8915_v18, %v2167_v13  ;;  %v2168_v34 = vmul.f32 0.0078125, %v2163_v33  ;;  %v2174_v35 = vmul.f32 %v8926_v10, %v8926_v10 }
 0xa79   : > { %v2165_v37 = vpop.xlane.xlu1 %2164 }
 0xa7a   : > { %v8934_v8 = vsub.f32 %v8918_v19, %v2168_v34  ;;  %v2169_v36 = vmul.f32 0.0078125, %v2165_v37  ;;  %2178 = vadd.xlane.f32.xlu0 %v2174_v35  ;;  %v2175_v38 = vmul.f32 %v8929_v32, %v8929_v32  ;;  %v5913_v34 = vld [vmem:[#allocation22] ss:$0 sm:$0xff] }
 0xa7c   : > { %v8939_v39 = vsub.f32 %v8921_v20, %v2169_v36  ;;  %2180 = vadd.xlane.f32.xlu1 %v2175_v38  ;;  %v2176_v40 = vmul.f32 %v8934_v8, %v8934_v8 }
 0xa7e   : > { %2182 = vadd.xlane.f32.xlu0 %v2176_v40  ;;  %v2177_v41 = vmul.f32 %v8939_v39, %v8939_v39 }
 0xa80   : > { %2184 = vadd.xlane.f32.xlu1 %v2177_v41 }
 0xb07   : > { %v2179_v3 = vpop.xlane.xlu0 %2178 }
 0xb08   : > { %v2186_v4 = vmul.f32 0.0078125, %v2179_v3  ;;  %v6967_v3 = vld [vmem:[#allocation27 + $0x28] sm:$0xff]  }
 0xb09   : > { %v2181_v7 = vpop.xlane.xlu1 %2180 }
 0xb0a   : > { %v2190_v11 = vadd.f32 1e-05, %v2186_v4  ;;  %v2187_v16 = vmul.f32 0.0078125, %v2181_v7  ;;  %v6968_v4 = vld [vmem:[#allocation27 + $0xa8] sm:$0xff]   ;;  %v6969_v7 = vld [vmem:[#allocation27 + $0x70] sm:$0xff]  }
 0xb0b   : > { %v2183_v17 = vpop.xlane.xlu0 %2182 }
 0xb0c   : > { %7153 = vrsqrt.f32 %v2190_v11  ;;  %v2191_v21 = vadd.f32 1e-05, %v2187_v16  ;;  %v2188_v24 = vmul.f32 0.0078125, %v2183_v17  ;;  %v6970_v11 = vld [vmem:[#allocation27 + $0xf0] sm:$0xff]  }
 0xb0d   : > { %v2185_v22 = vpop.xlane.xlu1 %2184  ;;  %v6971_v16 = vld [vmem:[#allocation27 + $0x30] sm:$0xff]  }
 0xb0e   : > { %7155 = vrsqrt.f32 %v2191_v21  ;;  %v2192_v29 = vadd.f32 1e-05, %v2188_v24  ;;  %v2189_v25 = vmul.f32 0.0078125, %v2185_v22  ;;  %v6972_v17 = vld [vmem:[#allocation27 + $0xb0] sm:$0xff]   ;;  %v2256_v21 = vld [vmem:[#allocation25] sm:$0xf] }
 0xb0f   : > { %v10098_v24 = vsub.s32 3, %v8780_v5  ;;  %v6973_v22 = vld [vmem:[#allocation27 + $0x78] sm:$0xff]   ;;  %v10227_v5 = vmov -1.0  }
 0xb10   : > { %7157 = vrsqrt.f32 %v2192_v29  ;;  %v2193_v28 = vadd.f32 1e-05, %v2189_v25  ;;  %v6974_v29 = vld [vmem:[#allocation27 + $0xf8] sm:$0xff]  }
 0xb11   : > { %v6975_v25 = vld [vmem:[#allocation27 + $0x38] sm:$0xff]  }
 0xb12   : > { %7159 = vrsqrt.f32 %v2193_v28  ;;  %v6976_v28 = vld [vmem:[#allocation27 + $0xb8] sm:$0xff]  }
 0xb16   : > { %v7154_v26 = vpop.eup %7153 }
 0xb17   : > { %v2198_v30 = vmul.f32 %v7154_v26, %v8926_v10  ;;  %v8953_v26 = vrot.slane %v2256_v21, %v8783_v6 }
 0xb18   : > { %v7156_v31 = vpop.eup %7155 }
 0xb19   : > { %v2199_v63 = vmul.f32 %v7156_v31, %v8929_v32  ;;  %v2208_v13 = vmul.f32 %v5912_v27, %v2198_v30  ;;  %v8959_v30 = vrot.slane %v2256_v21, %v8788_v9  ;;  %v8963_v31 = vrot.slane %v2256_v21, %v10098_v24 }
 0xb1a   : > { %v7158_v33 = vpop.eup %7157 }
 0xb1b   : > { %v2209_v35 = vmul.f32 %v5912_v27, %v2199_v63  ;;  %v2218_v36 = vadd.f32 %v5913_v34, %v2208_v13  ;;  %v2200_v40 = vmul.f32 %v7158_v33, %v8934_v8  ;;  %v6948_v8 = vld [vmem:[#allocation27 + $0x80] sm:$0xff]  }
 0xb1c   : > { %v7160_v37 = vpop.eup %7159 }
 0xb1d   : > { %v2219_v38 = vadd.f32 %v5913_v34, %v2209_v35  ;;  %v2201_v41 = vmul.f32 %v7160_v37, %v8939_v39  ;;  %v2210_v46 = vmul.f32 %v5912_v27, %v2200_v40  ;;  %v6949_v39 = vld [vmem:[#allocation27 + $0x48] sm:$0xff]  }
 0xb1f   : > { %v2254_v43 = vpack.c.bf16 %v2219_v38, %v2218_v36  ;;  %v2211_v44 = vmul.f32 %v5912_v27, %v2201_v41  ;;  %v2220_v32 = vadd.f32 %v5913_v34, %v2210_v46  ;;  %v8956_v27 = vrot.slane %v2256_v21, %v8829_v23 }
 0xb21   : > { %2471 = vmatmul.mubr.bf16.vlgmr.msra.gmra.mrb[20].mxu1 %v2254_v43  ;;  %2524 = vmatmul.mubr.bf16.vlgmr.msra.gmra.mrb[16].mxu0 %v2254_v43  ;;  %v2221_v10 = vadd.f32 %v5913_v34, %v2211_v44 }
 0xb22   : > { %2480 = vmatprep.mubr.bf16.mxu1 %v10101_v12  ;;  %2533 = vmatprep.mubr.bf16.mxu0 %v10101_v12 }
 0xb23   : > { %v2255_v47 = vpack.c.bf16 %v2221_v10, %v2220_v32  ;;  %6166 = vmatpush3.bf16.msra.mxu1 %v6947_v51  ;;  %6194 = vmatpush3.bf16.msra.mxu0 %v6948_v8 }
 0xb24   : > { %6167 = vmatprep.subr.bf16.mxu1 %v6949_v39  ;;  %6195 = vmatprep.subr.bf16.mxu0 %v6950_v52 }
 0xb27   : > { %6168 = vmatpush3.bf16.msra.mxu1 %v6951_v53  ;;  %6196 = vmatpush3.bf16.msra.mxu0 %v6952_v49 }
 0xb28   : > { %6169 = vmatprep.subr.bf16.mxu1 %v6953_v54  ;;  %6197 = vmatprep.subr.bf16.mxu0 %v6954_v55 }
 0xb29   : > { %2481 = vmatmul.mubr.bf16.gmra.mrb[24].mxu1 %v2255_v47  ;;  %2534 = vmatmul.mubr.bf16.gmra.mrb[20].mxu0 %v2255_v47 }
 0xb2b   : > { %6170 = vmatpush3.bf16.msra.mxu1 %v6955_v45  ;;  %6198 = vmatpush3.bf16.msra.mxu0 %v6956_v50 }
 0xb2c   : > { %6171 = vmatprep.subr.bf16.mxu1 %v6957_v56  ;;  %6199 = vmatprep.subr.bf16.mxu0 %v6958_v57 }
 0xb2f   : > { %6172 = vmatpush3.bf16.msra.mxu1 %v6959_v58  ;;  %6200 = vmatpush3.bf16.msra.mxu0 %v6960_v59 }
 0xb30   : > { %6173 = vmatprep.subr.bf16.mxu1 %v6961_v60  ;;  %6201 = vmatprep.subr.bf16.mxu0 %v6962_v61 }
 0xb33   : > { %6174 = vmatpush3.bf16.msra.mxu1 %v6963_v62  ;;  %6202 = vmatpush3.bf16.msra.mxu0 %v6964_v0 }
 0xb34   : > { %6175 = vmatprep.subr.bf16.mxu1 %v6965_v1  ;;  %6203 = vmatprep.subr.bf16.mxu0 %v6966_v2 }
 0xb37   : > { %6176 = vmatpush3.bf16.msra.mxu1 %v6967_v3  ;;  %6204 = vmatpush3.bf16.msra.mxu0 %v6968_v4 }
 0xb38   : > { %6177 = vmatprep.subr.bf16.mxu1 %v6969_v7  ;;  %6205 = vmatprep.subr.bf16.mxu0 %v6970_v11 }
 0xb3b   : > { %6178 = vmatpush3.bf16.msra.mxu1 %v6971_v16  ;;  %6206 = vmatpush3.bf16.msra.mxu0 %v6972_v17 }
 0xb3c   : > { %6179 = vmatprep.subr.bf16.mxu1 %v6973_v22  ;;  %6207 = vmatprep.subr.bf16.mxu0 %v6974_v29 }
 0xb3f   : > { %6180 = vmatpush3.bf16.msra.mxu1 %v6975_v25  ;;  %6208 = vmatpush3.bf16.msra.mxu0 %v6976_v28 }
 0xbf4   : > { %v2472_v63 = vpop.f32.mrb[20].mxu1  ;;  %v2525_v13 = vpop.f32.mrb[16].mxu0 }
 0xbf5   : > { %v2473_v33 = vadd.f32 %v2472_v63, %v8953_v26  ;;  %v8967_v34 = vadd.f32 %v2525_v13, %v8956_v27  ;;  %v2474_v35 = vpop.f32.mrb[21].mxu1  ;;  %v2527_v37 = vpop.f32.mrb[17].mxu0 }
 0xbf6   : > { %v8970_v36 = vadd.f32 %v2474_v35, %v8959_v30  ;;  %v8973_v38 = vadd.f32 %v2527_v37, %v8963_v31  ;;  %v2476_v40 = vpop.f32.mrb[22].mxu1  ;;  %v2529_v41 = vpop.f32.mrb[18].mxu0 }
 0xbf7   : > { %v8975_v43 = vmul.f32 0.70710677, %v2473_v33  ;;  %v8978_v44 = vmul.f32 0.70710677, %v8967_v34  ;;  %v2478_v42 = vpop.f32.mrb[23].mxu1  ;;  %v2531_v52 = vpop.f32.mrb[19].mxu0  ;;  %v9004_v58 = vadd.f32 %v2476_v40, %v8953_v26  ;;  %v9017_v1 = vadd.f32 %v2529_v41, %v8956_v27 }
 0xbf8   : > { %v8981_v46 = vmul.f32 0.70710677, %v8970_v36  ;;  %v8989_v48 = vmul.f32 0.70710677, %v8973_v38  ;;  %v9022_v4 = vadd.f32 %v2478_v42, %v8959_v30  ;;  %v9033_v25 = vadd.f32 %v2531_v52, %v8963_v31 }
 0xbf9   : > { %v2608_v10 = vand.u32 2147483647, %v8975_v43  ;;  %v2610_v32 = vand.u32 2147483647, %v8978_v44  ;;  %v9014_v0 = vmul.f32 0.70710677, %v9004_v58 }
 0xbfa   : > { %v8986_v47 = vand.u32 2147483647, %v8981_v46  ;;  %v8997_v45 = vand.u32 2147483647, %v8989_v48  ;;  %v9026_v11 = vmul.f32 0.70710677, %v9017_v1 }
 0xbfb   : > { %v2624_v51 = vmul.f32 0.3275911, %v2608_v10  ;;  %v2626_v8 = vmul.f32 0.3275911, %v2610_v32  ;;  %v2612_v7 = vand.u32 2147483647, %v9014_v0 }
 0xbfc   : > { %v2625_v39 = vmul.f32 0.3275911, %v8986_v47  ;;  %v8992_v54 = vpop.f32.mrb[24].mxu1  ;;  %v8994_v55 = vpop.f32.mrb[20].mxu0  ;;  %v2627_v61 = vmul.f32 0.3275911, %v8997_v45 }
 0xbfd   : > { %v2640_v53 = vadd.f32 1.0, %v2624_v51  ;;  %v2642_v49 = vadd.f32 1.0, %v2626_v8  ;;  %v8999_v50 = vpop.f32.mrb[25].mxu1  ;;  %v9001_v56 = vpop.f32.mrb[21].mxu0  ;;  %v2832_v16 = vsub.f32 0.0, %v2608_v10  ;;  %v2834_v28 = vsub.f32 0.0, %v2610_v32 }
 0xbfe   : > { %v2641_v57 = vadd.f32 1.0, %v2625_v39  ;;  %v9006_v59 = vpop.f32.mrb[26].mxu1  ;;  %v9008_v60 = vpop.f32.mrb[22].mxu0  ;;  %v2643_v3 = vadd.f32 1.0, %v2627_v61  ;;  %v2628_v17 = vmul.f32 0.3275911, %v2612_v7 }
 0xbff   : > { %7161 = vrcp.f32 %v2640_v53  ;;  %v9011_v62 = vpop.f32.mrb[27].mxu1  ;;  %v9019_v2 = vpop.f32.mrb[23].mxu0  ;;  %v2614_v21 = vand.u32 2147483647, %v9026_v11  ;;  %v9030_v22 = vmul.f32 0.70710677, %v9022_v4  ;;  %v2848_v37 = vmul.f32 %v2832_v16, %v2608_v10 }
 0xc00   : > { %7163 = vrcp.f32 %v2642_v49  ;;  %v2644_v29 = vadd.f32 1.0, %v2628_v17  ;;  %v9042_v41 = vmul.f32 0.5, %v2473_v33  ;;  %vm2576_vm12 = vcmp.ge.f32.partialorder %v8975_v43, 0.0 }
 0xc01   : > { %7165 = vrcp.f32 %v2641_v57  ;;  %v2630_v63 = vmul.f32 0.3275911, %v2614_v21  ;;  %v9036_v13 = vand.u32 2147483647, %v9030_v22  ;;  %v2833_v52 = vsub.f32 0.0, %v8986_v47 }
 0xc02   : > { %7167 = vrcp.f32 %v2643_v3  ;;  %v9050_v53 = vmul.f32 0.70710677, %v9033_v25  ;;  %v2850_v49 = vmul.f32 %v2834_v28, %v2610_v32  ;;  %v2864_v61 = vmul.f32 1.442695, %v2848_v37 }
 0xc03   : > { %7169 = vrcp.f32 %v2644_v29  ;;  %v2646_v51 = vadd.f32 1.0, %v2630_v63  ;;  %v2629_v8 = vmul.f32 0.3275911, %v9036_v13  ;;  %v10103_v17 = vmov -1.0  }
 0xc04   : > { %v9055_v16 = vand.u32 2147483647, %v9050_v53  ;;  %v9058_v43 = vsel %vm2576_vm12, 1.0, %v10103_v17  ;;  %vm2578_vm13 = vcmp.ge.f32.partialorder %v8978_v44, 0.0  ;;  %v2836_v28 = vsub.f32 0.0, %v2612_v7 }
 0xc05   : > { %7171 = vrcp.f32 %v2646_v51  ;;  %v2645_v57 = vadd.f32 1.0, %v2629_v8  ;;  %v2868_v8 = vmul.f32 1.442695, %v2850_v49  ;;  %v2835_v24 = vsub.f32 0.0, %v8997_v45 }
 0xc06   : > { %v2631_v37 = vmul.f32 0.3275911, %v9055_v16  ;;  %v2838_v15 = vsub.f32 0.0, %v2614_v21  ;;  %vm2580_vm14 = vcmp.ge.f32.partialorder %v9014_v0, 0.0  ;;  %vm2582_vm15 = vcmp.ge.f32.partialorder %v9026_v11, 0.0 }
 0xc07   : > { %7173 = vrcp.f32 %v2645_v57  ;;  %v9073_v57 = vsel %vm2578_vm13, 1.0, %v10227_v5  ;;  %vm2577_vm0 = vcmp.ge.f32.partialorder %v8981_v46, 0.0  ;;  %vm2581_vm1 = vcmp.ge.f32.partialorder %v9030_v22, 0.0 }
 0xc08   : > { %7175 = vpow2.f32 %v2864_v61  ;;  %v2647_v12 = vadd.f32 1.0, %v2631_v37  ;;  %v2852_v61 = vmul.f32 %v2836_v28, %v2612_v7  ;;  %v9209_v46 = vmul.f32 0.5, %v8973_v38 }
 0xc09   : > { %v9038_v35 = vpop.eup %7161  ;;  %vm2583_vm2 = vcmp.ge.f32.partialorder %v9050_v53, 0.0  ;;  %vm2579_vm4 = vcmp.ge.f32.partialorder %v8989_v48, 0.0 }
 0xc0a   : > { %v9040_v40 = vpop.eup %7163  ;;  %v2688_v42 = vmul.f32 1.0614054, %v9038_v35  ;;  %7177 = vrcp.f32 %v2647_v12 }
 0xc0b   : > { %v2690_v39 = vmul.f32 1.0614054, %v9040_v40  ;;  %v9052_v33 = vpop.eup %7165  ;;  %7179 = vpow2.f32 %v2868_v8 }
 0xc0c   : > { %v2704_v10 = vadd.f32 -1.4531521, %v2688_v42  ;;  %v2689_v63 = vmul.f32 1.0614054, %v9052_v33  ;;  %v9065_v42 = vpop.eup %7167 }
 0xc0d   : > { %v2706_v3 = vadd.f32 -1.4531521, %v2690_v39  ;;  %v2849_v39 = vmul.f32 %v2833_v52, %v8986_v47  ;;  %v9079_v49 = vpop.eup %7169  ;;  %v2691_v52 = vmul.f32 1.0614054, %v9065_v42 }
 0xc0e   : > { %v2720_v29 = vmul.f32 %v9038_v35, %v2704_v10  ;;  %v2692_v44 = vmul.f32 1.0614054, %v9079_v49 }
 0xc0f   : > { %v2722_v32 = vmul.f32 %v9040_v40, %v2706_v3  ;;  %v2705_v3 = vadd.f32 -1.4531521, %v2689_v63  ;;  %v2866_v37 = vmul.f32 1.442695, %v2849_v39  ;;  %v9086_v63 = vmul.f32 0.5, %v9004_v58  ;;  %v9088_v9 = vpop.eup %7171 }
 0xc10   : > { %v2736_v51 = vadd.f32 1.4214138, %v2720_v29  ;;  %v9077_v29 = vadd.f32 %v8992_v54, %v8953_v26  ;;  %v2854_v54 = vmul.f32 %v2838_v15, %v2614_v21  ;;  %v2708_v7 = vadd.f32 -1.4531521, %v2692_v44 }
 0xc11   : > { %v2738_v10 = vadd.f32 1.4214138, %v2722_v32  ;;  %v2721_v6 = vmul.f32 %v9052_v33, %v2705_v3  ;;  %v2694_v28 = vmul.f32 1.0614054, %v9088_v9  ;;  %v9099_v21 = vpop.eup %7173 }
 0xc12   : > { %v2752_v17 = vmul.f32 %v9038_v35, %v2736_v51  ;;  %10228 = vst [vmem:[#allocation58_spill] sm:$0xff] %v9077_v29  ;;  %v2851_v51 = vmul.f32 %v2835_v24, %v8997_v45  ;;  %v9093_v12 = vmul.f32 0.70710677, %v9077_v29  ;;  %v2707_v45 = vadd.f32 -1.4531521, %v2691_v52  ;;  %v7176_v52 = vpop.eup %7175 }
 0xc13   : > { %v2754_v47 = vmul.f32 %v9040_v40, %v2738_v10  ;;  %v2724_v15 = vmul.f32 %v9079_v49, %v2708_v7  ;;  %v2710_v3 = vadd.f32 -1.4531521, %v2694_v28  ;;  %v2737_v44 = vadd.f32 1.4214138, %v2721_v6 }
 0xc14   : > { %v2768_v32 = vadd.f32 -0.28449672, %v2752_v17  ;;  %10229 = vst [vmem:[#allocation59_spill] sm:$0xff] %v9093_v12  ;;  %v2872_v17 = vmul.f32 1.442695, %v2852_v61  ;;  %v2723_v61 = vmul.f32 %v9065_v42, %v2707_v45  ;;  %v9111_v6 = vpop.eup %7177  ;;  %v2596_v28 = vsel %vm2580_vm14, 1.0, %v10227_v5 }
 0xc15   : > { %v2770_v23 = vadd.f32 -0.28449672, %v2754_v47  ;;  %v2870_v58 = vmul.f32 1.442695, %v2851_v51  ;;  %v2876_v47 = vmul.f32 1.442695, %v2854_v54  ;;  %v2726_v51 = vmul.f32 %v9088_v9, %v2710_v3 }
 0xc16   : > { %v2784_v10 = vmul.f32 %v9038_v35, %v2768_v32  ;;  %v2740_v20 = vadd.f32 1.4214138, %v2724_v15  ;;  %7181 = vpow2.f32 %v2872_v17  ;;  %v2753_v17 = vmul.f32 %v9052_v33, %v2737_v44 }
 0xc17   : > { %v2786_v24 = vmul.f32 %v9040_v40, %v2770_v23  ;;  %v9103_v23 = vand.u32 2147483647, %v9093_v12  ;;  %7183 = vpow2.f32 %v2876_v47  ;;  %v2839_v3 = vsub.f32 0.0, %v9055_v16 }
 0xc18   : > { %v2800_v8 = vadd.f32 0.2548296, %v2784_v10  ;;  %v2693_v10 = vmul.f32 1.0614054, %v9099_v21  ;;  %v2756_v54 = vmul.f32 %v9079_v49, %v2740_v20  ;;  %v2739_v20 = vadd.f32 1.4214138, %v2723_v61 }
 0xc19   : > { %v2802_v39 = vadd.f32 0.2548296, %v2786_v24  ;;  %v2695_v19 = vmul.f32 1.0614054, %v9111_v6  ;;  %7185 = vpow2.f32 %v2866_v37  ;;  %v2769_v14 = vadd.f32 -0.28449672, %v2753_v17 }
 0xc1a   : > { %v2816_v32 = vmul.f32 %v9038_v35, %v2800_v8  ;;  %v2837_v35 = vsub.f32 0.0, %v9036_v13  ;;  %v2742_v8 = vadd.f32 1.4214138, %v2726_v51  ;;  %v2709_v45 = vadd.f32 -1.4531521, %v2693_v10 }
 0xc1b   : > { %v2818_v24 = vmul.f32 %v9040_v40, %v2802_v39  ;;  %v2772_v15 = vadd.f32 -0.28449672, %v2756_v54  ;;  %v2632_v40 = vmul.f32 0.3275911, %v9103_v23  ;;  %v7180_v39 = vpop.eup %7179  ;;  %v2711_v54 = vadd.f32 -1.4531521, %v2695_v19 }
 0xc1c   : > { %v2896_v7 = vmul.f32 %v7176_v52, %v2816_v32  ;;  %v2758_v32 = vmul.f32 %v9088_v9, %v2742_v8  ;;  %v2725_v52 = vmul.f32 %v9099_v21, %v2709_v45  ;;  %v2853_v51 = vmul.f32 %v2837_v35, %v9036_v13 }
 0xc1d   : > { %v2898_v18 = vmul.f32 %v7180_v39, %v2818_v24  ;;  %v2788_v47 = vmul.f32 %v9079_v49, %v2772_v15  ;;  %v2855_v61 = vmul.f32 %v2839_v3, %v9055_v16  ;;  %v2648_v29 = vadd.f32 1.0, %v2632_v40 }
 0xc1e   : > { %v2912_v0 = vsub.f32 1.0, %v2896_v7  ;;  %v2774_v44 = vadd.f32 -0.28449672, %v2758_v32  ;;  %v2741_v10 = vadd.f32 1.4214138, %v2725_v52  ;;  %v2755_v8 = vmul.f32 %v9065_v42, %v2739_v20 }
 0xc1f   : > { %v2804_v12 = vadd.f32 0.2548296, %v2788_v47  ;;  %v2727_v24 = vmul.f32 %v9111_v6, %v2711_v54  ;;  %v2914_v15 = vsub.f32 1.0, %v2898_v18  ;;  %7187 = vpow2.f32 %v2870_v58 }
 0xc20   : > { %v2790_v45 = vmul.f32 %v9088_v9, %v2774_v44  ;;  %v2757_v7 = vmul.f32 %v9099_v21, %v2741_v10  ;;  %v2874_v37 = vmul.f32 1.442695, %v2853_v51  ;;  %v7182_v35 = vpop.eup %7181  ;;  %v2928_v19 = vmul.f32 %v2912_v0, %v9058_v43 }
 0xc21   : > { %v2820_v13 = vmul.f32 %v9079_v49, %v2804_v12  ;;  %v2743_v16 = vadd.f32 1.4214138, %v2727_v24  ;;  %v2878_v40 = vmul.f32 1.442695, %v2855_v61  ;;  %7189 = vrcp.f32 %v2648_v29  ;;  %v7184_v32 = vpop.eup %7183 }
 0xc22   : > { %v2806_v17 = vadd.f32 0.2548296, %v2790_v45  ;;  %v2773_v39 = vadd.f32 -0.28449672, %v2757_v7  ;;  %v9133_v20 = vadd.f32 %v8994_v55, %v8956_v27  ;;  %v2785_v18 = vmul.f32 %v9052_v33, %v2769_v14 }
 0xc23   : > { %v2900_v3 = vmul.f32 %v7182_v35, %v2820_v13  ;;  %v2771_v58 = vadd.f32 -0.28449672, %v2755_v8  ;;  %v2759_v12 = vmul.f32 %v9111_v6, %v2743_v16  ;;  %7191 = vpow2.f32 %v2874_v37  ;;  %v7186_v44 = vpop.eup %7185 }
 0xc24   : > { %v2822_v49 = vmul.f32 %v9088_v9, %v2806_v17  ;;  %v2789_v43 = vmul.f32 %v9099_v21, %v2773_v39  ;;  %v2944_v0 = vadd.f32 1.0, %v2928_v19  ;;  %v2930_v29 = vmul.f32 %v2914_v15, %v9073_v57 }
 0xc25   : > { %v2916_v52 = vsub.f32 1.0, %v2900_v3  ;;  %v2775_v55 = vadd.f32 -0.28449672, %v2759_v12  ;;  %7193 = vpow2.f32 %v2878_v40  ;;  %v9142_v14 = vmul.f32 0.70710677, %v9133_v20 }
 0xc26   : > { %v2902_v47 = vmul.f32 %v7184_v32, %v2822_v49  ;;  %v9146_v9 = vadd.f32 %v8999_v50, %v8959_v30  ;;  %v2801_v10 = vadd.f32 0.2548296, %v2785_v18  ;;  %v2787_v54 = vmul.f32 %v9065_v42, %v2771_v58 }
 0xc27   : > { %v2932_v51 = vmul.f32 %v2916_v52, %v2596_v28  ;;  %v2791_v8 = vmul.f32 %v9111_v6, %v2775_v55  ;;  %v2598_v57 = vsel %vm2582_vm15, 1.0, %v10227_v5  ;;  %v2805_v28 = vadd.f32 0.2548296, %v2789_v43 }
 0xc28   : > { %v2918_v61 = vsub.f32 1.0, %v2902_v47  ;;  %v9154_v7 = vand.u32 2147483647, %v9142_v14  ;;  %v9157_v24 = vmul.f32 %v2944_v0, %v9042_v41  ;;  %v2546_v50 = vmul.f32 0.5, %v8967_v34 }
 0xc29   : > { %v2948_v45 = vadd.f32 1.0, %v2932_v51  ;;  %v2946_v15 = vadd.f32 1.0, %v2930_v29  ;;  %v7188_v37 = vpop.eup %7187  ;;  %v2807_v19 = vadd.f32 0.2548296, %v2791_v8  ;;  %v9165_v11 = vmul.f32 0.70710677, %v9146_v9 }
 0xc2a   : > { %v2934_v13 = vmul.f32 %v2918_v61, %v2598_v57  ;;  %v2634_v17 = vmul.f32 0.3275911, %v9154_v7  ;;  %v2817_v39 = vmul.f32 %v9052_v33, %v2801_v10  ;;  %v2803_v16 = vadd.f32 0.2548296, %v2787_v54 }
 0xc2b   : > { %v9161_v35 = vmul.f32 %v2948_v45, %v9086_v63  ;;  %v2550_v41 = vmul.f32 0.5, %v9017_v1  ;;  %v9169_v40 = vpop.eup %7189  ;;  %v2821_v63 = vmul.f32 %v9099_v21, %v2805_v28  ;;  %v9174_v18 = vmul.f32 %v2946_v15, %v2546_v50 }
 0xc2c   : > { %v2950_v3 = vadd.f32 1.0, %v2934_v13  ;;  %v2650_v32 = vadd.f32 1.0, %v2634_v17  ;;  %v2696_v49 = vmul.f32 1.0614054, %v9169_v40  ;;  %v2823_v33 = vmul.f32 %v9111_v6, %v2807_v19 }
 0xc2d   : > { %v3040_v34 = vpack.c.bf16 %v9161_v35, %v9157_v24  ;;  %v7192_v12 = vpop.eup %7191  ;;  %v9181_v1 = vand.u32 2147483647, %v9165_v11  ;;  %v9185_v52 = vadd.f32 %v9001_v56, %v8963_v31  ;;  %v2897_v43 = vmul.f32 %v7186_v44, %v2817_v39 }
 0xc2e   : > { %v9176_v58 = vmul.f32 %v2950_v3, %v2550_v41  ;;  %7195 = vrcp.f32 %v2650_v32  ;;  %v2819_v21 = vmul.f32 %v9065_v42, %v2803_v16  ;;  %v2901_v47 = vmul.f32 %v7192_v12, %v2821_v63 }
 0xc2f   : > { %v7194_v29 = vpop.eup %7193  ;;  %v2633_v55 = vmul.f32 0.3275911, %v9181_v1  ;;  %v2545_v6 = vmul.f32 0.5, %v8970_v36  ;;  %v2712_v51 = vadd.f32 -1.4531521, %v2696_v49  ;;  %v9198_v42 = vadd.f32 %v9006_v59, %v8953_v26 }
 0xc30   : > { %v3042_v0 = vpack.c.bf16 %v9176_v58, %v9174_v18  ;;  %v9194_v10 = vmul.f32 0.70710677, %v9185_v52  ;;  %v2903_v56 = vmul.f32 %v7194_v29, %v2823_v33  ;;  %v9202_v44 = vadd.f32 %v9008_v60, %v8956_v27 }
 0xc31   : > { %v2649_v54 = vadd.f32 1.0, %v2633_v55  ;;  %v2913_v61 = vsub.f32 1.0, %v2897_v43  ;;  %v2899_v8 = vmul.f32 %v7188_v37, %v2819_v21  ;;  %v2917_v45 = vsub.f32 1.0, %v2901_v47 }
 0xc32   : > { %v9206_v36 = vand.u32 2147483647, %v9194_v10  ;;  %v2593_v26 = vsel %vm2577_vm0, 1.0, %v10227_v5  ;;  %v2728_v27 = vmul.f32 %v9169_v40, %v2712_v51  ;;  %v2597_v60 = vsel %vm2581_vm1, 1.0, %v10227_v5 }
 0xc33   : > { %7197 = vrcp.f32 %v2649_v54  ;;  %v2919_v22 = vsub.f32 1.0, %v2903_v56  ;;  %v9218_v57 = vmul.f32 0.70710677, %v9198_v42  ;;  %v9221_v38 = vmul.f32 0.70710677, %v9202_v44 }
 0xc34   : > { %v2635_v59 = vmul.f32 0.3275911, %v9206_v36  ;;  %v2929_v28 = vmul.f32 %v2913_v61, %v2593_v26  ;;  %v2915_v53 = vsub.f32 1.0, %v2899_v8  ;;  %v2599_v50 = vsel %vm2583_vm2, 1.0, %v10227_v5 }
 0xc35   : > { %v2933_v37 = vmul.f32 %v2917_v45, %v2597_v60  ;;  %v2840_v19 = vsub.f32 0.0, %v9103_v23  ;;  %v2620_v17 = vand.u32 2147483647, %v9218_v57  ;;  %v9229_v39 = vand.u32 2147483647, %v9221_v38 }
 0xc36   : > { %v2651_v15 = vadd.f32 1.0, %v2635_v59  ;;  %v2744_v16 = vadd.f32 1.4214138, %v2728_v27  ;;  %v9234_v3 = vadd.f32 %v9011_v62, %v8959_v30  ;;  %v2595_v63 = vsel %vm2579_vm4, 1.0, %v10227_v5 }
 0xc37   : > { %v2935_v32 = vmul.f32 %v2919_v22, %v2599_v50  ;;  %v2842_v49 = vsub.f32 0.0, %v9154_v7  ;;  %v2636_v12 = vmul.f32 0.3275911, %v2620_v17  ;;  %v2945_v33 = vadd.f32 1.0, %v2929_v28 }
 0xc38   : > { %v9224_v13 = vpop.eup %7195  ;;  %7199 = vrcp.f32 %v2651_v15  ;;  %v2549_v43 = vmul.f32 0.5, %v9022_v4  ;;  %v2638_v29 = vmul.f32 0.3275911, %v9229_v39  ;;  %v2931_v47 = vmul.f32 %v2915_v53, %v2595_v63 }
 0xc39   : > { %v2698_v41 = vmul.f32 1.0614054, %v9224_v13  ;;  %v2949_v55 = vadd.f32 1.0, %v2933_v37  ;;  %v2856_v51 = vmul.f32 %v2840_v19, %v9103_v23  ;;  %v2652_v30 = vadd.f32 1.0, %v2636_v12 }
 0xc3a   : > { %v2760_v62 = vmul.f32 %v9169_v40, %v2744_v16  ;;  %v2654_v56 = vadd.f32 1.0, %v2638_v29  ;;  %v9246_v54 = vmul.f32 0.70710677, %v9234_v3  ;;  %v2951_v8 = vadd.f32 1.0, %v2935_v32 }
 0xc3b   : > { %v2714_v21 = vadd.f32 -1.4531521, %v2698_v41  ;;  %v2858_v4 = vmul.f32 %v2842_v49, %v9154_v7  ;;  %v2841_v45 = vsub.f32 0.0, %v9181_v1  ;;  %7201 = vrcp.f32 %v2652_v30 }
 0xc3c   : > { %7203 = vrcp.f32 %v2654_v56  ;;  %v9255_v27 = vadd.f32 %v9019_v2, %v8963_v31  ;;  %v2961_v59 = vmul.f32 %v2945_v33, %v2545_v6  ;;  %v2965_v60 = vmul.f32 %v2949_v55, %v2549_v43 }
 0xc3d   : > { %v2730_v48 = vmul.f32 %v9224_v13, %v2714_v21  ;;  %v9248_v61 = vpop.eup %7197  ;;  %v2551_v22 = vmul.f32 0.5, %v9033_v25  ;;  %v9259_v28 = vand.u32 2147483647, %v9246_v54  ;;  %v2776_v53 = vadd.f32 -0.28449672, %v2760_v62 }
 0xc3e   : > { %v2697_v23 = vmul.f32 1.0614054, %v9248_v61  ;;  %v2880_v7 = vmul.f32 1.442695, %v2856_v51  ;;  %v2947_v37 = vadd.f32 1.0, %v2931_v47  ;;  %v2844_v16 = vsub.f32 0.0, %v2620_v17 }
 0xc3f   : > { %v2746_v26 = vadd.f32 1.4214138, %v2730_v48  ;;  %v2884_v19 = vmul.f32 1.442695, %v2858_v4  ;;  %v2637_v41 = vmul.f32 0.3275911, %v9259_v28  ;;  %v2967_v31 = vmul.f32 %v2951_v8, %v2551_v22 }
 0xc40   : > { %v2713_v15 = vadd.f32 -1.4531521, %v2697_v23  ;;  %v2857_v25 = vmul.f32 %v2841_v45, %v9181_v1  ;;  %v9268_v6 = vmul.f32 0.70710677, %v9255_v27  ;;  %v3041_v33 = vpack.c.bf16 %v2965_v60, %v2961_v59 }
 0xc41   : > { %v2762_v50 = vmul.f32 %v9224_v13, %v2746_v26  ;;  %v2653_v12 = vadd.f32 1.0, %v2637_v41  ;;  %v2792_v43 = vmul.f32 %v9169_v40, %v2776_v53  ;;  %7205 = vpow2.f32 %v2880_v7  ;;  %v10230_v7 = vld [vmem:[#allocation58_spill] sm:$0xff] }
 0xc42   : > { %v9263_v63 = vpop.eup %7199  ;;  %v2729_v2 = vmul.f32 %v9248_v61, %v2713_v15  ;;  %v2846_v29 = vsub.f32 0.0, %v9229_v39  ;;  %v2963_v47 = vmul.f32 %v2947_v37, %v9209_v46  ;;  %v2860_v51 = vmul.f32 %v2844_v16, %v2620_v17  ;;  %3272 = vmatprep.mubr.bf16.mxu1 %v3041_v33 }
 0xc43   : > { %v2778_v32 = vadd.f32 -0.28449672, %v2762_v50  ;;  %v2699_v49 = vmul.f32 1.0614054, %v9263_v63  ;;  %7207 = vrcp.f32 %v2653_v12  ;;  %v2882_v30 = vmul.f32 1.442695, %v2857_v25  ;;  %3273 = vmatmul.mubr.bf16.vlgmr.msra.gmra.mrb[28].mxu1 %v3040_v34 }
 0xc44   : > { %v2745_v21 = vadd.f32 1.4214138, %v2729_v2  ;;  %7209 = vpow2.f32 %v2884_v19  ;;  %v9276_v62 = vand.u32 2147483647, %v9268_v6  ;;  %v2843_v17 = vsub.f32 0.0, %v9206_v36 }
 0xc45   : > { %v2715_v55 = vadd.f32 -1.4531521, %v2699_v49  ;;  %v9281_v48 = vpop.eup %7201  ;;  %v2794_v56 = vmul.f32 %v9224_v13, %v2778_v32  ;;  %v3043_v8 = vpack.c.bf16 %v2967_v31, %v2963_v47  ;;  %v2808_v45 = vadd.f32 0.2548296, %v2792_v43  ;;  %v10231_v31 = vld [vmem:[#allocation59_spill] sm:$0xff] }
 0xc46   : > { %v2761_v1 = vmul.f32 %v9248_v61, %v2745_v21  ;;  %v9286_v4 = vpop.eup %7203  ;;  %v2700_v26 = vmul.f32 1.0614054, %v9281_v48  ;;  %v2862_v23 = vmul.f32 %v2846_v29, %v9229_v39  ;;  %v2639_v59 = vmul.f32 0.3275911, %v9276_v62 }
 0xc47   : > { %v2731_v46 = vmul.f32 %v9263_v63, %v2715_v55  ;;  %v2888_v35 = vmul.f32 1.442695, %v2860_v51  ;;  %v2702_v34 = vmul.f32 1.0614054, %v9286_v4  ;;  %3321 = vmatprep.mubr.bf16.mxu0 %v3043_v8  ;;  %v9296_v50 = vmul.f32 0.5, %v10230_v7 }
 0xc48   : > { %v2777_v60 = vadd.f32 -0.28449672, %v2761_v1  ;;  %v2716_v22 = vadd.f32 -1.4531521, %v2700_v26  ;;  %v2655_v53 = vadd.f32 1.0, %v2639_v59  ;;  %3322 = vmatmul.mubr.bf16.vlgmr.msra.gmra.mrb[24].mxu0 %v3042_v0  ;;  %v2845_v39 = vsub.f32 0.0, %v9259_v28 }
 0xc49   : > { %v2747_v24 = vadd.f32 1.4214138, %v2731_v46  ;;  %v2810_v15 = vadd.f32 0.2548296, %v2794_v56  ;;  %v2718_v37 = vadd.f32 -1.4531521, %v2702_v34  ;;  %v2859_v19 = vmul.f32 %v2843_v17, %v9206_v36 }
 0xc4a   : > { %v2732_v16 = vmul.f32 %v9281_v48, %v2716_v22  ;;  %v2892_v41 = vmul.f32 1.442695, %v2862_v23  ;;  %7211 = vrcp.f32 %v2655_v53  ;;  %vm2584_vm5 = vcmp.ge.f32.partialorder %v10231_v31, 0.0 }
 0xc4b   : > { %v2824_v2 = vmul.f32 %v9169_v40, %v2808_v45  ;;  %v2763_v18 = vmul.f32 %v9263_v63, %v2747_v24  ;;  %v2734_v58 = vmul.f32 %v9286_v4, %v2718_v37  ;;  %v7206_v0 = vpop.eup %7205  ;;  %vm2586_vm6 = vcmp.ge.f32.partialorder %v9142_v14, 0.0 }
 0xc4c   : > { %v2793_v25 = vmul.f32 %v9248_v61, %v2777_v60  ;;  %7213 = vpow2.f32 %v2882_v30  ;;  %v2748_v32 = vadd.f32 1.4214138, %v2732_v16  ;;  %v2826_v49 = vmul.f32 %v9224_v13, %v2810_v15 }
 0xc4d   : > { %v9307_v36 = vpop.eup %7207  ;;  %7215 = vpow2.f32 %v2888_v35  ;;  %v2750_v12 = vadd.f32 1.4214138, %v2734_v58  ;;  %v2861_v33 = vmul.f32 %v2845_v39, %v9259_v28  ;;  %v2886_v43 = vmul.f32 1.442695, %v2859_v19 }
 0xc4e   : > { %v7210_v40 = vpop.eup %7209  ;;  %v2764_v21 = vmul.f32 %v9281_v48, %v2748_v32  ;;  %7217 = vpow2.f32 %v2892_v41  ;;  %v2701_v29 = vmul.f32 1.0614054, %v9307_v36  ;;  %v2904_v47 = vmul.f32 %v7206_v0, %v2824_v2 }
 0xc4f   : > { %v2779_v55 = vadd.f32 -0.28449672, %v2763_v18  ;;  %v2766_v51 = vmul.f32 %v9286_v4, %v2750_v12  ;;  %v2847_v1 = vsub.f32 0.0, %v9276_v62  ;;  %v2809_v30 = vadd.f32 0.2548296, %v2793_v25 }
 0xc50   : > { %v2780_v56 = vadd.f32 -0.28449672, %v2764_v21  ;;  %v2717_v13 = vadd.f32 -1.4531521, %v2701_v29  ;;  %v2600_v28 = vsel %vm2584_vm5, 1.0, %v10227_v5  ;;  %v2906_v46 = vmul.f32 %v7210_v40, %v2826_v49 }
 0xc51   : > { %v2782_v17 = vadd.f32 -0.28449672, %v2766_v51  ;;  %v2890_v8 = vmul.f32 1.442695, %v2861_v33  ;;  %v9319_v45 = vmul.f32 0.5, %v9133_v20  ;;  %v2602_v26 = vsel %vm2586_vm6, 1.0, %v10227_v5 }
 0xc52   : > { %v2796_v23 = vmul.f32 %v9281_v48, %v2780_v56  ;;  %v2733_v59 = vmul.f32 %v9307_v36, %v2717_v13  ;;  %v2920_v24 = vsub.f32 1.0, %v2904_v47  ;;  %v2795_v35 = vmul.f32 %v9263_v63, %v2779_v55 }
 0xc53   : > { %7219 = vpow2.f32 %v2886_v43  ;;  %v2798_v34 = vmul.f32 %v9286_v4, %v2782_v17  ;;  %v2825_v22 = vmul.f32 %v9248_v61, %v2809_v30  ;;  %v2863_v7 = vmul.f32 %v2847_v1, %v9276_v62 }
 0xc54   : > { %v9328_v60 = vpop.eup %7211  ;;  %v2812_v20 = vadd.f32 0.2548296, %v2796_v23  ;;  %v2749_v53 = vadd.f32 1.4214138, %v2733_v59  ;;  %v2922_v14 = vsub.f32 1.0, %v2906_v46  ;;  %7221 = vpow2.f32 %v2890_v8 }
 0xc55   : > { %v2814_v15 = vadd.f32 0.2548296, %v2798_v34  ;;  %v2703_v37 = vmul.f32 1.0614054, %v9328_v60  ;;  %vm2588_vm7 = vcmp.ge.f32.partialorder %v9218_v57, 0.0  ;;  %vm2590_vm8 = vcmp.ge.f32.partialorder %v9221_v38, 0.0 }
 0xc56   : > { %v7214_v39 = vpop.eup %7213  ;;  %v2828_v19 = vmul.f32 %v9281_v48, %v2812_v20  ;;  %v2765_v16 = vmul.f32 %v9307_v36, %v2749_v53  ;;  %v2936_v61 = vmul.f32 %v2920_v24, %v2600_v28  ;;  %v2811_v31 = vadd.f32 0.2548296, %v2795_v35 }
 0xc57   : > { %v7216_v41 = vpop.eup %7215  ;;  %v2830_v2 = vmul.f32 %v9286_v4, %v2814_v15  ;;  %v2719_v62 = vadd.f32 -1.4531521, %v2703_v37  ;;  %v2905_v58 = vmul.f32 %v7214_v39, %v2825_v22  ;;  %v2894_v32 = vmul.f32 1.442695, %v2863_v7 }
 0xc58   : > { %v7218_v18 = vpop.eup %7217  ;;  %v2908_v0 = vmul.f32 %v7216_v41, %v2828_v19  ;;  %v2781_v25 = vadd.f32 -0.28449672, %v2765_v16  ;;  %v2938_v49 = vmul.f32 %v2922_v14, %v2602_v26  ;;  %vm2585_vm9 = vcmp.ge.f32.partialorder %v9165_v11, 0.0 }
 0xc59   : > { %v2910_v12 = vmul.f32 %v7218_v18, %v2830_v2  ;;  %v2735_v48 = vmul.f32 %v9328_v60, %v2719_v62  ;;  %v2604_v33 = vsel %vm2588_vm7, 1.0, %v10227_v5  ;;  %v2606_v4 = vsel %vm2590_vm8, 1.0, %v10227_v5 }
 0xc5a   : > { %v2924_v40 = vsub.f32 1.0, %v2908_v0  ;;  %v2797_v43 = vmul.f32 %v9307_v36, %v2781_v25  ;;  %v2952_v21 = vadd.f32 1.0, %v2936_v61  ;;  %v2827_v29 = vmul.f32 %v9263_v63, %v2811_v31 }
 0xc5b   : > { %v2926_v47 = vsub.f32 1.0, %v2910_v12  ;;  %v2751_v55 = vadd.f32 1.4214138, %v2735_v48  ;;  %v2921_v51 = vsub.f32 1.0, %v2905_v58  ;;  %7223 = vpow2.f32 %v2894_v32 }
 0xc5c   : > { %v2940_v1 = vmul.f32 %v2924_v40, %v2604_v33  ;;  %v2813_v30 = vadd.f32 0.2548296, %v2797_v43  ;;  %v2954_v13 = vadd.f32 1.0, %v2938_v49  ;;  %v2601_v57 = vsel %vm2585_vm9, 1.0, %v10227_v5 }
 0xc5d   : > { %v7220_v56 = vpop.eup %7219  ;;  %v2942_v28 = vmul.f32 %v2926_v47, %v2606_v4  ;;  %v2767_v38 = vmul.f32 %v9328_v60, %v2751_v55  ;;  %v2556_v46 = vmul.f32 0.5, %v9198_v42  ;;  %v2558_v63 = vmul.f32 0.5, %v9202_v44 }
 0xc5e   : > { %v2956_v17 = vadd.f32 1.0, %v2940_v1  ;;  %v2829_v8 = vmul.f32 %v9307_v36, %v2813_v30  ;;  %v7222_v26 = vpop.eup %7221  ;;  %v2907_v23 = vmul.f32 %v7220_v56, %v2827_v29  ;;  %vm2589_vm10 = vcmp.ge.f32.partialorder %v9246_v54, 0.0  ;;  %v5978_v56 = vld [vmem:[#allocation28] ss:$0 sm:$0xff] }
 0xc5f   : > { %v2958_v59 = vadd.f32 1.0, %v2942_v28  ;;  %v2783_v24 = vadd.f32 -0.28449672, %v2767_v38  ;;  %v2968_v35 = vmul.f32 %v2952_v21, %v9296_v50  ;;  %v2937_v11 = vmul.f32 %v2921_v51, %v2601_v57  ;;  %v10234_v38 = vld [vmem:[#allocation55_spill] sm:$0xff] }
 0xc60   : > { %v2972_v34 = vmul.f32 %v2956_v17, %v2556_v46  ;;  %v2909_v22 = vmul.f32 %v7222_v26, %v2829_v8  ;;  %v2970_v20 = vmul.f32 %v2954_v13, %v9319_v45  ;;  %vm2587_vm11 = vcmp.ge.f32.partialorder %v9194_v10, 0.0  ;;  %v10233_v13 = vld [vmem:[#allocation54_spill] sm:$0xff] }
 0xc61   : > { %v2974_v53 = vmul.f32 %v2958_v59, %v2558_v63  ;;  %v2799_v42 = vmul.f32 %v9328_v60, %v2783_v24  ;;  %v2923_v7 = vsub.f32 1.0, %v2907_v23  ;;  %v2605_v14 = vsel %vm2589_vm10, 1.0, %v10227_v5 }
 0xc62   : > { %v2925_v44 = vsub.f32 1.0, %v2909_v22  ;;  %v3044_v36 = vpack.c.bf16 %v2972_v34, %v2968_v35  ;;  %v2953_v37 = vadd.f32 1.0, %v2937_v11  ;;  %v2553_v16 = vmul.f32 0.5, %v9146_v9 }
 0xc63   : > { %v2815_v15 = vadd.f32 0.2548296, %v2799_v42  ;;  %v3046_v54 = vpack.c.bf16 %v2974_v53, %v2970_v20  ;;  %v2603_v45 = vsel %vm2587_vm11, 1.0, %v10227_v5  ;;  %v2557_v41 = vmul.f32 0.5, %v9234_v3 }
 0xc64   : > { %v2941_v39 = vmul.f32 %v2925_v44, %v2605_v14  ;;  %v2939_v10 = vmul.f32 %v2923_v7, %v2603_v45  ;;  %vm2591_vm12 = vcmp.ge.f32.partialorder %v9268_v6, 0.0  ;;  %v2969_v2 = vmul.f32 %v2953_v37, %v2553_v16  ;;  %v6980_v16 = vld [vmem:[#allocation15 + $0xc0] ss:$12 sps:$4 sm:$0xff]   ;;  %v6982_v45 = vld [vmem:[#allocation15 + $0xc4] ss:$12 sps:$4 sm:$0xff]  }
 0xc65   : > { %v2831_v50 = vmul.f32 %v9328_v60, %v2815_v15  ;;  %v7224_v19 = vpop.eup %7223  ;;  %v2607_v58 = vsel %vm2591_vm12, 1.0, %v10227_v5  ;;  %v2555_v9 = vmul.f32 0.5, %v9185_v52  ;;  %v2559_v32 = vmul.f32 0.5, %v9255_v27  ;;  %v10236_v15 = vld [vmem:[#allocation57_spill] sm:$0xff]  ;;  %3777 = vmatprep.subr.bf16.mxu0 %v6982_v45  ;;  %v5981_v45 = vld [vmem:[#allocation10 + $0x1] ss:$0 sm:$0xff] }
 0xc66   : > { %v2957_v61 = vadd.f32 1.0, %v2941_v39  ;;  %v2955_v25 = vadd.f32 1.0, %v2939_v10  ;;  %v10232_v3 = vmov 0   ;;  %v6983_v10 = vld [vmem:[#allocation12 + $0x90] ss:$8 sps:$4 sm:$0xff]   ;;  %3778 = vmatpush1.bf16.msra.mxu0 %v6980_v16 }
 0xc67   : > { %v2911_v31 = vmul.f32 %v7224_v19, %v2831_v50  ;;  %v6977_v50 = vld [vmem:[#allocation12 + $0x80] ss:$8 sps:$4 sm:$0xff]   ;;  %v6979_v19 = vld [vmem:[#allocation12 + $0x84] ss:$8 sps:$4 sm:$0xff]  }
 0xc68   : > { %v2973_v62 = vmul.f32 %v2957_v61, %v2557_v41  ;;  %v2971_v12 = vmul.f32 %v2955_v25, %v2555_v9  ;;  %v6985_v41 = vld [vmem:[#allocation12 + $0x94] ss:$8 sps:$4 sm:$0xff]   ;;  %3533 = vmatprep.subr.bf16.mxu1 %v6979_v19  ;;  %v6988_v61 = vld [vmem:[#allocation15 + $0xdc] ss:$12 sps:$4 sm:$0xff]  }
 0xc69   : > { %v2927_v18 = vsub.f32 1.0, %v2911_v31  ;;  %3534 = vmatpush1.bf16.msra.mxu1 %v6977_v50  ;;  %v6986_v31 = vld [vmem:[#allocation15 + $0xd8] ss:$12 sps:$4 sm:$0xff]   ;;  %3779 = vmatprep.subr.bf16.mxu0 %v6988_v61 }
 0xc6a   : > { %v3045_v0 = vpack.c.bf16 %v2973_v62, %v2969_v2  ;;  %3535 = vmatprep.subr.bf16.mxu1 %v6985_v41  ;;  %3780 = vmatpush1.bf16.msra.mxu0 %v6986_v31  ;;  %v7025_v31 = vld [vmem:[#allocation15 + $0xc8] ss:$12 sps:$4 sm:$0xff]  }
 0xc6b   : > { %v2943_v60 = vmul.f32 %v2927_v18, %v2607_v58 }
 0xc6c   : > { %3280 = vmatprep.mubr.bf16.mxu1 %v3045_v0 }
 0xc6d   : > { %v2959_v49 = vadd.f32 1.0, %v2943_v60  ;;  %3281 = vmatmul.mubr.bf16.gmra.mrb[32].mxu1 %v3044_v36  ;;  %v10235_v36 = vld [vmem:[#allocation56_spill] sm:$0xff] }
 0xc6e   : > { %3565 = vmatprep.mubr.bf16.mxu1 %v10232_v3  ;;  %3536 = vmatpush1.bf16.msra.mxu1 %v6983_v10 }
 0xc6f   : > { %v2975_v6 = vmul.f32 %v2959_v49, %v2559_v32  ;;  %v6989_v32 = vld [vmem:[#allocation12 + $0xa0] ss:$8 sps:$4 sm:$0xff]   ;;  %v6991_v49 = vld [vmem:[#allocation12 + $0xa4] ss:$8 sps:$4 sm:$0xff]  }
 0xc70   : > { %3537 = vmatprep.subr.bf16.mxu1 %v6991_v49 }
 0xc71   : > { %v3047_v48 = vpack.c.bf16 %v2975_v6, %v2971_v12  ;;  %v6992_v12 = vld [vmem:[#allocation15 + $0xf0] ss:$12 sps:$4 sm:$0xff]   ;;  %v6994_v6 = vld [vmem:[#allocation15 + $0xf4] ss:$12 sps:$4 sm:$0xff]  }
 0xc72   : > { %3538 = vmatpush1.bf16.msra.mxu1 %v6989_v32  ;;  %3781 = vmatprep.subr.bf16.mxu0 %v6994_v6  ;;  %v7031_v6 = vld [vmem:[#allocation15 + $0x158] ss:$12 sps:$4 sm:$0xff]  }
 0xc73   : > { %3329 = vmatprep.mubr.bf16.mxu0 %v3047_v48  ;;  %v6997_v48 = vld [vmem:[#allocation12 + $0xb4] ss:$8 sps:$4 sm:$0xff]   ;;  %3782 = vmatpush1.bf16.msra.mxu0 %v6992_v12 }
 0xc74   : > { %3330 = vmatmul.mubr.bf16.gmra.mrb[28].mxu0 %v3046_v54  ;;  %3539 = vmatprep.subr.bf16.mxu1 %v6997_v48 }
 0xc75   : > { %3809 = vmatprep.mubr.bf16.mxu0 %v10232_v3 }
 0xd16   : > { %v6181_v33 = vpop.f32.mrb[28].mxu1 }
 0xd17   : > { %v6182_v40 = vpop.f32.mrb[29].mxu1 }
 0xd18   : > { %v6183_v4 = vadd.f32 %v6182_v40, %v6181_v33  ;;  %v6184_v43 = vpop.f32.mrb[30].mxu1  ;;  %v6995_v33 = vld [vmem:[#allocation12 + $0xb0] ss:$8 sps:$4 sm:$0xff]  }
 0xd19   : > { %v6185_v21 = vpop.f32.mrb[31].mxu1  ;;  %v7000_v40 = vld [vmem:[#allocation15 + $0x10c] ss:$12 sps:$4 sm:$0xff]   ;;  %3540 = vmatpush1.bf16.msra.mxu1 %v6995_v33  ;;  %v7032_v33 = vld [vmem:[#allocation15 + $0x170] ss:$12 sps:$4 sm:$0xff]  }
 0xd1a   : > { %v6186_v52 = vadd.f32 %v6185_v21, %v6184_v43  ;;  %3783 = vmatprep.subr.bf16.mxu0 %v7000_v40  ;;  %v7321_v40 = vld [vmem:[#allocation9] sm:$0xff]  }
 0xd1b   : > { %v6209_v29 = vpop.f32.mrb[24].mxu0 }
 0xd1c   : > { %v6210_v47 = vpop.f32.mrb[25].mxu0 }
 0xd1d   : > { %v6211_v27 = vadd.f32 %v6210_v47, %v6209_v29  ;;  %v6212_v55 = vpop.f32.mrb[26].mxu0 }
 0xd1e   : > { %v6213_v51 = vpop.f32.mrb[27].mxu0 }
 0xd1f   : > { %v3324_v1 = vadd.f32 %v6211_v27, %v6183_v4  ;;  %v6214_v30 = vadd.f32 %v6213_v51, %v6212_v55  ;;  %v6998_v4 = vld [vmem:[#allocation15 + $0x108] ss:$12 sps:$4 sm:$0xff]  }
 0xd20   : > { %3784 = vmatpush1.bf16.msra.mxu0 %v6998_v4 }
 0xd21   : > { %v3338_v57 = vadd.f32 %v3324_v1, %v10233_v13  ;;  %v3327_v28 = vadd.f32 %v6214_v30, %v6186_v52  ;;  %v7003_v1 = vld [vmem:[#allocation12 + $0xc4] ss:$8 sps:$4 sm:$0xff]   ;;  %v7001_v30 = vld [vmem:[#allocation12 + $0xc0] ss:$8 sps:$4 sm:$0xff]  }
 0xd22   : > { %3541 = vmatprep.subr.bf16.mxu1 %v7003_v1  ;;  %v7004_v13 = vld [vmem:[#allocation15 + $0x120] ss:$12 sps:$4 sm:$0xff]  }
 0xd23   : > { %v3339_v46 = vadd.f32 %v3327_v28, %v10234_v38  ;;  %v9373_v17 = vadd.f32 %v5978_v56, %v3338_v57  ;;  %3542 = vmatpush1.bf16.msra.mxu1 %v7001_v30  ;;  %v7009_v57 = vld [vmem:[#allocation12 + $0xd4] ss:$8 sps:$4 sm:$0xff]   ;;  %v7007_v28 = vld [vmem:[#allocation12 + $0xd0] ss:$8 sps:$4 sm:$0xff]   ;;  %v7012_v38 = vld [vmem:[#allocation15 + $0x13c] ss:$12 sps:$4 sm:$0xff]  }
 0xd24   : > { %3543 = vmatprep.subr.bf16.mxu1 %v7009_v57  ;;  %v7326_v57 = vld [vmem:[#allocation9 + $0x28] sm:$0xff]  }
 0xd25   : > { %3357 = vadd.xlane.f32.xlu0 %v9373_v17  ;;  %v9376_v63 = vadd.f32 %v5978_v56, %v3339_v46  ;;  %v7010_v46 = vld [vmem:[#allocation15 + $0x138] ss:$12 sps:$4 sm:$0xff]  }
 0xd27   : > { %3359 = vadd.xlane.f32.xlu1 %v9376_v63  ;;  %3544 = vmatpush1.bf16.msra.mxu1 %v7007_v28  ;;  %v7327_v28 = vld [vmem:[#allocation9 + $0x30] sm:$0xff]  }
 0xd40   : > { %v6187_v8 = vpop.f32.mrb[32].mxu1 }
 0xd41   : > { %v6188_v26 = vpop.f32.mrb[33].mxu1 }
 0xd42   : > { %v6189_v23 = vadd.f32 %v6188_v26, %v6187_v8  ;;  %v6190_v59 = vpop.f32.mrb[34].mxu1  ;;  %v7013_v8 = vld [vmem:[#allocation12 + $0xe0] ss:$8 sps:$4 sm:$0xff]   ;;  %v7015_v26 = vld [vmem:[#allocation12 + $0xe4] ss:$8 sps:$4 sm:$0xff]  }
 0xd43   : > { %v6191_v24 = vpop.f32.mrb[35].mxu1  ;;  %3545 = vmatprep.subr.bf16.mxu1 %v7015_v26  ;;  %v10238_v26 = vld [vmem:[#allocation51_spill] sm:$0xff] }
 0xd44   : > { %v6192_v35 = vadd.f32 %v6191_v24, %v6190_v59  ;;  %v7018_v59 = vld [vmem:[#allocation15 + $0x154] ss:$12 sps:$4 sm:$0xff]   ;;  %v7021_v24 = vld [vmem:[#allocation12 + $0xf4] ss:$8 sps:$4 sm:$0xff]   ;;  %3546 = vmatpush1.bf16.msra.mxu1 %v7013_v8 }
 0xd45   : > { %3547 = vmatprep.subr.bf16.mxu1 %v7021_v24  ;;  %v9425_v8 = vld [vmem:[#allocation16 + $0x3] sm:$0x7]  ;;  %v10239_v24 = vld [vmem:[#allocation52_spill] sm:$0xff] }
 0xd47   : > { %v6215_v11 = vpop.f32.mrb[28].mxu0 }
 0xd48   : > { %v6216_v34 = vpop.f32.mrb[29].mxu0 }
 0xd49   : > { %v6217_v22 = vadd.f32 %v6216_v34, %v6215_v11  ;;  %v6218_v20 = vpop.f32.mrb[30].mxu0  ;;  %v7019_v11 = vld [vmem:[#allocation12 + $0xf0] ss:$8 sps:$4 sm:$0xff]  }
 0xd4a   : > { %v6219_v53 = vpop.f32.mrb[31].mxu0  ;;  %v7022_v34 = vld [vmem:[#allocation15 + $0x168] ss:$12 sps:$4 sm:$0xff]   ;;  %3548 = vmatpush1.bf16.msra.mxu1 %v7019_v11  ;;  %v3641_v11 = vrot.slane %v9425_v8, %v10239_v24 }
 0xd4b   : > { %v3332_v42 = vadd.f32 %v6217_v22, %v6189_v23  ;;  %v6220_v44 = vadd.f32 %v6219_v53, %v6218_v20  ;;  %v7016_v23 = vld [vmem:[#allocation15 + $0x150] ss:$12 sps:$4 sm:$0xff]   ;;  %v10237_v22 = vmov 0.0  }
 0xd4c   : > { %6446 = vmatprep.subr.bf16.mxu1 %v10237_v22 }
 0xd4d   : > { %v3340_v7 = vadd.f32 %v3332_v42, %v10235_v36  ;;  %v3335_v14 = vadd.f32 %v6220_v44, %v6192_v35  ;;  %v7024_v35 = vld [vmem:[#allocation15 + $0x16c] ss:$12 sps:$4 sm:$0xff]  }
 0xd4f   : > { %v3341_v54 = vadd.f32 %v3335_v14, %v10236_v15  ;;  %v9381_v37 = vadd.f32 %v5978_v56, %v3340_v7  ;;  %v5980_v15 = vld [vmem:[%s10215_s25 + $0x1] ss:$0 sm:$0xff] }
 0xd51   : > { %3361 = vadd.xlane.f32.xlu0 %v9381_v37  ;;  %v9384_v39 = vadd.f32 %v5978_v56, %v3341_v54  ;;  %v7006_v56 = vld [vmem:[#allocation15 + $0x124] ss:$12 sps:$4 sm:$0xff]  }
 0xd52   : > { %3785 = vmatprep.subr.bf16.mxu0 %v7006_v56  ;;  %v7322_v56 = vld [vmem:[#allocation9 + $0x8] sm:$0xff]  }
 0xd53   : > { %3363 = vadd.xlane.f32.xlu1 %v9384_v39  ;;  %3786 = vmatpush1.bf16.msra.mxu0 %v7004_v13  ;;  %v7323_v13 = vld [vmem:[#allocation9 + $0x10] sm:$0xff]  }
 0xd54   : > { %3787 = vmatprep.subr.bf16.mxu0 %v7012_v38  ;;  %v7328_v38 = vld [vmem:[#allocation9 + $0x38] sm:$0xff]  }
 0xd57   : > { %3788 = vmatpush1.bf16.msra.mxu0 %v7010_v46  ;;  %v3441_v46 = vld [vmem:[#allocation13 + $0x2] sm:$0x3] }
 0xd58   : > { %3789 = vmatprep.subr.bf16.mxu0 %v7018_v59  ;;  %v3637_v59 = vrot.slane %v9425_v8, %v10238_v26 }
 0xd5b   : > { %3790 = vmatpush1.bf16.msra.mxu0 %v7016_v23  ;;  %v9428_v23 = vrot.slane %v3441_v46, %v10238_v26 }
 0xd5c   : > { %3791 = vmatprep.subr.bf16.mxu0 %v7024_v35  ;;  %v9433_v35 = vrot.slane %v3441_v46, %v10239_v24 }
 0xd5f   : > { %3792 = vmatpush1.bf16.msra.mxu0 %v7022_v34 }
 0xdb2   : > { %v3358_v2 = vpop.xlane.xlu0 %3357 }
 0xdb3   : > { %v3365_v62 = vmul.f32 0.0078125, %v3358_v2 }
 0xdb4   : > { %v3360_v18 = vpop.xlane.xlu1 %3359 }
 0xdb5   : > { %v9388_v58 = vsub.f32 %v9373_v17, %v3365_v62  ;;  %v3366_v0 = vmul.f32 0.0078125, %v3360_v18  ;;  %v7026_v62 = vld [vmem:[#allocation15 + $0xe0] ss:$12 sps:$4 sm:$0xff]   ;;  %v7027_v18 = vld [vmem:[#allocation15 + $0xf8] ss:$12 sps:$4 sm:$0xff]  }
 0xdb7   : > { %v9391_v25 = vsub.f32 %v9376_v63, %v3366_v0  ;;  %v3373_v60 = vmul.f32 %v9388_v58, %v9388_v58  ;;  %v7029_v0 = vld [vmem:[#allocation15 + $0x128] ss:$12 sps:$4 sm:$0xff]  }
 0xdb9   : > { %3377 = vadd.xlane.f32.xlu0 %v3373_v60  ;;  %v3374_v9 = vmul.f32 %v9391_v25, %v9391_v25 }
 0xdbb   : > { %3379 = vadd.xlane.f32.xlu1 %v3374_v9 }
 0xdde   : > { %v3362_v43 = vpop.xlane.xlu0 %3361 }
 0xddf   : > { %v3367_v21 = vmul.f32 0.0078125, %v3362_v43 }
 0xde0   : > { %v3364_v29 = vpop.xlane.xlu1 %3363 }
 0xde1   : > { %v9398_v52 = vsub.f32 %v9381_v37, %v3367_v21  ;;  %v3368_v47 = vmul.f32 0.0078125, %v3364_v29 }
 0xde3   : > { %v9401_v27 = vsub.f32 %v9384_v39, %v3368_v47  ;;  %v3375_v55 = vmul.f32 %v9398_v52, %v9398_v52 }
 0xde5   : > { %3381 = vadd.xlane.f32.xlu0 %v3375_v55  ;;  %v3376_v51 = vmul.f32 %v9401_v27, %v9401_v27 }
 0xde7   : > { %3383 = vadd.xlane.f32.xlu1 %v3376_v51 }
 0xe46   : > { %v3378_v20 = vpop.xlane.xlu0 %3377 }
 0xe47   : > { %v3385_v53 = vmul.f32 0.0078125, %v3378_v20 }
 0xe48   : > { %v3380_v42 = vpop.xlane.xlu1 %3379 }
 0xe49   : > { %v3389_v44 = vadd.f32 1e-05, %v3385_v53  ;;  %v3386_v36 = vmul.f32 0.0078125, %v3380_v42 }
 0xe4b   : > { %7225 = vrsqrt.f32 %v3389_v44  ;;  %v3390_v7 = vadd.f32 1e-05, %v3386_v36 }
 0xe4d   : > { %7227 = vrsqrt.f32 %v3390_v7 }
 0xe55   : > { %v7226_v14 = vpop.eup %7225 }
 0xe56   : > { %v3397_v54 = vmul.f32 %v7226_v14, %v9388_v58  ;;  %v7028_v58 = vld [vmem:[#allocation15 + $0x110] ss:$12 sps:$4 sm:$0xff]  }
 0xe57   : > { %v7228_v50 = vpop.eup %7227 }
 0xe58   : > { %v3407_v19 = vmul.f32 %v5980_v15, %v3397_v54  ;;  %v3398_v16 = vmul.f32 %v7228_v50, %v9391_v25  ;;  %v7030_v25 = vld [vmem:[#allocation15 + $0x140] ss:$12 sps:$4 sm:$0xff]   ;;  %v7329_v54 = vld [vmem:[%s10219_s4] sm:$0xff] }
 0xe5a   : > { %v3408_v41 = vmul.f32 %v5980_v15, %v3398_v16  ;;  %v3417_v61 = vadd.f32 %v5981_v45, %v3407_v19 }
 0xe5c   : > { %v3418_v10 = vadd.f32 %v5981_v45, %v3408_v41 }
 0xe5e   : > { %v3421_v2 = vpack.c.bf16 %v3418_v10, %v3417_v61  ;;  %v7330_v10 = vld [vmem:[#allocation7] sm:$0xff] }
 0xe60   : > { %3566 = vmatmul.mubr.bf16.vlgmr.msra.gmra.mrb[36].mxu1 %v3421_v2  ;;  %3810 = vmatmul.mubr.bf16.vlgmr.msra.gmra.mrb[32].mxu0 %v3421_v2 }
 0xe61   : > { %6447 = vmatpush3.bf16.msra.mxu1 %v7025_v31  ;;  %3575 = vmatprep.mubr.bf16.mxu1 %v10232_v3 }
 0xe62   : > { %6448 = vmatprep.subr.bf16.mxu1 %v10237_v22 }
 0xe65   : > { %6449 = vmatpush3.bf16.msra.mxu1 %v7026_v62 }
 0xe66   : > { %6450 = vmatprep.subr.bf16.mxu1 %v10237_v22 }
 0xe69   : > { %6451 = vmatpush3.bf16.msra.mxu1 %v7027_v18 }
 0xe6a   : > { %6452 = vmatprep.subr.bf16.mxu1 %v10237_v22 }
 0xe6d   : > { %6453 = vmatpush3.bf16.msra.mxu1 %v7028_v58  ;;  %v7331_v58 = vld [vmem:[%s10219_s4 + $0x8] sm:$0xff] }
 0xe6e   : > { %6454 = vmatprep.subr.bf16.mxu1 %v10237_v22 }
 0xe71   : > { %6455 = vmatpush3.bf16.msra.mxu1 %v7029_v0 }
 0xe72   : > { %v3382_v60 = vpop.xlane.xlu0 %3381  ;;  %6456 = vmatprep.subr.bf16.mxu1 %v10237_v22 }
 0xe73   : > { %v3387_v9 = vmul.f32 0.0078125, %v3382_v60 }
 0xe74   : > { %v3384_v32 = vpop.xlane.xlu1 %3383 }
 0xe75   : > { %v3391_v49 = vadd.f32 1e-05, %v3387_v9  ;;  %v3388_v12 = vmul.f32 0.0078125, %v3384_v32  ;;  %6457 = vmatpush3.bf16.msra.mxu1 %v7030_v25  ;;  %v7332_v32 = vld [vmem:[#allocation7 + $0x8] sm:$0xff] }
 0xe76   : > { %6458 = vmatprep.subr.bf16.mxu1 %v10237_v22 }
 0xe77   : > { %7229 = vrsqrt.f32 %v3391_v49  ;;  %v3392_v48 = vadd.f32 1e-05, %v3388_v12 }
 0xe79   : > { %7231 = vrsqrt.f32 %v3392_v48  ;;  %6459 = vmatpush3.bf16.msra.mxu1 %v7031_v6 }
 0xe7a   : > { %6460 = vmatprep.subr.bf16.mxu1 %v10237_v22 }
 0xe7d   : > { %6461 = vmatpush3.bf16.msra.mxu1 %v7032_v33 }
 0xe7e   : > { %6486 = vmatprep.subr.bf16.mxu1 %v7321_v40 }
 0xe81   : > { %v7230_v4 = vpop.eup %7229 }
 0xe82   : > { %v3399_v43 = vmul.f32 %v7230_v4, %v9398_v52  ;;  %v7324_v52 = vld [vmem:[#allocation9 + $0x18] sm:$0xff]   ;;  %v7333_v4 = vld [vmem:[%s10220_s1] sm:$0xff]  }
 0xe83   : > { %v7232_v21 = vpop.eup %7231 }
 0xe84   : > { %v3400_v29 = vmul.f32 %v7232_v21, %v9401_v27  ;;  %v3409_v47 = vmul.f32 %v5980_v15, %v3399_v43  ;;  %v7325_v27 = vld [vmem:[#allocation9 + $0x20] sm:$0xff]   ;;  %v9453_v21 = vld [vmem:[%s10220_s1 + $0x8] sm:$0xff]  }
 0xe86   : > { %v3410_v55 = vmul.f32 %v5980_v15, %v3400_v29  ;;  %v3419_v51 = vadd.f32 %v5981_v45, %v3409_v47  ;;  %v9459_v47 = vld [vmem:[%s10220_s1 + $0x10] sm:$0xff]  }
 0xe88   : > { %v3420_v1 = vadd.f32 %v5981_v45, %v3410_v55 }
 0xe8a   : > { %v3422_v30 = vpack.c.bf16 %v3420_v1, %v3419_v51  ;;  %v9465_v51 = vld [vmem:[%s10220_s1 + $0x18] sm:$0xff]  }
 0xe8c   : > { %3576 = vmatmul.mubr.bf16.gmra.mrb[40].mxu1 %v3422_v30  ;;  %v9471_v30 = vld [vmem:[%s10220_s1 + $0x20] sm:$0xff]  }
 0xe8d   : > { %6462 = vmatprep.mubr.msk.bf16.mxu1 %vm8023_vm3, %v10237_v22 }
 0xe94   : > { %6463 = vmatmul.mubr.bf16.vlgmr.msra.gmra.mrb[44].mxu1 %v3421_v2 }
 0xe95   : > { %6487 = vmatpush3.bf16.msra.mxu1 %v7321_v40 }
 0xe96   : > { %6488 = vmatprep.subr.bf16.mxu1 %v7322_v56 }
 0xe99   : > { %6489 = vmatpush3.bf16.msra.mxu1 %v7322_v56 }
 0xe9a   : > { %6490 = vmatprep.subr.bf16.mxu1 %v7323_v13 }
 0xe9d   : > { %6491 = vmatpush3.bf16.msra.mxu1 %v7323_v13 }
 0xe9e   : > { %6492 = vmatprep.subr.bf16.mxu1 %v7324_v52 }
 0xea1   : > { %6493 = vmatpush3.bf16.msra.mxu1 %v7324_v52 }
 0xea2   : > { %6494 = vmatprep.subr.bf16.mxu1 %v7325_v27 }
 0xea5   : > { %6495 = vmatpush3.bf16.msra.mxu1 %v7325_v27 }
 0xea6   : > { %6496 = vmatprep.subr.bf16.mxu1 %v7326_v57 }
 0xea9   : > { %6497 = vmatpush3.bf16.msra.mxu1 %v7326_v57 }
 0xeaa   : > { %6498 = vmatprep.subr.bf16.mxu1 %v7327_v28 }
 0xead   : > { %6499 = vmatpush3.bf16.msra.mxu1 %v7327_v28 }
 0xeae   : > { %6500 = vmatprep.subr.bf16.mxu1 %v7328_v38 }
 0xeb1   : > { %6501 = vmatpush3.bf16.msra.mxu1 %v7328_v38  ;;  %v9479_v38 = vld [vmem:[%s10220_s1 + $0x28] sm:$0xff]  }
 0xf33   : > { %v3567_v34 = vpop.f32.mrb[36].mxu1  ;;  %v3811_v22 = vpop.f32.mrb[32].mxu0 }
 0xf34   : > { %v3568_v20 = vadd.f32 %v3567_v34, %v9428_v23  ;;  %v3812_v53 = vadd.f32 %v3811_v22, %v3637_v59  ;;  %v3569_v42 = vpop.f32.mrb[37].mxu1  ;;  %v3813_v44 = vpop.f32.mrb[33].mxu0 }
 0xf35   : > { %v3570_v36 = vadd.f32 %v3569_v42, %v9433_v35  ;;  %v3814_v7 = vadd.f32 %v3813_v44, %v3641_v11  ;;  %v3571_v14 = vpop.f32.mrb[38].mxu1  ;;  %v3815_v15 = vpop.f32.mrb[34].mxu0  ;;  %v7341_v44 = vld [vmem:[%s10219_s4 + $0x18] sm:$0xff] }
 0xf36   : > { %v3586_v50 = vmul.f32 %v7329_v54, %v3568_v20  ;;  %v3861_v19 = vmul.f32 %v7329_v54, %v3812_v53  ;;  %v3572_v16 = vadd.f32 %v3571_v14, %v9428_v23  ;;  %v3816_v45 = vadd.f32 %v3815_v15, %v3637_v59  ;;  %v3573_v41 = vpop.f32.mrb[39].mxu1  ;;  %v3817_v61 = vpop.f32.mrb[35].mxu0  ;;  %v7339_v59 = vld [vmem:[%s10219_s4 + $0x10] sm:$0xff]  ;;  %v7340_v20 = vld [vmem:[#allocation7 + $0x10] sm:$0xff] }
 0xf37   : > { %v3590_v31 = vmul.f32 %v7330_v10, %v3570_v36  ;;  %v3863_v2 = vmul.f32 %v7330_v10, %v3814_v7  ;;  %v3574_v62 = vadd.f32 %v3573_v41, %v9433_v35  ;;  %v3818_v18 = vadd.f32 %v3817_v61, %v3641_v11  ;;  %v7342_v14 = vld [vmem:[#allocation7 + $0x18] sm:$0xff] }
 0xf38   : > { %v3587_v0 = vmul.f32 %v7331_v58, %v3572_v16  ;;  %v3862_v25 = vmul.f32 %v7331_v58, %v3816_v45  ;;  %v10240_v54 = vld [vmem:[#allocation53_spill] sm:$0xff] }
 0xf39   : > { %v3594_v60 = vadd.f32 %v3590_v31, %v3586_v50  ;;  %v3865_v9 = vadd.f32 %v3863_v2, %v3861_v19  ;;  %v3591_v49 = vmul.f32 %v7332_v32, %v3574_v62  ;;  %v3864_v12 = vmul.f32 %v7332_v32, %v3818_v18  ;;  %v9504_v18 = vld [vmem:[%s10220_s1 + $0x38] sm:$0xff]  }
 0xf3a   : > { %v3645_v50 = vrot.slane %v9425_v8, %v10240_v54 }
 0xf3b   : > { %v3595_v6 = vadd.f32 %v3591_v49, %v3587_v0  ;;  %v3866_v48 = vadd.f32 %v3864_v12, %v3862_v25  ;;  %v7346_v12 = vld [vmem:[%s10222_s8 + $0x8] sm:$0xff] }
 0xf3d   : > { %v3867_v33 = vpack.c.bf16 %v3866_v48, %v3865_v9  ;;  %v3885_v40 = vpack.c.bf16 %v3595_v6, %v3594_v60  ;;  %v7345_v60 = vld [vmem:[%s10222_s8] sm:$0xff]  ;;  %v7347_v48 = vld [vmem:[%s10222_s8 + $0x10] sm:$0xff] }
 0xf3f   : > { %6482 = vmatprep.mubr.bf16.mxu0 %v3885_v40  ;;  %v3868_v43 = vmul.bf16 %v7333_v4, %v3867_v33  ;;  %v3869_v29 = vmul.bf16 %v9453_v21, %v3867_v33  ;;  %v3870_v55 = vmul.bf16 %v9459_v47, %v3867_v33  ;;  %v3871_v1 = vmul.bf16 %v9465_v51, %v3867_v33  ;;  %v7348_v40 = vld [vmem:[%s10222_s8 + $0x18] sm:$0xff] }
 0xf40   : > { %v3872_v56 = vmul.bf16 %v9471_v30, %v3867_v33  ;;  %v3873_v46 = vmul.bf16 %v9479_v38, %v3867_v33  ;;  %v3875_v58 = vmul.bf16 %v9504_v18, %v3867_v33 }
 0xf41   : > { %6466 = vmatprep.subr.bf16.mxu0 %v3868_v43 }
 0xf42   : > { %6467 = vmatpush3.bf16.xpose.msra.mxu0 %v3868_v43 }
 0xf43   : > { %6468 = vmatprep.subr.bf16.mxu0 %v3869_v29 }
 0xf4a   : > { %6469 = vmatpush3.bf16.xpose.msra.mxu0 %v3869_v29 }
 0xf4b   : > { %6470 = vmatprep.subr.bf16.mxu0 %v3870_v55 }
 0xf52   : > { %6471 = vmatpush3.bf16.xpose.msra.mxu0 %v3870_v55 }
 0xf53   : > { %6472 = vmatprep.subr.bf16.mxu0 %v3871_v1 }
 0xf5a   : > { %6473 = vmatpush3.bf16.xpose.msra.mxu0 %v3871_v1 }
 0xf5b   : > { %6474 = vmatprep.subr.bf16.mxu0 %v3872_v56 }
 0xf5f   : > { %v3577_v13 = vpop.f32.mrb[40].mxu1 }
 0xf60   : > { %v3578_v52 = vadd.f32 %v3577_v13, %v9428_v23  ;;  %v3579_v27 = vpop.f32.mrb[41].mxu1 }
 0xf61   : > { %v3580_v57 = vadd.f32 %v3579_v27, %v9433_v35  ;;  %v3581_v28 = vpop.f32.mrb[42].mxu1 }
 0xf62   : > { %v3588_v11 = vmul.f32 %v7339_v59, %v3578_v52  ;;  %v3582_v34 = vadd.f32 %v3581_v28, %v9428_v23  ;;  %v3583_v22 = vpop.f32.mrb[43].mxu1  ;;  %6475 = vmatpush3.bf16.xpose.msra.mxu0 %v3872_v56 }
 0xf63   : > { %v3592_v53 = vmul.f32 %v7340_v20, %v3580_v57  ;;  %v3584_v42 = vadd.f32 %v3583_v22, %v9433_v35  ;;  %6476 = vmatprep.subr.bf16.mxu0 %v3873_v46  ;;  %v9495_v35 = vld [vmem:[%s10220_s1 + $0x30] sm:$0xff]  }
 0xf64   : > { %v3589_v36 = vmul.f32 %v7341_v44, %v3582_v34  ;;  %v3874_v61 = vmul.bf16 %v9495_v35, %v3867_v33 }
 0xf65   : > { %v3596_v7 = vadd.f32 %v3592_v53, %v3588_v11  ;;  %v3593_v15 = vmul.f32 %v7342_v14, %v3584_v42 }
 0xf67   : > { %v3597_v19 = vadd.f32 %v3593_v15, %v3589_v36  ;;  %v3854_v23 = vpop.f32.mrb[44].mxu1 }
 0xf68   : > { %v6464_v16 = vpop.f32.mrb[45].mxu1  ;;  %v3855_v10 = vadd.f32 %v3854_v23, %v3645_v50 }
 0xf69   : > { %v3886_v45 = vpack.c.bf16 %v3597_v19, %v3596_v7  ;;  %v3857_v41 = vpop.f32.mrb[46].mxu1  ;;  %v7033_v16 = vld [vmem:[#allocation18 + $0x40] sm:$0xff]  }
 0xf6a   : > { %v3858_v31 = vadd.f32 %v3857_v41, %v3645_v50  ;;  %v6465_v2 = vpop.f32.mrb[47].mxu1  ;;  %6477 = vmatpush3.bf16.xpose.msra.mxu0 %v3873_v46  ;;  %v7037_v41 = vld [vmem:[#allocation18 + $0x60] sm:$0xff]  }
 0xf6b   : > { %6478 = vmatprep.subr.bf16.mxu0 %v3874_v61 }
 0xf6c   : > { %v9498_v62 = vpack.c.bf16 %v3858_v31, %v3855_v10 }
 0xf6e   : > { %v3877_v8 = vmul.bf16 %v7333_v4, %v9498_v62  ;;  %v3878_v15 = vmul.bf16 %v9453_v21, %v9498_v62  ;;  %v3879_v50 = vmul.bf16 %v9459_v47, %v9498_v62  ;;  %v3880_v19 = vmul.bf16 %v9465_v51, %v9498_v62 }
 0xf6f   : > { %v3881_v23 = vmul.bf16 %v9471_v30, %v9498_v62  ;;  %v3882_v21 = vmul.bf16 %v9479_v38, %v9498_v62  ;;  %v3883_v47 = vmul.bf16 %v9495_v35, %v9498_v62  ;;  %v3884_v51 = vmul.bf16 %v9504_v18, %v9498_v62  ;;  %v7034_v30 = vld [vmem:[#allocation18 + $0x48] sm:$0xff]   ;;  %v7036_v38 = vld [vmem:[#allocation18 + $0x58] sm:$0xff]  }
 0xf70   : > { %6506 = vmatprep.subr.bf16.mxu1 %v3877_v8  ;;  %v7038_v35 = vld [vmem:[#allocation18 + $0x68] sm:$0xff]  }
 0xf72   : > { %6479 = vmatpush3.bf16.xpose.msra.mxu0 %v3874_v61  ;;  %v7039_v61 = vld [vmem:[#allocation18 + $0x70] sm:$0xff]  }
 0xf73   : > { %6480 = vmatprep.subr.bf16.mxu0 %v3875_v58 }
 0xf7a   : > { %6481 = vmatpush3.bf16.xpose.msra.mxu0 %v3875_v58 }
 0xf7b   : > { %6526 = vmatprep.subr.bf16.mxu0 %v7033_v16 }
 0xf81   : > { %6483 = vmatmul.mubr.bf16.vlgmr.msra.gmra.mrb[36].mxu0 %v3886_v45  ;;  %v7035_v45 = vld [vmem:[#allocation18 + $0x50] sm:$0xff]  }
 0xf82   : > { %6527 = vmatpush3.bf16.msra.mxu0 %v7033_v16 }
 0xf83   : > { %6528 = vmatprep.subr.bf16.mxu0 %v7034_v30 }
 0xf86   : > { %6529 = vmatpush3.bf16.msra.mxu0 %v7034_v30 }
 0xf87   : > { %6530 = vmatprep.subr.bf16.mxu0 %v7035_v45 }
 0xf8a   : > { %6531 = vmatpush3.bf16.msra.mxu0 %v7035_v45 }
 0xf8b   : > { %6532 = vmatprep.subr.bf16.mxu0 %v7036_v38 }
 0xf8e   : > { %6533 = vmatpush3.bf16.msra.mxu0 %v7036_v38 }
 0xf8f   : > { %6534 = vmatprep.subr.bf16.mxu0 %v7037_v41 }
 0xf92   : > { %6535 = vmatpush3.bf16.msra.mxu0 %v7037_v41 }
 0xf93   : > { %6536 = vmatprep.subr.bf16.mxu0 %v7038_v35 }
 0xf96   : > { %6537 = vmatpush3.bf16.msra.mxu0 %v7038_v35 }
 0xf97   : > { %6538 = vmatprep.subr.bf16.mxu0 %v7039_v61 }
 0xf9a   : > { %6539 = vmatpush3.bf16.msra.mxu0 %v7039_v61 }
0x1054   : > { %v6484_v0 = vpop.f32.mrb[36].mxu0 }
0x1055   : > { %v3921_v25 = vpop.f32.mrb[37].mxu0  ;;  %v3930_v33 = vadd.f32 %v7347_v48, %v6484_v0 }
0x1056   : > { %v3922_v9 = vadd.f32 %v7345_v60, %v3921_v25  ;;  %v6485_v32 = vpop.f32.mrb[38].mxu0 }
0x1057   : > { %v3924_v49 = vpop.f32.mrb[39].mxu0  ;;  %v3933_v4 = vadd.f32 %v7348_v40, %v6485_v32 }
0x1058   : > { %v3925_v6 = vadd.f32 %v7346_v12, %v3924_v49  ;;  %3936 = vmax.xlane.f32.xlu0 %v3922_v9 }
0x105a   : > { %3938 = vmax.xlane.f32.xlu1 %v3925_v6 }
0x105c   : > { %3940 = vmax.xlane.f32.xlu0 %v3930_v33 }
0x105e   : > { %3942 = vmax.xlane.f32.xlu1 %v3933_v4 }
0x10e5   : > { %v3937_v43 = vpop.xlane.xlu0 %3936 }
0x10e6   : > { %vm3944_vm3 = vcmp.eq.f32.partialorder %v3937_v43, -inf }
0x10e7   : > { %v3948_v29 = vsel %vm3944_vm3, 0.0, %v3937_v43  ;;  %v3939_v55 = vpop.xlane.xlu1 %3938 }
0x10e8   : > { %v3952_v1 = vsub.f32 %v3922_v9, %v3948_v29  ;;  %vm3945_vm13 = vcmp.eq.f32.partialorder %v3939_v55, -inf }
0x10e9   : > { %v3949_v56 = vsel %vm3945_vm13, 0.0, %v3939_v55  ;;  %v3941_v13 = vpop.xlane.xlu0 %3940 }
0x10ea   : > { %v3956_v52 = vmul.f32 1.442695, %v3952_v1  ;;  %v3953_v27 = vsub.f32 %v3925_v6, %v3949_v56  ;;  %vm3946_vm14 = vcmp.eq.f32.partialorder %v3941_v13, -inf }
0x10eb   : > { %v3950_v57 = vsel %vm3946_vm14, 0.0, %v3941_v13  ;;  %v3943_v28 = vpop.xlane.xlu1 %3942 }
0x10ec   : > { %v3958_v46 = vmul.f32 1.442695, %v3953_v27  ;;  %v3954_v59 = vsub.f32 %v3930_v33, %v3950_v57  ;;  %vm3947_vm15 = vcmp.eq.f32.partialorder %v3943_v28, -inf  ;;  %7233 = vpow2.f32 %v3956_v52  ;;  %v6030_v27 = vld [vmem:[#allocation19 + $0x1] ss:$0 sm:$0xff] }
0x10ed   : > { %v3951_v11 = vsel %vm3947_vm15, 0.0, %v3943_v28 }
0x10ee   : > { %7235 = vpow2.f32 %v3958_v46  ;;  %v3960_v34 = vmul.f32 1.442695, %v3954_v59  ;;  %v3955_v22 = vsub.f32 %v3933_v4, %v3951_v11  ;;  %v7040_v4 = vld [vmem:[#allocation18 + $0x78] sm:$0xff]  }
0x10ef   : > { %6540 = vmatprep.subr.bf16.mxu0 %v7040_v4 }
0x10f0   : > { %v3962_v20 = vmul.f32 1.442695, %v3955_v22  ;;  %7237 = vpow2.f32 %v3960_v34  ;;  %6541 = vmatpush3.bf16.msra.mxu0 %v7040_v4  ;;  %v7074_v4 = vld [vmem:[#allocation24 + $0x1a8] ss:$16 sps:$4 sm:$0xff]  }
0x10f2   : > { %7239 = vpow2.f32 %v3962_v20 }
0x10f6   : > { %v9519_v53 = vpop.eup %7233 }
0x10f8   : > { %v9521_v42 = vpop.eup %7235 }
0x10f9   : > { %v3964_v44 = vpack.c.bf16 %v9521_v42, %v9519_v53 }
0x10fa   : > { %v9525_v36 = vpop.eup %7237 }
0x10fb   : > { %6502 = vmatprep.mubr.bf16.mxu1 %v3964_v44 }
0x10fc   : > { %v9527_v7 = vpop.eup %7239 }
0x10fd   : > { %v3965_v14 = vpack.c.bf16 %v9527_v7, %v9525_v36 }
0x10ff   : > { %6503 = vmatmul.mubr.bf16.vlgmr.msra.gmra.mrb[48].mxu1 %v3965_v14  ;;  %v7047_v14 = vld [vmem:[#allocation24 + $0x120] ss:$16 sps:$4 sm:$0xff]  }
0x1100   : > { %6507 = vmatpush3.bf16.msra.mxu1 %v3877_v8 }
0x1101   : > { %6508 = vmatprep.subr.bf16.mxu1 %v3878_v15 }
0x1104   : > { %6509 = vmatpush3.bf16.msra.mxu1 %v3878_v15  ;;  %v7050_v15 = vld [vmem:[#allocation24 + $0x128] ss:$16 sps:$4 sm:$0xff]  }
0x1105   : > { %6510 = vmatprep.subr.bf16.mxu1 %v3879_v50 }
0x1108   : > { %6511 = vmatpush3.bf16.msra.mxu1 %v3879_v50 }
0x1109   : > { %6512 = vmatprep.subr.bf16.mxu1 %v3880_v19 }
0x110c   : > { %6513 = vmatpush3.bf16.msra.mxu1 %v3880_v19 }
0x110d   : > { %6514 = vmatprep.subr.bf16.mxu1 %v3881_v23 }
0x1110   : > { %6515 = vmatpush3.bf16.msra.mxu1 %v3881_v23 }
0x1111   : > { %6516 = vmatprep.subr.bf16.mxu1 %v3882_v21 }
0x1114   : > { %6517 = vmatpush3.bf16.msra.mxu1 %v3882_v21 }
0x1115   : > { %6518 = vmatprep.subr.bf16.mxu1 %v3883_v47 }
0x1118   : > { %6519 = vmatpush3.bf16.msra.mxu1 %v3883_v47 }
0x1119   : > { %6520 = vmatprep.subr.bf16.mxu1 %v3884_v51 }
0x111c   : > { %6521 = vmatpush3.bf16.msra.mxu1 %v3884_v51 }
0x11d2   : > { %v6504_v10 = vpop.f32.mrb[48].mxu1 }
0x11d3   : > { %vm4017_vm0 = vcmp.eq.f32.partialorder %v6504_v10, 0.0  ;;  %v4000_v31 = vpop.f32.mrb[49].mxu1 }
0x11d4   : > { %v4021_v2 = vsel %vm4017_vm0, 1.0, %v6504_v10  ;;  %vm4015_vm1 = vcmp.eq.f32.partialorder %v4000_v31, 0.0  ;;  %v6505_v62 = vpop.f32.mrb[50].mxu1 }
0x11d5   : > { %7241 = vrcp.f32 %v4021_v2  ;;  %v4019_v8 = vsel %vm4015_vm1, 1.0, %v4000_v31  ;;  %vm4018_vm2 = vcmp.eq.f32.partialorder %v6505_v62, 0.0  ;;  %v4003_v18 = vpop.f32.mrb[51].mxu1 }
0x11d6   : > { %7243 = vrcp.f32 %v4019_v8  ;;  %v4022_v58 = vsel %vm4018_vm2, 1.0, %v6505_v62  ;;  %vm4016_vm4 = vcmp.eq.f32.partialorder %v4003_v18, 0.0  ;;  %v7053_v62 = vld [vmem:[#allocation24 + $0x140] ss:$16 sps:$4 sm:$0xff]   ;;  %v7055_v8 = vld [vmem:[#allocation24 + $0x144] ss:$16 sps:$4 sm:$0xff]  }
0x11d7   : > { %7245 = vrcp.f32 %v4022_v58  ;;  %v4020_v0 = vsel %vm4016_vm4, 1.0, %v4003_v18  ;;  %v7056_v18 = vld [vmem:[#allocation24 + $0x148] ss:$16 sps:$4 sm:$0xff]   ;;  %v7058_v58 = vld [vmem:[#allocation24 + $0x14c] ss:$16 sps:$4 sm:$0xff]  }
0x11d8   : > { %7247 = vrcp.f32 %v4020_v0  ;;  %v7061_v0 = vld [vmem:[#allocation24 + $0x164] ss:$16 sps:$4 sm:$0xff]  }
0x11df   : > { %v7242_v25 = vpop.eup %7241 }
0x11e0   : > { %v7244_v60 = vpop.eup %7243  ;;  %v4029_v49 = vmul.f32 %v7242_v25, %v9525_v36  ;;  %v7044_v36 = vld [vmem:[#allocation24 + $0x108] ss:$16 sps:$4 sm:$0xff]   ;;  %v7059_v25 = vld [vmem:[#allocation24 + $0x160] ss:$16 sps:$4 sm:$0xff]  }
0x11e1   : > { %v7246_v9 = vpop.eup %7245  ;;  %v4027_v6 = vmul.f32 %v7244_v60, %v9519_v53  ;;  %v7064_v60 = vld [vmem:[#allocation24 + $0x16c] ss:$16 sps:$4 sm:$0xff]  }
0x11e2   : > { %v7248_v32 = vpop.eup %7247  ;;  %v4030_v12 = vmul.f32 %v7246_v9, %v9527_v7  ;;  %v7049_v7 = vld [vmem:[#allocation24 + $0x124] ss:$16 sps:$4 sm:$0xff]   ;;  %v7062_v9 = vld [vmem:[#allocation24 + $0x168] ss:$16 sps:$4 sm:$0xff]  }
0x11e3   : > { %v4028_v48 = vmul.f32 %v7248_v32, %v9521_v42  ;;  %v7067_v32 = vld [vmem:[#allocation24 + $0x184] ss:$16 sps:$4 sm:$0xff]  }
0x11e4   : > { %v4032_v33 = vpack.c.bf16 %v4030_v12, %v4029_v49  ;;  %v7070_v49 = vld [vmem:[#allocation24 + $0x18c] ss:$16 sps:$4 sm:$0xff]   ;;  %v7065_v12 = vld [vmem:[#allocation24 + $0x180] ss:$16 sps:$4 sm:$0xff]  }
0x11e5   : > { %v4031_v40 = vpack.c.bf16 %v4028_v48, %v4027_v6  ;;  %v7068_v6 = vld [vmem:[#allocation24 + $0x188] ss:$16 sps:$4 sm:$0xff]   ;;  %v7073_v48 = vld [vmem:[#allocation24 + $0x1a4] ss:$16 sps:$4 sm:$0xff]  }
0x11e7   : > { %6522 = vmatprep.mubr.bf16.mxu1 %v4031_v40  ;;  %v7071_v40 = vld [vmem:[#allocation24 + $0x1a0] ss:$16 sps:$4 sm:$0xff]  }
0x11e8   : > { %6523 = vmatmul.mubr.bf16.vlgmr.msra.gmra.mrb[52].mxu1 %v4032_v33  ;;  %v7076_v33 = vld [vmem:[#allocation24 + $0x1ac] ss:$16 sps:$4 sm:$0xff]  }
0x11e9   : > { %4532 = vmatprep.mubr.bf16.mxu1 %v10232_v3 }
0x12bb   : > { %v6524_v43 = vpop.f32.mrb[52].mxu1 }
0x12bc   : > { %v4067_v29 = vpop.f32.mrb[53].mxu1 }
0x12bd   : > { %v6525_v55 = vpop.f32.mrb[54].mxu1 }
0x12be   : > { %v4100_v1 = vpack.c.bf16 %v6525_v55, %v6524_v43  ;;  %v4070_v56 = vpop.f32.mrb[55].mxu1  ;;  %v7079_v43 = vld [vmem:[#allocation24 + $0x1c4] ss:$16 sps:$4 sm:$0xff]   ;;  %v7077_v55 = vld [vmem:[#allocation24 + $0x1c0] ss:$16 sps:$4 sm:$0xff]  }
0x12bf   : > { %v4099_v13 = vpack.c.bf16 %v4070_v56, %v4067_v29  ;;  %v7082_v29 = vld [vmem:[#allocation24 + $0x1cc] ss:$16 sps:$4 sm:$0xff]   ;;  %v7085_v56 = vld [vmem:[#allocation24 + $0x1e4] ss:$16 sps:$4 sm:$0xff]  }
0x12c1   : > { %6542 = vmatprep.mubr.bf16.mxu0 %v4099_v13  ;;  %v7088_v13 = vld [vmem:[#allocation24 + $0x1ec] ss:$16 sps:$4 sm:$0xff]  }
0x12c2   : > { %6543 = vmatmul.mubr.bf16.vlgmr.msra.gmra.mrb[40].mxu0 %v4100_v1  ;;  %v7080_v1 = vld [vmem:[#allocation24 + $0x1c8] ss:$16 sps:$4 sm:$0xff]  }
0x12c3   : > { %4585 = vmatprep.mubr.bf16.mxu0 %v10232_v3 }
0x1395   : > { %v6544_v52 = vpop.f32.mrb[40].mxu0 }
0x1396   : > { %v4183_v57 = vpop.f32.mrb[41].mxu0  ;;  %v4200_v11 = vadd.f32 %v6544_v52, %v9381_v37  ;;  %v7043_v37 = vld [vmem:[#allocation24 + $0x104] ss:$16 sps:$4 sm:$0xff]   ;;  %v7083_v52 = vld [vmem:[#allocation24 + $0x1e0] ss:$16 sps:$4 sm:$0xff]  }
0x1397   : > { %v4198_v28 = vadd.f32 %v4183_v57, %v9373_v17  ;;  %v6545_v46 = vpop.f32.mrb[42].mxu0  ;;  %v7041_v17 = vld [vmem:[#allocation24 + $0x100] ss:$16 sps:$4 sm:$0xff]   ;;  %4500 = vmatprep.subr.bf16.mxu1 %v7043_v37 }
0x1398   : > { %v4186_v59 = vpop.f32.mrb[43].mxu0  ;;  %v4201_v20 = vadd.f32 %v6545_v46, %v9384_v39  ;;  %v9560_v42 = vadd.f32 %v6030_v27, %v4200_v11  ;;  %v7052_v39 = vld [vmem:[#allocation24 + $0x12c] ss:$16 sps:$4 sm:$0xff]   ;;  %4501 = vmatpush1.bf16.msra.mxu1 %v7041_v17 }
0x1399   : > { %v9553_v34 = vadd.f32 %v6030_v27, %v4198_v28  ;;  %v4199_v22 = vadd.f32 %v4186_v59, %v9376_v63  ;;  %v7046_v63 = vld [vmem:[#allocation24 + $0x10c] ss:$16 sps:$4 sm:$0xff]   ;;  %4502 = vmatprep.subr.bf16.mxu1 %v7049_v7 }
0x139a   : > { %10243 = vst [vmem:[#allocation54_spill] sm:$0xff] %v9560_v42  ;;  %v9563_v44 = vadd.f32 %v6030_v27, %v4201_v20  ;;  %4553 = vmatprep.subr.bf16.mxu0 %v7046_v63 }
0x139b   : > { %10241 = vst [vmem:[#allocation58_spill] sm:$0xff] %v9553_v34  ;;  %v9557_v53 = vadd.f32 %v6030_v27, %v4199_v22  ;;  %4218 = vadd.xlane.f32.xlu0 %v9553_v34  ;;  %4554 = vmatpush1.bf16.msra.mxu0 %v7044_v36  ;;  %v7086_v27 = vld [vmem:[#allocation24 + $0x1e8] ss:$16 sps:$4 sm:$0xff]  }
0x139c   : > { %10244 = vst [vmem:[#allocation55_spill] sm:$0xff] %v9563_v44  ;;  %4555 = vmatprep.subr.bf16.mxu0 %v7052_v39  ;;  %4503 = vmatpush1.bf16.msra.mxu1 %v7047_v14  ;;  %v6031_v14 = vld [vmem:[#allocation21 + $0x1] ss:$0 sm:$0xff] }
0x139d   : > { %10242 = vst [vmem:[#allocation59_spill] sm:$0xff] %v9557_v53  ;;  %4220 = vadd.xlane.f32.xlu1 %v9557_v53  ;;  %4504 = vmatprep.subr.bf16.mxu1 %v7055_v8 }
0x139f   : > { %4222 = vadd.xlane.f32.xlu0 %v9560_v42  ;;  %4556 = vmatpush1.bf16.msra.mxu0 %v7050_v15 }
0x13a0   : > { %4557 = vmatprep.subr.bf16.mxu0 %v7058_v58  ;;  %4505 = vmatpush1.bf16.msra.mxu1 %v7053_v62  ;;  %v7089_v58 = vld [vmem:[#allocation27 + $0x140] sm:$0xff]  }
0x13a1   : > { %4224 = vadd.xlane.f32.xlu1 %v9563_v44  ;;  %4506 = vmatprep.subr.bf16.mxu1 %v7061_v0  ;;  %v7090_v0 = vld [vmem:[#allocation27 + $0x1c0] sm:$0xff]  }
0x13a3   : > { %4558 = vmatpush1.bf16.msra.mxu0 %v7056_v18 }
0x13a4   : > { %4559 = vmatprep.subr.bf16.mxu0 %v7064_v60  ;;  %4507 = vmatpush1.bf16.msra.mxu1 %v7059_v25  ;;  %v7091_v25 = vld [vmem:[#allocation27 + $0x100] sm:$0xff]   ;;  %v7094_v60 = vld [vmem:[#allocation27 + $0x1c8] sm:$0xff]  }
0x13a5   : > { %4508 = vmatprep.subr.bf16.mxu1 %v7067_v32  ;;  %v7096_v32 = vld [vmem:[#allocation27 + $0x188] sm:$0xff]  }
0x13a7   : > { %4560 = vmatpush1.bf16.msra.mxu0 %v7062_v9  ;;  %v7095_v9 = vld [vmem:[#allocation27 + $0x108] sm:$0xff]  }
0x13a8   : > { %4561 = vmatprep.subr.bf16.mxu0 %v7070_v49  ;;  %4509 = vmatpush1.bf16.msra.mxu1 %v7065_v12  ;;  %v7098_v49 = vld [vmem:[#allocation27 + $0x1d0] sm:$0xff]  }
0x13a9   : > { %4510 = vmatprep.subr.bf16.mxu1 %v7073_v48  ;;  %v7099_v12 = vld [vmem:[#allocation27 + $0x110] sm:$0xff]   ;;  %v7101_v48 = vld [vmem:[#allocation27 + $0x158] sm:$0xff]  }
0x13ab   : > { %4562 = vmatpush1.bf16.msra.mxu0 %v7068_v6  ;;  %v7100_v6 = vld [vmem:[#allocation27 + $0x190] sm:$0xff]  }
0x13ac   : > { %4563 = vmatprep.subr.bf16.mxu0 %v7076_v33  ;;  %4511 = vmatpush1.bf16.msra.mxu1 %v7071_v40  ;;  %v7102_v33 = vld [vmem:[#allocation27 + $0x1d8] sm:$0xff]  }
0x13ad   : > { %4512 = vmatprep.subr.bf16.mxu1 %v7079_v43  ;;  %v7103_v40 = vld [vmem:[#allocation27 + $0x118] sm:$0xff]   ;;  %v7105_v43 = vld [vmem:[#allocation27 + $0x160] sm:$0xff]  }
0x13af   : > { %4564 = vmatpush1.bf16.msra.mxu0 %v7074_v4  ;;  %v7104_v4 = vld [vmem:[#allocation27 + $0x198] sm:$0xff]  }
0x13b0   : > { %4565 = vmatprep.subr.bf16.mxu0 %v7082_v29  ;;  %4513 = vmatpush1.bf16.msra.mxu1 %v7077_v55  ;;  %v7106_v29 = vld [vmem:[#allocation27 + $0x1e0] sm:$0xff]  }
0x13b1   : > { %4514 = vmatprep.subr.bf16.mxu1 %v7085_v56  ;;  %v7107_v55 = vld [vmem:[#allocation27 + $0x120] sm:$0xff]   ;;  %v7109_v56 = vld [vmem:[#allocation27 + $0x168] sm:$0xff]  }
0x13b3   : > { %4566 = vmatpush1.bf16.msra.mxu0 %v7080_v1  ;;  %v7108_v1 = vld [vmem:[#allocation27 + $0x1a0] sm:$0xff]  }
0x13b4   : > { %4567 = vmatprep.subr.bf16.mxu0 %v7088_v13  ;;  %4515 = vmatpush1.bf16.msra.mxu1 %v7083_v52  ;;  %v7110_v13 = vld [vmem:[#allocation27 + $0x1e8] sm:$0xff]  }
0x13b5   : > { %6270 = vmatprep.subr.bf16.mxu1 %v7089_v58  ;;  %v7111_v52 = vld [vmem:[#allocation27 + $0x128] sm:$0xff]  }
0x13b7   : > { %4568 = vmatpush1.bf16.msra.mxu0 %v7086_v27  ;;  %v7112_v27 = vld [vmem:[#allocation27 + $0x1a8] sm:$0xff]  }
0x13b8   : > { %6298 = vmatprep.subr.bf16.mxu0 %v7090_v0 }
0x1428   : > { %v4219_v50 = vpop.xlane.xlu0 %4218 }
0x1429   : > { %v4226_v19 = vmul.f32 0.0078125, %v4219_v50 }
0x142a   : > { %v4221_v23 = vpop.xlane.xlu1 %4220 }
0x142b   : > { %v9568_v21 = vsub.f32 %v9553_v34, %v4226_v19  ;;  %v4227_v47 = vmul.f32 0.0078125, %v4221_v23 }
0x142c   : > { %v4223_v51 = vpop.xlane.xlu0 %4222 }
0x142d   : > { %v9571_v16 = vsub.f32 %v9557_v53, %v4227_v47  ;;  %v4228_v30 = vmul.f32 0.0078125, %v4223_v51  ;;  %v4234_v45 = vmul.f32 %v9568_v21, %v9568_v21  ;;  %v6032_v51 = vld [vmem:[#allocation22 + $0x1] ss:$0 sm:$0xff] }
0x142e   : > { %v4225_v38 = vpop.xlane.xlu1 %4224 }
0x142f   : > { %v9576_v41 = vsub.f32 %v9560_v42, %v4228_v30  ;;  %v4229_v35 = vmul.f32 0.0078125, %v4225_v38  ;;  %4238 = vadd.xlane.f32.xlu0 %v4234_v45  ;;  %v4235_v61 = vmul.f32 %v9571_v16, %v9571_v16 }
0x1431   : > { %v9581_v10 = vsub.f32 %v9563_v44, %v4229_v35  ;;  %4240 = vadd.xlane.f32.xlu1 %v4235_v61  ;;  %v4236_v31 = vmul.f32 %v9576_v41, %v9576_v41 }
0x1433   : > { %4242 = vadd.xlane.f32.xlu0 %v4236_v31  ;;  %v4237_v2 = vmul.f32 %v9581_v10, %v9581_v10 }
0x1435   : > { %4244 = vadd.xlane.f32.xlu1 %v4237_v2 }
0x14bc   : > { %v4239_v57 = vpop.xlane.xlu0 %4238 }
0x14bd   : > { %v4246_v28 = vmul.f32 0.0078125, %v4239_v57  ;;  %v7113_v57 = vld [vmem:[#allocation27 + $0x170] sm:$0xff]  }
0x14be   : > { %v4241_v46 = vpop.xlane.xlu1 %4240 }
0x14bf   : > { %v4250_v59 = vadd.f32 1e-05, %v4246_v28  ;;  %v4247_v11 = vmul.f32 0.0078125, %v4241_v46  ;;  %v7114_v28 = vld [vmem:[#allocation27 + $0x1f0] sm:$0xff]  }
0x14c0   : > { %v4243_v22 = vpop.xlane.xlu0 %4242  ;;  %v7115_v46 = vld [vmem:[#allocation27 + $0x130] sm:$0xff]  }
0x14c1   : > { %7249 = vrsqrt.f32 %v4250_v59  ;;  %v4251_v20 = vadd.f32 1e-05, %v4247_v11  ;;  %v4248_v17 = vmul.f32 0.0078125, %v4243_v22  ;;  %v7116_v59 = vld [vmem:[#allocation27 + $0x1b0] sm:$0xff]   ;;  %v4318_v11 = vld [vmem:[#allocation25 + $0x4] sm:$0xf] }
0x14c2   : > { %v4245_v37 = vpop.xlane.xlu1 %4244  ;;  %v7117_v22 = vld [vmem:[#allocation27 + $0x178] sm:$0xff]  }
0x14c3   : > { %7251 = vrsqrt.f32 %v4251_v20  ;;  %v4252_v36 = vadd.f32 1e-05, %v4248_v17  ;;  %v4249_v63 = vmul.f32 0.0078125, %v4245_v37  ;;  %v7118_v20 = vld [vmem:[#allocation27 + $0x1f8] sm:$0xff]  }
0x14c4   : > { %v7119_v17 = vld [vmem:[#allocation27 + $0x138] sm:$0xff]  }
0x14c5   : > { %7253 = vrsqrt.f32 %v4252_v36  ;;  %v4253_v7 = vadd.f32 1e-05, %v4249_v63  ;;  %v7120_v37 = vld [vmem:[#allocation27 + $0x1b8] sm:$0xff]   ;;  %v9594_v36 = vrot.slane %v4318_v11, %v10238_v26  ;;  %v9597_v63 = vrot.slane %v4318_v11, %v10240_v54 }
0x14c7   : > { %7255 = vrsqrt.f32 %v4253_v7  ;;  %v9600_v7 = vrot.slane %v4318_v11, %v10239_v24 }
0x14cb   : > { %v7250_v39 = vpop.eup %7249 }
0x14cc   : > { %v4258_v15 = vmul.f32 %v7250_v39, %v9568_v21  ;;  %v10245_v39 = vld [vmem:[#allocation50_spill] sm:$0xff] }
0x14cd   : > { %v7252_v50 = vpop.eup %7251 }
0x14ce   : > { %v4259_v19 = vmul.f32 %v7252_v50, %v9571_v16  ;;  %v4268_v23 = vmul.f32 %v6031_v14, %v4258_v15 }
0x14cf   : > { %v7254_v47 = vpop.eup %7253 }
0x14d0   : > { %v4269_v30 = vmul.f32 %v6031_v14, %v4259_v19  ;;  %v4278_v38 = vadd.f32 %v6032_v51, %v4268_v23  ;;  %v4260_v61 = vmul.f32 %v7254_v47, %v9576_v41  ;;  %v7092_v41 = vld [vmem:[#allocation27 + $0x180] sm:$0xff]  }
0x14d1   : > { %v7256_v45 = vpop.eup %7255 }
0x14d2   : > { %v4279_v35 = vadd.f32 %v6032_v51, %v4269_v30  ;;  %v4261_v31 = vmul.f32 %v7256_v45, %v9581_v10  ;;  %v4270_v8 = vmul.f32 %v6031_v14, %v4260_v61  ;;  %v7093_v10 = vld [vmem:[#allocation27 + $0x148] sm:$0xff]  }
0x14d4   : > { %v4315_v2 = vpack.c.bf16 %v4279_v35, %v4278_v38  ;;  %v4271_v62 = vmul.f32 %v6031_v14, %v4261_v31  ;;  %v4280_v16 = vadd.f32 %v6032_v51, %v4270_v8  ;;  %v10246_v14 = vsub.s32 3, %v10245_v39 }
0x14d6   : > { %4533 = vmatmul.mubr.bf16.vlgmr.msra.gmra.mrb[56].mxu1 %v4315_v2  ;;  %4586 = vmatmul.mubr.bf16.vlgmr.msra.gmra.mrb[44].mxu0 %v4315_v2  ;;  %v4281_v21 = vadd.f32 %v6032_v51, %v4271_v62  ;;  %v9604_v15 = vrot.slane %v4318_v11, %v10246_v14 }
0x14d7   : > { %4542 = vmatprep.mubr.bf16.mxu1 %v10232_v3  ;;  %4595 = vmatprep.mubr.bf16.mxu0 %v10232_v3  ;;  %v7097_v3 = vld [vmem:[#allocation27 + $0x150] sm:$0xff]  }
0x14d8   : > { %v4316_v18 = vpack.c.bf16 %v4281_v21, %v4280_v16  ;;  %6271 = vmatpush3.bf16.msra.mxu1 %v7091_v25  ;;  %6299 = vmatpush3.bf16.msra.mxu0 %v7092_v41 }
0x14d9   : > { %6272 = vmatprep.subr.bf16.mxu1 %v7093_v10  ;;  %6300 = vmatprep.subr.bf16.mxu0 %v7094_v60 }
0x14dc   : > { %6273 = vmatpush3.bf16.msra.mxu1 %v7095_v9  ;;  %6301 = vmatpush3.bf16.msra.mxu0 %v7096_v32  ;;  %v9637_v9 = vld [vmem:[#allocation30] sm:$0xff]  }
0x14dd   : > { %6274 = vmatprep.subr.bf16.mxu1 %v7097_v3  ;;  %6302 = vmatprep.subr.bf16.mxu0 %v7098_v49  ;;  %10247 = vst [vmem:[#allocation56_spill] sm:$0xff] %v9637_v9 }
0x14de   : > { %4543 = vmatmul.mubr.bf16.gmra.mrb[60].mxu1 %v4316_v18  ;;  %4596 = vmatmul.mubr.bf16.gmra.mrb[48].mxu0 %v4316_v18 }
0x14e0   : > { %6275 = vmatpush3.bf16.msra.mxu1 %v7099_v12  ;;  %6303 = vmatpush3.bf16.msra.mxu0 %v7100_v6 }
0x14e1   : > { %6276 = vmatprep.subr.bf16.mxu1 %v7101_v48  ;;  %6304 = vmatprep.subr.bf16.mxu0 %v7102_v33 }
0x14e4   : > { %6277 = vmatpush3.bf16.msra.mxu1 %v7103_v40  ;;  %6305 = vmatpush3.bf16.msra.mxu0 %v7104_v4 }
0x14e5   : > { %6278 = vmatprep.subr.bf16.mxu1 %v7105_v43  ;;  %6306 = vmatprep.subr.bf16.mxu0 %v7106_v29 }
0x14e8   : > { %6279 = vmatpush3.bf16.msra.mxu1 %v7107_v55  ;;  %6307 = vmatpush3.bf16.msra.mxu0 %v7108_v1 }
0x14e9   : > { %6280 = vmatprep.subr.bf16.mxu1 %v7109_v56  ;;  %6308 = vmatprep.subr.bf16.mxu0 %v7110_v13 }
0x14ec   : > { %6281 = vmatpush3.bf16.msra.mxu1 %v7111_v52  ;;  %6309 = vmatpush3.bf16.msra.mxu0 %v7112_v27 }
0x14ed   : > { %6282 = vmatprep.subr.bf16.mxu1 %v7113_v57  ;;  %6310 = vmatprep.subr.bf16.mxu0 %v7114_v28 }
0x14f0   : > { %6283 = vmatpush3.bf16.msra.mxu1 %v7115_v46  ;;  %6311 = vmatpush3.bf16.msra.mxu0 %v7116_v59 }
0x14f1   : > { %6284 = vmatprep.subr.bf16.mxu1 %v7117_v22  ;;  %6312 = vmatprep.subr.bf16.mxu0 %v7118_v20 }
0x14f4   : > { %6285 = vmatpush3.bf16.msra.mxu1 %v7119_v17  ;;  %6313 = vmatpush3.bf16.msra.mxu0 %v7120_v37 }
0x14f5   : > { %6546 = vmatprep.subr.bf16.mxu1 %v9637_v9 }
0x15a9   : > { %v4534_v50 = vpop.f32.mrb[56].mxu1  ;;  %v4587_v19 = vpop.f32.mrb[44].mxu0 }
0x15aa   : > { %v4535_v23 = vadd.f32 %v4534_v50, %v9594_v36  ;;  %v9608_v47 = vadd.f32 %v4587_v19, %v9597_v63  ;;  %v4536_v26 = vpop.f32.mrb[57].mxu1  ;;  %v4589_v51 = vpop.f32.mrb[45].mxu0 }
0x15ab   : > { %v9611_v54 = vadd.f32 %v4536_v26, %v9600_v7  ;;  %v9614_v30 = vadd.f32 %v4589_v51, %v9604_v15  ;;  %v4538_v24 = vpop.f32.mrb[58].mxu1  ;;  %v4591_v45 = vpop.f32.mrb[46].mxu0 }
0x15ac   : > { %v9616_v38 = vmul.f32 0.70710677, %v4535_v23  ;;  %v9619_v35 = vmul.f32 0.70710677, %v9608_v47  ;;  %v4540_v21 = vpop.f32.mrb[59].mxu1  ;;  %v4593_v0 = vpop.f32.mrb[47].mxu0  ;;  %v9647_v6 = vadd.f32 %v4538_v24, %v9594_v36  ;;  %v9661_v29 = vadd.f32 %v4591_v45, %v9597_v63 }
0x15ad   : > { %v9622_v61 = vmul.f32 0.70710677, %v9611_v54  ;;  %v9630_v8 = vmul.f32 0.70710677, %v9614_v30  ;;  %v9666_v56 = vadd.f32 %v4540_v21, %v9600_v7  ;;  %v9677_v11 = vadd.f32 %v4593_v0, %v9604_v15 }
0x15ae   : > { %v4670_v31 = vand.u32 2147483647, %v9616_v38  ;;  %v4672_v2 = vand.u32 2147483647, %v9619_v35  ;;  %v9658_v43 = vmul.f32 0.70710677, %v9647_v6 }
0x15af   : > { %v9627_v62 = vand.u32 2147483647, %v9622_v61  ;;  %v9640_v32 = vand.u32 2147483647, %v9630_v8  ;;  %v9670_v52 = vmul.f32 0.70710677, %v9661_v29 }
0x15b0   : > { %v4686_v16 = vmul.f32 0.3275911, %v4670_v31  ;;  %v4688_v18 = vmul.f32 0.3275911, %v4672_v2  ;;  %v4674_v13 = vand.u32 2147483647, %v9658_v43 }
0x15b1   : > { %v4687_v58 = vmul.f32 0.3275911, %v9627_v62  ;;  %v9633_v10 = vpop.f32.mrb[60].mxu1  ;;  %v9635_v60 = vpop.f32.mrb[48].mxu0  ;;  %v4689_v40 = vmul.f32 0.3275911, %v9640_v32 }
0x15b2   : > { %v4702_v25 = vadd.f32 1.0, %v4686_v16  ;;  %v4704_v41 = vadd.f32 1.0, %v4688_v18  ;;  %v9642_v3 = vpop.f32.mrb[61].mxu1  ;;  %v9644_v49 = vpop.f32.mrb[49].mxu0  ;;  %v4894_v27 = vsub.f32 0.0, %v4670_v31  ;;  %v4896_v22 = vsub.f32 0.0, %v4672_v2 }
0x15b3   : > { %v4703_v12 = vadd.f32 1.0, %v4687_v58  ;;  %v9649_v48 = vpop.f32.mrb[62].mxu1  ;;  %v9651_v33 = vpop.f32.mrb[50].mxu0  ;;  %v4705_v1 = vadd.f32 1.0, %v4689_v40  ;;  %v4690_v57 = vmul.f32 0.3275911, %v4674_v13 }
0x15b4   : > { %7257 = vrcp.f32 %v4702_v25  ;;  %v9655_v4 = vpop.f32.mrb[63].mxu1  ;;  %v9663_v55 = vpop.f32.mrb[51].mxu0  ;;  %v4676_v28 = vand.u32 2147483647, %v9670_v52  ;;  %v9674_v46 = vmul.f32 0.70710677, %v9666_v56  ;;  %v4910_v39 = vmul.f32 %v4894_v27, %v4670_v31 }
0x15b5   : > { %7259 = vrcp.f32 %v4704_v41  ;;  %v4706_v59 = vadd.f32 1.0, %v4690_v57  ;;  %v9686_v50 = vmul.f32 0.5, %v4535_v23  ;;  %vm4638_vm5 = vcmp.ge.f32.partialorder %v9616_v38, 0.0 }
0x15b6   : > { %7261 = vrcp.f32 %v4703_v12  ;;  %v4692_v20 = vmul.f32 0.3275911, %v4676_v28  ;;  %v9680_v17 = vand.u32 2147483647, %v9674_v46  ;;  %v4895_v45 = vsub.f32 0.0, %v9627_v62 }
0x15b7   : > { %7263 = vrcp.f32 %v4705_v1  ;;  %v9694_v21 = vmul.f32 0.70710677, %v9677_v11  ;;  %v4912_v16 = vmul.f32 %v4896_v22, %v4672_v2  ;;  %v4926_v58 = vmul.f32 1.442695, %v4910_v39 }
0x15b8   : > { %7265 = vrcp.f32 %v4706_v59  ;;  %v4708_v26 = vadd.f32 1.0, %v4692_v20  ;;  %v4691_v51 = vmul.f32 0.3275911, %v9680_v17  ;;  %v9702_v38 = vsel %vm4638_vm5, 1.0, %v10227_v5 }
0x15b9   : > { %v9699_v25 = vand.u32 2147483647, %v9694_v21  ;;  %vm4640_vm6 = vcmp.ge.f32.partialorder %v9619_v35, 0.0  ;;  %v4898_v40 = vsub.f32 0.0, %v4674_v13  ;;  %v4930_v59 = vmul.f32 1.442695, %v4912_v16 }
0x15ba   : > { %7267 = vrcp.f32 %v4708_v26  ;;  %v4707_v18 = vadd.f32 1.0, %v4691_v51  ;;  %v4911_v22 = vmul.f32 %v4895_v45, %v9627_v62  ;;  %v4897_v20 = vsub.f32 0.0, %v9640_v32 }
0x15bb   : > { %v4693_v1 = vmul.f32 0.3275911, %v9699_v25  ;;  %vm4642_vm7 = vcmp.ge.f32.partialorder %v9658_v43, 0.0  ;;  %vm4644_vm8 = vcmp.ge.f32.partialorder %v9670_v52, 0.0  ;;  %vm4639_vm9 = vcmp.ge.f32.partialorder %v9622_v61, 0.0 }
0x15bc   : > { %7269 = vrcp.f32 %v4707_v18  ;;  %v9721_v18 = vadd.f32 %v9633_v10, %v9594_v36  ;;  %vm4643_vm10 = vcmp.ge.f32.partialorder %v9674_v46, 0.0  ;;  %v9853_v61 = vmul.f32 0.5, %v9614_v30 }
0x15bd   : > { %7271 = vpow2.f32 %v4926_v58  ;;  %v4709_v26 = vadd.f32 1.0, %v4693_v1  ;;  %v4914_v58 = vmul.f32 %v4898_v40, %v4674_v13  ;;  %vm4645_vm11 = vcmp.ge.f32.partialorder %v9694_v21, 0.0 }
0x15be   : > { %v9682_v37 = vpop.eup %7257  ;;  %10248 = vst [vmem:[#allocation57_spill] sm:$0xff] %v9721_v18  ;;  %v9737_v40 = vmul.f32 0.70710677, %v9721_v18  ;;  %vm4641_vm12 = vcmp.ge.f32.partialorder %v9630_v8, 0.0 }
0x15bf   : > { %v9684_v14 = vpop.eup %7259  ;;  %v4750_v19 = vmul.f32 1.0614054, %v9682_v37  ;;  %7273 = vrcp.f32 %v4709_v26 }
0x15c0   : > { %v4752_v24 = vmul.f32 1.0614054, %v9684_v14  ;;  %v9696_v23 = vpop.eup %7261  ;;  %7275 = vpow2.f32 %v4930_v59  ;;  %10249 = vst [vmem:[#allocation51_spill] sm:$0xff] %v9737_v40 }
0x15c1   : > { %v4766_v31 = vadd.f32 -1.4531521, %v4750_v19  ;;  %v4751_v12 = vmul.f32 1.0614054, %v9696_v23  ;;  %v9709_v27 = vpop.eup %7263  ;;  %v4900_v19 = vsub.f32 0.0, %v4676_v28 }
0x15c2   : > { %v4768_v0 = vadd.f32 -1.4531521, %v4752_v24  ;;  %v9717_v24 = vsel %vm4640_vm6, 1.0, %v10227_v5  ;;  %v9723_v16 = vpop.eup %7265  ;;  %v4753_v45 = vmul.f32 1.0614054, %v9709_v27 }
0x15c3   : > { %v4782_v41 = vmul.f32 %v9682_v37, %v4766_v31  ;;  %v4767_v31 = vadd.f32 -1.4531521, %v4751_v12  ;;  %v4754_v35 = vmul.f32 1.0614054, %v9723_v16  ;;  %v9730_v12 = vmul.f32 0.5, %v9647_v6 }
0x15c4   : > { %v4784_v2 = vmul.f32 %v9684_v14, %v4768_v0  ;;  %v4916_v10 = vmul.f32 %v4900_v19, %v4676_v28 }
0x15c5   : > { %v4798_v57 = vadd.f32 1.4214138, %v4782_v41  ;;  %v4928_v41 = vmul.f32 1.442695, %v4911_v22  ;;  %v4783_v44 = vmul.f32 %v9696_v23, %v4767_v31  ;;  %v4770_v13 = vadd.f32 -1.4531521, %v4754_v35 }
0x15c6   : > { %v4800_v39 = vadd.f32 1.4214138, %v4784_v2  ;;  %v4913_v2 = vmul.f32 %v4897_v20, %v9640_v32  ;;  %v4769_v22 = vadd.f32 -1.4531521, %v4753_v45  ;;  %v4934_v20 = vmul.f32 1.442695, %v4914_v58 }
0x15c7   : > { %v4814_v51 = vmul.f32 %v9682_v37, %v4798_v57  ;;  %v9732_v57 = vpop.eup %7267  ;;  %v4786_v28 = vmul.f32 %v9723_v16, %v4770_v13  ;;  %v4799_v35 = vadd.f32 1.4214138, %v4783_v44  ;;  %v9747_v45 = vand.u32 2147483647, %v9737_v40 }
0x15c8   : > { %v4816_v62 = vmul.f32 %v9684_v14, %v4800_v39  ;;  %v4756_v59 = vmul.f32 1.0614054, %v9732_v57  ;;  %v4932_v6 = vmul.f32 1.442695, %v4913_v2  ;;  %v9743_v19 = vpop.eup %7269  ;;  %7277 = vpow2.f32 %v4934_v20 }
0x15c9   : > { %v4830_v0 = vadd.f32 -0.28449672, %v4814_v51  ;;  %v4802_v42 = vadd.f32 1.4214138, %v4786_v28  ;;  %v7272_v58 = vpop.eup %7271  ;;  %v4815_v20 = vmul.f32 %v9696_v23, %v4799_v35 }
0x15ca   : > { %v4832_v1 = vadd.f32 -0.28449672, %v4816_v62  ;;  %v4772_v31 = vadd.f32 -1.4531521, %v4756_v59  ;;  %v4938_v62 = vmul.f32 1.442695, %v4916_v10  ;;  %v9755_v44 = vpop.eup %7273 }
0x15cb   : > { %v4846_v39 = vmul.f32 %v9682_v37, %v4830_v0  ;;  %v4818_v10 = vmul.f32 %v9723_v16, %v4802_v42  ;;  %v4658_v59 = vsel %vm4642_vm7, 1.0, %v10227_v5  ;;  %v4757_v53 = vmul.f32 1.0614054, %v9755_v44 }
0x15cc   : > { %v4848_v32 = vmul.f32 %v9684_v14, %v4832_v1  ;;  %v4785_v1 = vmul.f32 %v9709_v27, %v4769_v22  ;;  %v4788_v2 = vmul.f32 %v9732_v57, %v4772_v31  ;;  %7279 = vpow2.f32 %v4938_v62 }
0x15cd   : > { %v4862_v26 = vadd.f32 0.2548296, %v4846_v39  ;;  %v4755_v39 = vmul.f32 1.0614054, %v9743_v19  ;;  %v4834_v28 = vadd.f32 -0.28449672, %v4818_v10  ;;  %7281 = vpow2.f32 %v4928_v41 }
0x15ce   : > { %v4864_v51 = vadd.f32 0.2548296, %v4848_v32  ;;  %v4901_v31 = vsub.f32 0.0, %v9699_v25  ;;  %v4801_v42 = vadd.f32 1.4214138, %v4785_v1  ;;  %7283 = vpow2.f32 %v4932_v6 }
0x15cf   : > { %v4878_v0 = vmul.f32 %v9682_v37, %v4862_v26  ;;  %v4899_v37 = vsub.f32 0.0, %v9680_v17  ;;  %v4804_v26 = vadd.f32 1.4214138, %v4788_v2  ;;  %v4771_v22 = vadd.f32 -1.4531521, %v4755_v39 }
0x15d0   : > { %v4880_v32 = vmul.f32 %v9684_v14, %v4864_v51  ;;  %v4694_v14 = vmul.f32 0.3275911, %v9747_v45  ;;  %v7276_v51 = vpop.eup %7275  ;;  %v4850_v62 = vmul.f32 %v9723_v16, %v4834_v28  ;;  %v4773_v10 = vadd.f32 -1.4531521, %v4757_v53 }
0x15d1   : > { %v4958_v13 = vmul.f32 %v7272_v58, %v4878_v0  ;;  %v4820_v0 = vmul.f32 %v9732_v57, %v4804_v26  ;;  %v4787_v58 = vmul.f32 %v9743_v19, %v4771_v22  ;;  %v4915_v2 = vmul.f32 %v4899_v37, %v9680_v17 }
0x15d2   : > { %v4960_v34 = vmul.f32 %v7276_v51, %v4880_v32  ;;  %v4831_v40 = vadd.f32 -0.28449672, %v4815_v20  ;;  %v4866_v18 = vadd.f32 0.2548296, %v4850_v62  ;;  %v4917_v1 = vmul.f32 %v4901_v31, %v9699_v25  ;;  %v7278_v37 = vpop.eup %7277 }
0x15d3   : > { %v4974_v43 = vsub.f32 1.0, %v4958_v13  ;;  %v4836_v35 = vadd.f32 -0.28449672, %v4820_v0  ;;  %v4803_v39 = vadd.f32 1.4214138, %v4787_v58  ;;  %v4710_v9 = vadd.f32 1.0, %v4694_v14 }
0x15d4   : > { %v4817_v26 = vmul.f32 %v9709_v27, %v4801_v42  ;;  %v4789_v32 = vmul.f32 %v9755_v44, %v4773_v10  ;;  %v4976_v28 = vsub.f32 1.0, %v4960_v34  ;;  %v4882_v17 = vmul.f32 %v9723_v16, %v4866_v18 }
0x15d5   : > { %v4852_v22 = vmul.f32 %v9732_v57, %v4836_v35  ;;  %v4819_v13 = vmul.f32 %v9743_v19, %v4803_v39  ;;  %v4936_v41 = vmul.f32 1.442695, %v4915_v2  ;;  %v4990_v53 = vmul.f32 %v4974_v43, %v9702_v38 }
0x15d6   : > { %v4805_v25 = vadd.f32 1.4214138, %v4789_v32  ;;  %v4962_v31 = vmul.f32 %v7278_v37, %v4882_v17  ;;  %v4940_v14 = vmul.f32 1.442695, %v4917_v1  ;;  %7285 = vrcp.f32 %v4710_v9  ;;  %v7280_v0 = vpop.eup %7279 }
0x15d7   : > { %v4868_v20 = vadd.f32 0.2548296, %v4852_v22  ;;  %v4835_v51 = vadd.f32 -0.28449672, %v4819_v13  ;;  %v9777_v42 = vadd.f32 %v9635_v60, %v9597_v63  ;;  %v4847_v34 = vmul.f32 %v9696_v23, %v4831_v40  ;;  %v7282_v35 = vpop.eup %7281 }
0x15d8   : > { %v4833_v6 = vadd.f32 -0.28449672, %v4817_v26  ;;  %v4821_v16 = vmul.f32 %v9755_v44, %v4805_v25  ;;  %v4978_v58 = vsub.f32 1.0, %v4962_v31  ;;  %7287 = vpow2.f32 %v4936_v41  ;;  %v7284_v41 = vpop.eup %7283 }
0x15d9   : > { %v4884_v18 = vmul.f32 %v9732_v57, %v4868_v20  ;;  %v4851_v38 = vmul.f32 %v9743_v19, %v4835_v51  ;;  %v5006_v43 = vadd.f32 1.0, %v4990_v53  ;;  %v4992_v9 = vmul.f32 %v4976_v28, %v9717_v24 }
0x15da   : > { %v4837_v60 = vadd.f32 -0.28449672, %v4821_v16  ;;  %v4994_v2 = vmul.f32 %v4978_v58, %v4658_v59  ;;  %7289 = vpow2.f32 %v4940_v14  ;;  %v9786_v40 = vmul.f32 0.70710677, %v9777_v42 }
0x15db   : > { %v4964_v62 = vmul.f32 %v7280_v0, %v4884_v18  ;;  %v9790_v57 = vadd.f32 %v9642_v3, %v9600_v7  ;;  %v4863_v39 = vadd.f32 0.2548296, %v4847_v34  ;;  %v4849_v10 = vmul.f32 %v9709_v27, %v4833_v6 }
0x15dc   : > { %v4853_v26 = vmul.f32 %v9755_v44, %v4837_v60  ;;  %v5010_v22 = vadd.f32 1.0, %v4994_v2  ;;  %v4660_v24 = vsel %vm4644_vm8, 1.0, %v10227_v5  ;;  %v4867_v59 = vadd.f32 0.2548296, %v4851_v38 }
0x15dd   : > { %v4980_v1 = vsub.f32 1.0, %v4964_v62  ;;  %v9798_v13 = vand.u32 2147483647, %v9786_v40  ;;  %v9801_v32 = vmul.f32 %v5006_v43, %v9686_v50  ;;  %v4608_v3 = vmul.f32 0.5, %v9608_v47 }
0x15de   : > { %v5008_v28 = vadd.f32 1.0, %v4992_v9  ;;  %v9805_v37 = vmul.f32 %v5010_v22, %v9730_v12  ;;  %v4869_v53 = vadd.f32 0.2548296, %v4853_v26  ;;  %v9809_v52 = vmul.f32 0.70710677, %v9790_v57 }
0x15df   : > { %v4996_v17 = vmul.f32 %v4980_v1, %v4660_v24  ;;  %v4696_v20 = vmul.f32 0.3275911, %v9798_v13  ;;  %v4879_v51 = vmul.f32 %v9696_v23, %v4863_v39  ;;  %v4865_v25 = vadd.f32 0.2548296, %v4849_v10 }
0x15e0   : > { %v4612_v50 = vmul.f32 0.5, %v9661_v29  ;;  %v9813_v14 = vpop.eup %7285  ;;  %v5103_v47 = vpack.c.bf16 %v9805_v37, %v9801_v32  ;;  %v4883_v12 = vmul.f32 %v9743_v19, %v4867_v59  ;;  %v9818_v34 = vmul.f32 %v5008_v28, %v4608_v3 }
0x15e1   : > { %v5012_v31 = vadd.f32 1.0, %v4996_v17  ;;  %v4712_v0 = vadd.f32 1.0, %v4696_v20  ;;  %v4758_v18 = vmul.f32 1.0614054, %v9813_v14  ;;  %v4885_v23 = vmul.f32 %v9755_v44, %v4869_v53 }
0x15e2   : > { %v7288_v16 = vpop.eup %7287  ;;  %v9825_v29 = vand.u32 2147483647, %v9809_v52  ;;  %v9829_v58 = vadd.f32 %v9644_v49, %v9604_v15  ;;  %v4959_v38 = vmul.f32 %v7282_v35, %v4879_v51  ;;  %v4881_v19 = vmul.f32 %v9709_v27, %v4865_v25 }
0x15e3   : > { %v9820_v6 = vmul.f32 %v5012_v31, %v4612_v50  ;;  %7291 = vrcp.f32 %v4712_v0  ;;  %v4963_v62 = vmul.f32 %v7288_v16, %v4883_v12  ;;  %v4607_v44 = vmul.f32 0.5, %v9611_v54 }
0x15e4   : > { %v7290_v9 = vpop.eup %7289  ;;  %v4695_v60 = vmul.f32 0.3275911, %v9825_v29  ;;  %v4774_v2 = vadd.f32 -1.4531521, %v4758_v18  ;;  %v9838_v39 = vmul.f32 0.70710677, %v9829_v58  ;;  %v9842_v27 = vadd.f32 %v9649_v48, %v9594_v36 }
0x15e5   : > { %v5105_v43 = vpack.c.bf16 %v9820_v6, %v9818_v34  ;;  %v4965_v49 = vmul.f32 %v7290_v9, %v4885_v23  ;;  %v9846_v35 = vadd.f32 %v9651_v33, %v9597_v63  ;;  %v4975_v1 = vsub.f32 1.0, %v4959_v38 }
0x15e6   : > { %v4711_v10 = vadd.f32 1.0, %v4695_v60  ;;  %v4961_v26 = vmul.f32 %v7284_v41, %v4881_v19  ;;  %v9850_v54 = vand.u32 2147483647, %v9838_v39  ;;  %v4979_v22 = vsub.f32 1.0, %v4963_v62 }
0x15e7   : > { %v4655_v36 = vsel %vm4639_vm9, 1.0, %v10227_v5  ;;  %v4790_v63 = vmul.f32 %v9813_v14, %v4774_v2  ;;  %v4659_v33 = vsel %vm4643_vm10, 1.0, %v10227_v5  ;;  %v4981_v46 = vsub.f32 1.0, %v4965_v49 }
0x15e8   : > { %7293 = vrcp.f32 %v4711_v10  ;;  %v4697_v48 = vmul.f32 0.3275911, %v9850_v54  ;;  %v9862_v24 = vmul.f32 0.70710677, %v9842_v27  ;;  %v9865_v30 = vmul.f32 0.70710677, %v9846_v35 }
0x15e9   : > { %v4991_v59 = vmul.f32 %v4975_v1, %v4655_v36  ;;  %v4977_v21 = vsub.f32 1.0, %v4961_v26  ;;  %v4661_v3 = vsel %vm4645_vm11, 1.0, %v10227_v5  ;;  %v4995_v41 = vmul.f32 %v4979_v22, %v4659_v33 }
0x15ea   : > { %v4713_v28 = vadd.f32 1.0, %v4697_v48  ;;  %v4902_v53 = vsub.f32 0.0, %v9747_v45  ;;  %v4682_v20 = vand.u32 2147483647, %v9862_v24  ;;  %v9873_v51 = vand.u32 2147483647, %v9865_v30 }
0x15eb   : > { %v4806_v25 = vadd.f32 1.4214138, %v4790_v63  ;;  %v9878_v31 = vadd.f32 %v9655_v4, %v9600_v7  ;;  %v4657_v12 = vsel %vm4641_vm12, 1.0, %v10227_v5  ;;  %v4997_v0 = vmul.f32 %v4981_v46, %v4661_v3 }
0x15ec   : > { %7295 = vrcp.f32 %v4713_v28  ;;  %v4904_v18 = vsub.f32 0.0, %v9798_v13  ;;  %v4698_v16 = vmul.f32 0.3275911, %v4682_v20  ;;  %v5007_v23 = vadd.f32 1.0, %v4991_v59 }
0x15ed   : > { %v9868_v17 = vpop.eup %7291  ;;  %v4611_v38 = vmul.f32 0.5, %v9666_v56  ;;  %v4700_v9 = vmul.f32 0.3275911, %v9873_v51  ;;  %v4993_v62 = vmul.f32 %v4977_v21, %v4657_v12  ;;  %v5011_v60 = vadd.f32 1.0, %v4995_v41 }
0x15ee   : > { %v4760_v50 = vmul.f32 1.0614054, %v9868_v17  ;;  %v4918_v2 = vmul.f32 %v4902_v53, %v9747_v45  ;;  %v4714_v7 = vadd.f32 1.0, %v4698_v16  ;;  %v4822_v4 = vmul.f32 %v9813_v14, %v4806_v25 }
0x15ef   : > { %v4716_v49 = vadd.f32 1.0, %v4700_v9  ;;  %v9890_v10 = vmul.f32 0.70710677, %v9878_v31  ;;  %v5013_v26 = vadd.f32 1.0, %v4997_v0  ;;  %v4920_v56 = vmul.f32 %v4904_v18, %v9798_v13 }
0x15f0   : > { %v4776_v19 = vadd.f32 -1.4531521, %v4760_v50  ;;  %v4903_v22 = vsub.f32 0.0, %v9825_v29  ;;  %7297 = vrcp.f32 %v4714_v7  ;;  %v9899_v63 = vadd.f32 %v9663_v55, %v9604_v15 }
0x15f1   : > { %7299 = vrcp.f32 %v4716_v49  ;;  %v5023_v48 = vmul.f32 %v5007_v23, %v4607_v44  ;;  %v5027_v33 = vmul.f32 %v5011_v60, %v4611_v38  ;;  %v4613_v46 = vmul.f32 0.5, %v9677_v11 }
0x15f2   : > { %v4792_v8 = vmul.f32 %v9868_v17, %v4776_v19  ;;  %v9892_v1 = vpop.eup %7293  ;;  %v9903_v59 = vand.u32 2147483647, %v9890_v10  ;;  %v4838_v21 = vadd.f32 -0.28449672, %v4822_v4  ;;  %v4942_v13 = vmul.f32 1.442695, %v4918_v2 }
0x15f3   : > { %v4759_v45 = vmul.f32 1.0614054, %v9892_v1  ;;  %v5009_v41 = vadd.f32 1.0, %v4993_v62  ;;  %v4946_v53 = vmul.f32 1.442695, %v4920_v56  ;;  %v4906_v25 = vsub.f32 0.0, %v4682_v20 }
0x15f4   : > { %v4808_v36 = vadd.f32 1.4214138, %v4792_v8  ;;  %v4699_v50 = vmul.f32 0.3275911, %v9903_v59  ;;  %v5029_v15 = vmul.f32 %v5013_v26, %v4613_v46  ;;  %v4919_v11 = vmul.f32 %v4903_v22, %v9825_v29  ;;  %v7122_v62 = vld [vmem:[#allocation30 + $0x8] sm:$0xff]   ;;  %v10250_v22 = vld [vmem:[#allocation56_spill] sm:$0xff] }
0x15f5   : > { %v4775_v28 = vadd.f32 -1.4531521, %v4759_v45  ;;  %v9912_v44 = vmul.f32 0.70710677, %v9899_v63  ;;  %v5104_v23 = vpack.c.bf16 %v5027_v33, %v5023_v48  ;;  %v4854_v38 = vmul.f32 %v9813_v14, %v4838_v21 }
0x15f6   : > { %v4824_v3 = vmul.f32 %v9868_v17, %v4808_v36  ;;  %v9907_v12 = vpop.eup %7295  ;;  %v4715_v16 = vadd.f32 1.0, %v4699_v50  ;;  %7301 = vpow2.f32 %v4942_v13  ;;  %v4908_v9 = vsub.f32 0.0, %v9873_v51  ;;  %v7123_v36 = vld [vmem:[#allocation30 + $0x10] sm:$0xff]  }
0x15f7   : > { %v4791_v55 = vmul.f32 %v9892_v1, %v4775_v28  ;;  %v4761_v18 = vmul.f32 1.0614054, %v9907_v12  ;;  %v5025_v60 = vmul.f32 %v5009_v41, %v9853_v61  ;;  %v4922_v7 = vmul.f32 %v4906_v25, %v4682_v20  ;;  %5335 = vmatprep.mubr.bf16.mxu1 %v5104_v23  ;;  %v10251_v41 = vld [vmem:[#allocation57_spill] sm:$0xff] }
0x15f8   : > { %v4840_v0 = vadd.f32 -0.28449672, %v4824_v3  ;;  %7303 = vrcp.f32 %v4715_v16  ;;  %v4944_v4 = vmul.f32 1.442695, %v4919_v11  ;;  %v9920_v8 = vand.u32 2147483647, %v9912_v44  ;;  %5336 = vmatmul.mubr.bf16.vlgmr.msra.gmra.mrb[64].mxu1 %v5103_v47 }
0x15f9   : > { %v4807_v19 = vadd.f32 1.4214138, %v4791_v55  ;;  %v4777_v2 = vadd.f32 -1.4531521, %v4761_v18  ;;  %7305 = vpow2.f32 %v4946_v53  ;;  %v4905_v20 = vsub.f32 0.0, %v9850_v54  ;;  %6547 = vmatpush3.bf16.msra.mxu1 %v10250_v22 }
0x15fa   : > { %v9925_v49 = vpop.eup %7297  ;;  %v4856_v26 = vmul.f32 %v9868_v17, %v4840_v0  ;;  %v5106_v56 = vpack.c.bf16 %v5029_v15, %v5025_v60  ;;  %v4870_v48 = vadd.f32 0.2548296, %v4854_v38  ;;  %v4924_v32 = vmul.f32 %v4908_v9, %v9873_v51  ;;  %6548 = vmatprep.subr.bf16.mxu1 %v7122_v62  ;;  %v10252_v0 = vld [vmem:[#allocation51_spill] sm:$0xff] }
0x15fb   : > { %v4823_v29 = vmul.f32 %v9892_v1, %v4807_v19  ;;  %v4793_v61 = vmul.f32 %v9907_v12, %v4777_v2  ;;  %v9931_v45 = vpop.eup %7299  ;;  %v4762_v33 = vmul.f32 1.0614054, %v9925_v49  ;;  %v4701_v37 = vmul.f32 0.3275911, %v9920_v8 }
0x15fc   : > { %v4950_v46 = vmul.f32 1.442695, %v4922_v7  ;;  %v4764_v21 = vmul.f32 1.0614054, %v9931_v45  ;;  %5384 = vmatprep.mubr.bf16.mxu0 %v5106_v56  ;;  %v9941_v53 = vmul.f32 0.5, %v10251_v41  ;;  %v4907_v50 = vsub.f32 0.0, %v9903_v59 }
0x15fd   : > { %v4809_v47 = vadd.f32 1.4214138, %v4793_v61  ;;  %v4839_v13 = vadd.f32 -0.28449672, %v4823_v29  ;;  %v4778_v3 = vadd.f32 -1.4531521, %v4762_v33  ;;  %5385 = vmatmul.mubr.bf16.vlgmr.msra.gmra.mrb[52].mxu0 %v5105_v43  ;;  %6549 = vmatpush3.bf16.msra.mxu1 %v7122_v62  ;;  %v4921_v15 = vmul.f32 %v4905_v20, %v9850_v54 }
0x15fe   : > { %v4717_v28 = vadd.f32 1.0, %v4701_v37  ;;  %v4872_v25 = vadd.f32 0.2548296, %v4856_v26  ;;  %v4780_v51 = vadd.f32 -1.4531521, %v4764_v21  ;;  %6550 = vmatprep.subr.bf16.mxu1 %v7123_v36  ;;  %vm4646_vm3 = vcmp.ge.f32.partialorder %v10252_v0, 0.0 }
0x15ff   : > { %v4794_v55 = vmul.f32 %v9925_v49, %v4778_v3  ;;  %v4954_v11 = vmul.f32 1.442695, %v4924_v32  ;;  %v4886_v34 = vmul.f32 %v9813_v14, %v4870_v48  ;;  %v4825_v6 = vmul.f32 %v9907_v12, %v4809_v47 }
0x1600   : > { %7307 = vrcp.f32 %v4717_v28  ;;  %v4796_v43 = vmul.f32 %v9931_v45, %v4780_v51  ;;  %v7302_v18 = vpop.eup %7301  ;;  %vm4648_vm13 = vcmp.ge.f32.partialorder %v9786_v40, 0.0  ;;  %v4855_v16 = vmul.f32 %v9892_v1, %v4839_v13 }
0x1601   : > { %7309 = vpow2.f32 %v4944_v4  ;;  %v4810_v54 = vadd.f32 1.4214138, %v4794_v55  ;;  %v4888_v38 = vmul.f32 %v9868_v17, %v4872_v25  ;;  %v4923_v9 = vmul.f32 %v4907_v50, %v9903_v59  ;;  %6551 = vmatpush3.bf16.msra.mxu1 %v7123_v36 }
0x1602   : > { %v9952_v23 = vpop.eup %7303  ;;  %7311 = vpow2.f32 %v4950_v46  ;;  %v4812_v19 = vadd.f32 1.4214138, %v4796_v43  ;;  %v4948_v62 = vmul.f32 1.442695, %v4921_v15  ;;  %v4966_v7 = vmul.f32 %v7302_v18, %v4886_v34 }
0x1603   : > { %v7306_v14 = vpop.eup %7305  ;;  %v4826_v60 = vmul.f32 %v9925_v49, %v4810_v54  ;;  %7313 = vpow2.f32 %v4954_v11  ;;  %v4763_v2 = vmul.f32 1.0614054, %v9952_v23  ;;  %v4841_v29 = vadd.f32 -0.28449672, %v4825_v6 }
0x1604   : > { %v4828_v4 = vmul.f32 %v9931_v45, %v4812_v19  ;;  %v4909_v26 = vsub.f32 0.0, %v9920_v8  ;;  %v4871_v61 = vadd.f32 0.2548296, %v4855_v16  ;;  %v4662_v59 = vsel %vm4646_vm3, 1.0, %v10227_v5 }
0x1605   : > { %v4842_v17 = vadd.f32 -0.28449672, %v4826_v60  ;;  %v4779_v20 = vadd.f32 -1.4531521, %v4763_v2  ;;  %v4968_v56 = vmul.f32 %v7306_v14, %v4888_v38  ;;  %v4952_v36 = vmul.f32 1.442695, %v4923_v9 }
0x1606   : > { %v4844_v22 = vadd.f32 -0.28449672, %v4828_v4  ;;  %v9964_v48 = vmul.f32 0.5, %v9777_v42  ;;  %v4664_v33 = vsel %vm4648_vm13, 1.0, %v10227_v5  ;;  %v4982_v47 = vsub.f32 1.0, %v4966_v7 }
0x1607   : > { %v4858_v32 = vmul.f32 %v9925_v49, %v4842_v17  ;;  %v4795_v37 = vmul.f32 %v9952_v23, %v4779_v20  ;;  %v4857_v46 = vmul.f32 %v9907_v12, %v4841_v29  ;;  %7315 = vpow2.f32 %v4948_v62 }
0x1608   : > { %v4860_v21 = vmul.f32 %v9931_v45, %v4844_v22  ;;  %v4887_v3 = vmul.f32 %v9892_v1, %v4871_v61  ;;  %v4925_v41 = vmul.f32 %v4909_v26, %v9920_v8  ;;  %v4984_v40 = vsub.f32 1.0, %v4968_v56 }
0x1609   : > { %v4874_v42 = vadd.f32 0.2548296, %v4858_v32  ;;  %v4811_v28 = vadd.f32 1.4214138, %v4795_v37  ;;  %7317 = vpow2.f32 %v4952_v36  ;;  %vm4650_vm14 = vcmp.ge.f32.partialorder %v9862_v24, 0.0 }
0x160a   : > { %v9973_v13 = vpop.eup %7307  ;;  %v4876_v25 = vadd.f32 0.2548296, %v4860_v21  ;;  %vm4652_vm15 = vcmp.ge.f32.partialorder %v9865_v30, 0.0  ;;  %v4998_v1 = vmul.f32 %v4982_v47, %v4662_v59  ;;  %v4873_v0 = vadd.f32 0.2548296, %v4857_v46 }
0x160b   : > { %v4765_v51 = vmul.f32 1.0614054, %v9973_v13  ;;  %v7310_v50 = vpop.eup %7309  ;;  %v4890_v15 = vmul.f32 %v9925_v49, %v4874_v42  ;;  %v4827_v55 = vmul.f32 %v9952_v23, %v4811_v28  ;;  %v4956_v54 = vmul.f32 1.442695, %v4925_v41 }
0x160c   : > { %v7312_v11 = vpop.eup %7311  ;;  %v4892_v34 = vmul.f32 %v9931_v45, %v4876_v25  ;;  %v4967_v43 = vmul.f32 %v7310_v50, %v4887_v3  ;;  %v5000_v38 = vmul.f32 %v4984_v40, %v4664_v33  ;;  %vm4647_vm0 = vcmp.ge.f32.partialorder %v9809_v52, 0.0 }
0x160d   : > { %v4781_v8 = vadd.f32 -1.4531521, %v4765_v51  ;;  %v7314_v6 = vpop.eup %7313  ;;  %v4970_v18 = vmul.f32 %v7312_v11, %v4890_v15  ;;  %v4843_v16 = vadd.f32 -0.28449672, %v4827_v55  ;;  %v4666_v9 = vsel %vm4650_vm14, 1.0, %v10227_v5 }
0x160e   : > { %v4972_v19 = vmul.f32 %v7314_v6, %v4892_v34  ;;  %v4668_v45 = vsel %vm4652_vm15, 1.0, %v10227_v5  ;;  %v5014_v60 = vadd.f32 1.0, %v4998_v1  ;;  %v4889_v2 = vmul.f32 %v9907_v12, %v4873_v0 }
0x160f   : > { %v4797_v49 = vmul.f32 %v9973_v13, %v4781_v8  ;;  %v4986_v14 = vsub.f32 1.0, %v4970_v18  ;;  %v4859_v62 = vmul.f32 %v9952_v23, %v4843_v16  ;;  %v4983_v4 = vsub.f32 1.0, %v4967_v43 }
0x1610   : > { %v4988_v7 = vsub.f32 1.0, %v4972_v19  ;;  %7319 = vpow2.f32 %v4956_v54  ;;  %v5016_v20 = vadd.f32 1.0, %v5000_v38  ;;  %v4663_v24 = vsel %vm4647_vm0, 1.0, %v10227_v5 }
0x1611   : > { %v4813_v29 = vadd.f32 1.4214138, %v4797_v49  ;;  %v5002_v26 = vmul.f32 %v4986_v14, %v4666_v9  ;;  %v4875_v61 = vadd.f32 0.2548296, %v4859_v62  ;;  %v7316_v17 = vpop.eup %7315  ;;  %v4618_v56 = vmul.f32 0.5, %v9842_v27  ;;  %v7125_v9 = vld [vmem:[#allocation30 + $0x20] sm:$0xff]  }
0x1612   : > { %v5004_v59 = vmul.f32 %v4988_v7, %v4668_v45  ;;  %v4620_v12 = vmul.f32 0.5, %v9846_v35  ;;  %v4969_v32 = vmul.f32 %v7316_v17, %v4889_v2  ;;  %vm4651_vm1 = vcmp.ge.f32.partialorder %v9890_v10, 0.0  ;;  %v7127_v14 = vld [vmem:[#allocation30 + $0x30] sm:$0xff]  }
0x1613   : > { %v4829_v30 = vmul.f32 %v9973_v13, %v4813_v29  ;;  %v5018_v22 = vadd.f32 1.0, %v5002_v26  ;;  %v4891_v36 = vmul.f32 %v9952_v23, %v4875_v61  ;;  %v7318_v33 = vpop.eup %7317  ;;  %v5030_v46 = vmul.f32 %v5014_v60, %v9941_v53 }
0x1614   : > { %v5020_v37 = vadd.f32 1.0, %v5004_v59  ;;  %v4999_v52 = vmul.f32 %v4983_v4, %v4663_v24  ;;  %v5032_v42 = vmul.f32 %v5016_v20, %v9964_v48  ;;  %vm4649_vm2 = vcmp.ge.f32.partialorder %v9838_v39, 0.0  ;;  %v10253_v59 = vld [vmem:[#allocation58_spill] sm:$0xff] }
0x1615   : > { %v4845_v47 = vadd.f32 -0.28449672, %v4829_v30  ;;  %v5034_v21 = vmul.f32 %v5018_v22, %v4618_v56  ;;  %v4971_v3 = vmul.f32 %v7318_v33, %v4891_v36  ;;  %v4985_v41 = vsub.f32 1.0, %v4969_v32  ;;  %v6097_v22 = vld [vmem:[#allocation28 + $0x1] ss:$0 sm:$0xff] }
0x1616   : > { %v5036_v28 = vmul.f32 %v5020_v37, %v4620_v12  ;;  %v4667_v40 = vsel %vm4651_vm1, 1.0, %v10227_v5  ;;  %v5015_v51 = vadd.f32 1.0, %v4999_v52  ;;  %v4615_v55 = vmul.f32 0.5, %v9790_v57  ;;  %v10254_v12 = vld [vmem:[#allocation59_spill] sm:$0xff] }
0x1617   : > { %v4861_v27 = vmul.f32 %v9973_v13, %v4845_v47  ;;  %v4987_v35 = vsub.f32 1.0, %v4971_v3  ;;  %v5107_v23 = vpack.c.bf16 %v5034_v21, %v5030_v46  ;;  %v4665_v48 = vsel %vm4649_vm2, 1.0, %v10227_v5 }
0x1618   : > { %v5109_v10 = vpack.c.bf16 %v5036_v28, %v5032_v42  ;;  %v4619_v11 = vmul.f32 0.5, %v9878_v31  ;;  %v5001_v39 = vmul.f32 %v4985_v41, %v4665_v48  ;;  %vm4653_vm4 = vcmp.ge.f32.partialorder %v9912_v44, 0.0  ;;  %v7124_v44 = vld [vmem:[#allocation30 + $0x18] sm:$0xff]  }
0x1619   : > { %v4877_v25 = vadd.f32 0.2548296, %v4861_v27  ;;  %v5003_v50 = vmul.f32 %v4987_v35, %v4667_v40  ;;  %v5031_v34 = vmul.f32 %v5015_v51, %v4615_v55  ;;  %v4669_v43 = vsel %vm4653_vm4, 1.0, %v10227_v5  ;;  %6552 = vmatprep.subr.bf16.mxu1 %v7124_v44  ;;  %v7126_v5 = vld [vmem:[#allocation30 + $0x28] sm:$0xff]  }
0x161a   : > { %v7320_v15 = vpop.eup %7319  ;;  %v5017_v16 = vadd.f32 1.0, %v5001_v39  ;;  %v4617_v57 = vmul.f32 0.5, %v9829_v58  ;;  %v4621_v54 = vmul.f32 0.5, %v9899_v63  ;;  %6553 = vmatpush3.bf16.msra.mxu1 %v7124_v44  ;;  %v7128_v58 = vld [vmem:[#allocation30 + $0x38] sm:$0xff]  }
0x161b   : > { %v4893_v53 = vmul.f32 %v9973_v13, %v4877_v25  ;;  %v5019_v1 = vadd.f32 1.0, %v5003_v50  ;;  %6554 = vmatprep.subr.bf16.mxu1 %v7125_v9 }
0x161c   : > { %v5033_v31 = vmul.f32 %v5017_v16, %v4617_v57 }
0x161d   : > { %v4973_v0 = vmul.f32 %v7320_v15, %v4893_v53  ;;  %v5035_v8 = vmul.f32 %v5019_v1, %v4619_v11  ;;  %v10256_v53 = vld [vmem:[#allocation55_spill] sm:$0xff]  ;;  %v6098_v1 = vld [vmem:[#allocation31] ss:$0 sm:$0xff] }
0x161e   : > { %6555 = vmatpush3.bf16.msra.mxu1 %v7125_v9 }
0x161f   : > { %v4989_v6 = vsub.f32 1.0, %v4973_v0  ;;  %v5108_v18 = vpack.c.bf16 %v5035_v8, %v5031_v34  ;;  %6556 = vmatprep.subr.bf16.mxu1 %v7126_v5 }
0x1621   : > { %v5005_v13 = vmul.f32 %v4989_v6, %v4669_v43  ;;  %5343 = vmatprep.mubr.bf16.mxu1 %v5108_v18 }
0x1622   : > { %5344 = vmatmul.mubr.bf16.gmra.mrb[68].mxu1 %v5107_v23 }
0x1623   : > { %v5021_v38 = vadd.f32 1.0, %v5005_v13  ;;  %6557 = vmatpush3.bf16.msra.mxu1 %v7126_v5 }
0x1624   : > { %6558 = vmatprep.subr.bf16.mxu1 %v7127_v14 }
0x1625   : > { %v5037_v19 = vmul.f32 %v5021_v38, %v4621_v54 }
0x1627   : > { %v5110_v49 = vpack.c.bf16 %v5037_v19, %v5033_v31  ;;  %6559 = vmatpush3.bf16.msra.mxu1 %v7127_v14 }
0x1628   : > { %6560 = vmatprep.subr.bf16.mxu1 %v7128_v58 }
0x1629   : > { %5392 = vmatprep.mubr.bf16.mxu0 %v5110_v49 }
0x162a   : > { %5393 = vmatmul.mubr.bf16.gmra.mrb[56].mxu0 %v5109_v10  ;;  %v10255_v10 = vld [vmem:[#allocation54_spill] sm:$0xff] }
0x162b   : > { %6561 = vmatpush3.bf16.msra.mxu1 %v7128_v58 }
0x16cb   : > { %v6286_v63 = vpop.f32.mrb[64].mxu1 }
0x16cc   : > { %v6287_v45 = vpop.f32.mrb[65].mxu1 }
0x16cd   : > { %v6288_v62 = vadd.f32 %v6287_v45, %v6286_v63  ;;  %v6289_v60 = vpop.f32.mrb[66].mxu1 }
0x16ce   : > { %v6290_v2 = vpop.f32.mrb[67].mxu1 }
0x16cf   : > { %v6291_v29 = vadd.f32 %v6290_v2, %v6289_v60 }
0x16d0   : > { %v6314_v7 = vpop.f32.mrb[52].mxu0 }
0x16d1   : > { %v6315_v4 = vpop.f32.mrb[53].mxu0 }
0x16d2   : > { %v6316_v26 = vadd.f32 %v6315_v4, %v6314_v7  ;;  %v6317_v61 = vpop.f32.mrb[54].mxu0 }
0x16d3   : > { %v6318_v17 = vpop.f32.mrb[55].mxu0 }
0x16d4   : > { %v5387_v20 = vadd.f32 %v6316_v26, %v6288_v62  ;;  %v6319_v24 = vadd.f32 %v6318_v17, %v6317_v61 }
0x16d6   : > { %v5401_v30 = vadd.f32 %v5387_v20, %v10253_v59  ;;  %v5390_v56 = vadd.f32 %v6319_v24, %v6291_v29 }
0x16d8   : > { %v5402_v36 = vadd.f32 %v5390_v56, %v10254_v12  ;;  %v5413_v33 = vadd.f32 %v6097_v22, %v5401_v30 }
0x16da   : > { %v5414_v32 = vadd.f32 %v6097_v22, %v5402_v36 }
0x16dc   : > { %v5433_v37 = vpack.c.bf16 %v5414_v32, %v5413_v33 }
0x16de   : > { %6562 = vmatprep.mubr.bf16.mxu1 %v5433_v37 }
0x16f5   : > { %v6292_v47 = vpop.f32.mrb[68].mxu1 }
0x16f6   : > { %v6293_v46 = vpop.f32.mrb[69].mxu1 }
0x16f7   : > { %v6294_v52 = vadd.f32 %v6293_v46, %v6292_v47  ;;  %v6295_v21 = vpop.f32.mrb[70].mxu1 }
0x16f8   : > { %v6296_v3 = vpop.f32.mrb[71].mxu1 }
0x16f9   : > { %v6297_v42 = vadd.f32 %v6296_v3, %v6295_v21 }
0x16fd   : > { %v6320_v28 = vpop.f32.mrb[56].mxu0 }
0x16fe   : > { %v6321_v27 = vpop.f32.mrb[57].mxu0 }
0x16ff   : > { %v6322_v35 = vadd.f32 %v6321_v27, %v6320_v28  ;;  %v6323_v23 = vpop.f32.mrb[58].mxu0 }
0x1700   : > { %v6324_v41 = vpop.f32.mrb[59].mxu0 }
0x1701   : > { %v5395_v40 = vadd.f32 %v6322_v35, %v6294_v52  ;;  %v6325_v25 = vadd.f32 %v6324_v41, %v6323_v23 }
0x1703   : > { %v5403_v51 = vadd.f32 %v5395_v40, %v10255_v10  ;;  %v5398_v50 = vadd.f32 %v6325_v25, %v6297_v42 }
0x1705   : > { %v5404_v15 = vadd.f32 %v5398_v50, %v10256_v53  ;;  %v5415_v55 = vadd.f32 %v6097_v22, %v5403_v51 }
0x1707   : > { %v5416_v48 = vadd.f32 %v6097_v22, %v5404_v15 }
0x1709   : > { %v5434_v11 = vpack.c.bf16 %v5416_v48, %v5415_v55 }
0x170b   : > { %6563 = vmatmul.mubr.bf16.vlgmr.msra.gmra.mrb[72].mxu1 %v5434_v11 }
0x17de   : > { %v6564_v39 = vpop.f32.mrb[72].mxu1 }
0x17df   : > { %v5533_v0 = vadd.f32 %v6564_v39, %v6098_v1  ;;  %v5524_v34 = vpop.f32.mrb[73].mxu1 }
0x17e0   : > { %v5525_v8 = vadd.f32 %v6098_v1, %v5524_v34  ;;  %v6565_v6 = vpop.f32.mrb[74].mxu1 }
0x17e1   : > { %5541 = vst [vmem:[%s1056_s5 + $0x10] sm:$0xff] %v5533_v0  ;;  %v5536_v43 = vadd.f32 %v6565_v6, %v6098_v1  ;;  %v5527_v18 = vpop.f32.mrb[75].mxu1 }
0x17e2   : > { %5539 = vst [vmem:[%s1056_s5] sm:$0xff] %v5525_v8  ;;  %v5528_v16 = vadd.f32 %v6098_v1, %v5527_v18 }
0x17e3   : > { %5542 = vst [vmem:[%s1056_s5 + $0x18] sm:$0xff] %v5536_v43 }
0x17e4   : > { %5540 = vst [vmem:[%s1056_s5 + $0x8] sm:$0xff] %v5528_v16 }
0x17e5 PF: > { %s10258_s29 = sld [smem:[#allocation45_spill]]  ;;  %s10259_s20 = sld [smem:[#allocation46_spill]] }
0x17e6   : > { %s10260_s26 = smov %s8611_s2  ;;  %p45_p0 = scmp.ge.s32.totalorder %s8599_s30, 4  }
0x17e7   : > { %s10262_s6 = smov %s10260_s26 }
0x17e8   :  { %47 = sbr.rel (!%p45_p0) target bundleno = 35 (0x23), region = 250 }
0x17eb   : > { %s10261_s2 = smov %s10259_s20 }
0x17ef   :  { %5564 = vsyncpa [#allocation3], 1 }
0x17f0   :  { %5566 = vsyncpa [#allocation3 + $0x1], 1 }
0x17f1   :  { %5567 = vsyncpa [#allocation5], 1 }
0x17f2   :  { %5568 = vsyncpa [#allocation8], 1 }
0x17f3   :  { %5569 = vsyncpa [#allocation11], 1 }
0x17f4   :  { %5570 = vsyncpa [#allocation14], 1 }
0x17f5   :  { %5571 = vsyncpa [#allocation17], 1 }
0x17f6   :  { %5572 = vsyncpa [#allocation20], 1 }
0x17f7   :  { %5573 = vsyncpa [#allocation23], 1 }
0x17f8   :  { %5574 = vsyncpa [#allocation26], 1 }
0x17f9   :  { %5575 = vsyncpa [#allocation29], 1 }
0x17fa   :  { %5576 = vsyncpa [#allocation32], 1 }

</bundles_post_ra>
